<compile_context>
chip_gen: v7x
topology: tpu7x:2x2x1
jax: 0.10.0
libtpu: 0.0.40
codegen_flags: <defaults>
</compile_context>

<pallas_src>
import jax
import jax.numpy as jnp
from jax.experimental import pallas as pl
from jax.experimental.pallas import tpu as pltpu

_NUM_CLASSES = 10
_CLS_PAD = 128  # lane-dense output width


# ----------------------------- fused kernel --------------------------------

def _fused_cnn_kernel(
    x_ref,                       # [32, TB, 96]   (H, batch, W*C), f32
    t1_ref, b1_ref,              # [5, 96, 168], [1, 168]
    sx1e_ref, sx1o_ref,          # [168, 84] x2   lane (width) pool selectors
    t2_ref, b2_ref,              # [5, 84, 160], [1, 160]
    sx2e_ref, sx2o_ref,          # [160, 80] x2
    wfc1_ref, bfc1_ref,          # [5, 80, 120], [1, 120]
    wfc2_ref, bfc2_ref,          # [120, 84],    [1, 84]
    wfc3_ref, bfc3_ref,          # [84, 128],    [1, 128]
    out_ref,                     # [TB, 128]
):
    tb = x_ref.shape[1]

    def mm(a, b):
        return jnp.dot(a, b, preferred_element_type=jnp.float32)

    # ---- conv1 (5x5, 3->6): 5 batched Toeplitz matmuls ----------------------
    # rows are (oy, b) interleaved: row = oy*TB + b ; lanes are ox*6 + co.
    acc1 = mm(x_ref[pl.ds(0, 28), :, :].reshape(28 * tb, 96), t1_ref[0])
    for i in range(1, 5):
        acc1 = acc1 + mm(x_ref[pl.ds(i, 28), :, :].reshape(28 * tb, 96),
                         t1_ref[i])
    a1 = (acc1 + b1_ref[...]).reshape(14, 2, tb, 168)       # split y into pairs
    # ---- 2x2 max-pool: rows via slab max (VPU), lanes via selection matmuls;
    #      relu after the pool (max/relu commute) ------------------------------
    ya = jnp.maximum(a1[:, 0], a1[:, 1]).reshape(14 * tb, 168)
    p1 = jnp.maximum(
        jnp.maximum(mm(ya, sx1e_ref[...]), mm(ya, sx1o_ref[...])), 0.0)
    p1 = p1.reshape(14, tb, 84)                              # [14, TB, 14*6]

    # ---- conv2 (5x5, 6->16) --------------------------------------------------
    acc2 = mm(p1[0:10].reshape(10 * tb, 84), t2_ref[0])
    for i in range(1, 5):
        acc2 = acc2 + mm(p1[i:i + 10].reshape(10 * tb, 84), t2_ref[i])
    a2 = (acc2 + b2_ref[...]).reshape(5, 2, tb, 160)
    yb = jnp.maximum(a2[:, 0], a2[:, 1]).reshape(5 * tb, 160)
    p2 = jnp.maximum(
        jnp.maximum(mm(yb, sx2e_ref[...]), mm(yb, sx2o_ref[...])), 0.0)
    p2 = p2.reshape(5, tb, 80)                               # [5, TB, 5*16]

    # ---- fc1 + relu (NCHW flatten folded into wfc1) --------------------------
    acc = mm(p2[0], wfc1_ref[0])
    for py in range(1, 5):
        acc = acc + mm(p2[py], wfc1_ref[py])
    h1 = jnp.maximum(acc + bfc1_ref[...], 0.0)               # [TB, 120]
    # ---- fc2 + relu -----------------------------------------------------------
    h2 = jnp.maximum(mm(h1, wfc2_ref[...]) + bfc2_ref[...], 0.0)   # [TB, 84]
    # ---- fc3 (padded to 128 lanes) + masked log_softmax -----------------------
    logits = mm(h2, wfc3_ref[...]) + bfc3_ref[...]           # [TB, 128]
    lane = jax.lax.broadcasted_iota(jnp.int32, logits.shape, 1)
    logits = jnp.where(lane < _NUM_CLASSES, logits, -1e30)
    m = jnp.max(logits, axis=1, keepdims=True)
    s = logits - m
    lse = jnp.log(jnp.sum(jnp.exp(s), axis=1, keepdims=True))
    out_ref[...] = s - lse


# ------------------------- weight preparation (one-time) --------------------

def _toeplitz_conv_weight(w_oihw, w_in):
    """Torch conv weight [Cout,Cin,KH,KW] -> [KH, W_in*Cin, OW*Cout] so that
    sum_i  x_slab[oy+i, :] @ T[i]  equals the valid cross-correlation, with the
    output lane index laid out as ox*Cout + co."""
    cout, cin, kh, kw = w_oihw.shape
    ow = w_in - kw + 1
    eye = jnp.eye(ow, dtype=jnp.float32)
    mats = []
    for i in range(kh):
        ti = jnp.zeros((w_in * cin, ow * cout), jnp.float32)
        for j in range(kw):
            blk = jnp.kron(eye, w_oihw[:, :, i, j].astype(jnp.float32).T)
            ti = ti + jnp.pad(blk, ((j * cin, (w_in - ow - j) * cin), (0, 0)))
        mats.append(ti)
    return jnp.stack(mats)


def _lane_pool_selectors(n_in, c):
    """0/1 matrices implementing the width half of a 2x2 max-pool as max of two
    right-matmuls (lanes laid out as w*c + channel, compacted to pooled w)."""
    n_out = n_in // 2
    r = jnp.arange(n_out)
    se = jnp.zeros((n_out, n_in), jnp.float32).at[r, 2 * r].set(1.0)
    so = jnp.zeros((n_out, n_in), jnp.float32).at[r, 2 * r + 1].set(1.0)
    eye_c = jnp.eye(c, dtype=jnp.float32)
    return jnp.kron(se.T, eye_c), jnp.kron(so.T, eye_c)


def _prepare_operands(p):
    f32 = jnp.float32
    t1 = _toeplitz_conv_weight(p["conv1_w"], 32)                   # [5, 96, 168]
    t2 = _toeplitz_conv_weight(p["conv2_w"], 14)                   # [5, 84, 160]
    b1 = jnp.tile(p["conv1_b"].astype(f32), 28).reshape(1, -1)     # [1, 168]
    b2 = jnp.tile(p["conv2_b"].astype(f32), 10).reshape(1, -1)     # [1, 160]
    sx1e, sx1o = _lane_pool_selectors(28, 6)                       # [168, 84]
    sx2e, sx2o = _lane_pool_selectors(10, 16)                      # [160, 80]
    # fold torch's NCHW flatten (index = co*25 + py*5 + px) into the fc1 weight
    wfc1 = (p["fc1_w"].astype(f32).reshape(120, 16, 5, 5)
            .transpose(2, 3, 1, 0).reshape(5, 5 * 16, 120))        # [5, 80, 120]
    bfc1 = p["fc1_b"].astype(f32).reshape(1, -1)
    wfc2 = p["fc2_w"].astype(f32).T                                # [120, 84]
    bfc2 = p["fc2_b"].astype(f32).reshape(1, -1)
    wfc3 = jnp.zeros((84, _CLS_PAD), f32).at[:, :_NUM_CLASSES].set(
        p["fc3_w"].astype(f32).T)                                  # [84, 128]
    bfc3 = jnp.zeros((1, _CLS_PAD), f32).at[0, :_NUM_CLASSES].set(
        p["fc3_b"].astype(f32))
    return (t1, b1, sx1e, sx1o, t2, b2, sx2e, sx2o,
            wfc1, bfc1, wfc2, bfc2, wfc3, bfc3)


def _resident_spec(a):
    zeros = (0,) * a.ndim
    return pl.BlockSpec(a.shape, lambda g: zeros)   # constant block -> stays in VMEM


# ----------------------------- model / forward ------------------------------

def init_params(key):
    ks = jax.random.split(key, 10)

    def w(k, shape, fan_in):
        return jax.random.normal(k, shape, jnp.float32) / jnp.sqrt(fan_in)

    # PyTorch layouts: conv [Cout, Cin, KH, KW], linear [out, in]
    return {
        "conv1_w": w(ks[0], (6, 3, 5, 5), 75),
        "conv1_b": w(ks[1], (6,), 75),
        "conv2_w": w(ks[2], (16, 6, 5, 5), 150),
        "conv2_b": w(ks[3], (16,), 150),
        "fc1_w":   w(ks[4], (120, 400), 400),
        "fc1_b":   w(ks[5], (120,), 400),
        "fc2_w":   w(ks[6], (84, 120), 120),
        "fc2_b":   w(ks[7], (84,), 120),
        "fc3_w":   w(ks[8], (10, 84), 84),
        "fc3_b":   w(ks[9], (10,), 84),
    }


def cifar10_forward(x_nchw, params, *, batch_tile=8):
    B = x_nchw.shape[0]
    bt = max(8, -(-batch_tile // 8) * 8)         # tile must be a multiple of 8
    bp = -(-B // bt) * bt
    # NCHW -> [H, batch, W*C]: batch sits on the sublane axis so the in-kernel
    # (H-slice, batch) -> rows collapse is a free, tile-aligned reshape.
    x = jnp.transpose(x_nchw.astype(jnp.float32), (2, 0, 3, 1))    # [32, B, 32, 3]
    x = x.reshape(32, B, 96)
    if bp != B:
        x = jnp.pad(x, ((0, 0), (0, bp - B), (0, 0)))
    ops = _prepare_operands(params)

    out = pl.pallas_call(
        _fused_cnn_kernel,
        out_shape=jax.ShapeDtypeStruct((bp, _CLS_PAD), jnp.float32),
        grid=(bp // bt,),
        in_specs=[pl.BlockSpec((32, bt, 96), lambda g: (0, g, 0))]
                 + [_resident_spec(a) for a in ops],
        out_specs=pl.BlockSpec((bt, _CLS_PAD), lambda g: (g, 0)),
        compiler_params=pltpu.CompilerParams(
            dimension_semantics=("parallel",)),
    )(x, *ops)
    return out[:B, :_NUM_CLASSES]


# ----------------------- plain-JAX reference (for checking) -----------------

def _reference_forward(x, p):
    hp = jax.lax.Precision.HIGHEST
    y = jax.lax.conv_general_dilated(
        x, p["conv1_w"], (1, 1), "VALID",
        dimension_numbers=("NCHW", "OIHW", "NCHW"), precision=hp)
    y = jnp.maximum(y + p["conv1_b"][None, :, None, None], 0.0)
    y = jax.lax.reduce_window(y, -jnp.inf, jax.lax.max,
                              (1, 1, 2, 2), (1, 1, 2, 2), "VALID")
    y = jax.lax.conv_general_dilated(
        y, p["conv2_w"], (1, 1), "VALID",
        dimension_numbers=("NCHW", "OIHW", "NCHW"), precision=hp)
    y = jnp.maximum(y + p["conv2_b"][None, :, None, None], 0.0)
    y = jax.lax.reduce_window(y, -jnp.inf, jax.lax.max,
                              (1, 1, 2, 2), (1, 1, 2, 2), "VALID")
    y = y.reshape(y.shape[0], -1)
    y = jnp.maximum(jnp.dot(y, p["fc1_w"].T, precision=hp) + p["fc1_b"], 0.0)
    y = jnp.maximum(jnp.dot(y, p["fc2_w"].T, precision=hp) + p["fc2_b"], 0.0)
    y = jnp.dot(y, p["fc3_w"].T, precision=hp) + p["fc3_b"]
    return jax.nn.log_softmax(y, axis=-1)


if __name__ == "__main__":
    key = jax.random.PRNGKey(0)
    k_param, k_x = jax.random.split(key)
    params = init_params(k_param)
    # spatial size is fixed at 32x32 by fc1 expecting 16*5*5 features
    x = jax.random.normal(k_x, (16, 3, 32, 32), jnp.float32)

    out = jax.block_until_ready(jax.jit(cifar10_forward)(x, params))
    assert out.shape == (16, _NUM_CLASSES), out.shape

    # log_softmax rows must exponentiate-sum to 1
    row_sums = jnp.sum(jnp.exp(out), axis=1)
    assert bool(jnp.all(jnp.abs(row_sums - 1.0) < 1e-3)), row_sums

    # cross-check against a plain-JAX/XLA reference of the same forward pass
    ref = jax.jit(_reference_forward)(x, params)
    assert bool(jnp.allclose(out, ref, atol=1e-2, rtol=1e-2)), (
        float(jnp.max(jnp.abs(out - ref))))

    print("KERNEL_OK")
</pallas_src>

<mosaic_0001>
module attributes {stable_mosaic.version = 11 : i64} {
  func.func @_fused_cnn_kernel(%arg0: i32, %arg1: memref<32x8x96xf32, #tpu.memory_space<vmem>>, %arg2: memref<5x96x168xf32, #tpu.memory_space<vmem>>, %arg3: memref<1x168xf32, #tpu.memory_space<vmem>>, %arg4: memref<168x84xf32, #tpu.memory_space<vmem>>, %arg5: memref<168x84xf32, #tpu.memory_space<vmem>>, %arg6: memref<5x84x160xf32, #tpu.memory_space<vmem>>, %arg7: memref<1x160xf32, #tpu.memory_space<vmem>>, %arg8: memref<160x80xf32, #tpu.memory_space<vmem>>, %arg9: memref<160x80xf32, #tpu.memory_space<vmem>>, %arg10: memref<5x80x120xf32, #tpu.memory_space<vmem>>, %arg11: memref<1x120xf32, #tpu.memory_space<vmem>>, %arg12: memref<120x84xf32, #tpu.memory_space<vmem>>, %arg13: memref<1x84xf32, #tpu.memory_space<vmem>>, %arg14: memref<84x128xf32, #tpu.memory_space<vmem>>, %arg15: memref<1x128xf32, #tpu.memory_space<vmem>>, %arg16: memref<8x128xf32, #tpu.memory_space<vmem>>) attributes {dimension_semantics = [#tpu.dimension_semantics<parallel>], iteration_bounds = array<i64: 2>, scalar_prefetch = 0 : i64, scratch_operands = 0 : i64, tpu.core_type = #tpu.core_type<tc>, window_params = [{transform_indices = @transform_0, window_bounds = array<i64: 32, 8, 96>}, {pipeline_mode = #tpu.pipeline_mode<synchronous>, transform_indices = @transform_1, window_bounds = array<i64: 5, 96, 168>}, {pipeline_mode = #tpu.pipeline_mode<synchronous>, transform_indices = @transform_2, window_bounds = array<i64: 1, 168>}, {pipeline_mode = #tpu.pipeline_mode<synchronous>, transform_indices = @transform_3, window_bounds = array<i64: 168, 84>}, {pipeline_mode = #tpu.pipeline_mode<synchronous>, transform_indices = @transform_4, window_bounds = array<i64: 168, 84>}, {pipeline_mode = #tpu.pipeline_mode<synchronous>, transform_indices = @transform_5, window_bounds = array<i64: 5, 84, 160>}, {pipeline_mode = #tpu.pipeline_mode<synchronous>, transform_indices = @transform_6, window_bounds = array<i64: 1, 160>}, {pipeline_mode = #tpu.pipeline_mode<synchronous>, transform_indices = @transform_7, window_bounds = array<i64: 160, 80>}, {pipeline_mode = #tpu.pipeline_mode<synchronous>, transform_indices = @transform_8, window_bounds = array<i64: 160, 80>}, {pipeline_mode = #tpu.pipeline_mode<synchronous>, transform_indices = @transform_9, window_bounds = array<i64: 5, 80, 120>}, {pipeline_mode = #tpu.pipeline_mode<synchronous>, transform_indices = @transform_10, window_bounds = array<i64: 1, 120>}, {pipeline_mode = #tpu.pipeline_mode<synchronous>, transform_indices = @transform_11, window_bounds = array<i64: 120, 84>}, {pipeline_mode = #tpu.pipeline_mode<synchronous>, transform_indices = @transform_12, window_bounds = array<i64: 1, 84>}, {pipeline_mode = #tpu.pipeline_mode<synchronous>, transform_indices = @transform_13, window_bounds = array<i64: 84, 128>}, {pipeline_mode = #tpu.pipeline_mode<synchronous>, transform_indices = @transform_14, window_bounds = array<i64: 1, 128>}, {transform_indices = @transform_15, window_bounds = array<i64: 8, 128>}]} {
    %c0 = arith.constant 0 : index
    %c0_0 = arith.constant 0 : index
    %c0_1 = arith.constant 0 : index
    %0 = vector.load %arg1[%c0, %c0_0, %c0_1] : memref<32x8x96xf32, #tpu.memory_space<vmem>>, vector<28x8x96xf32>
    %1 = vector.shape_cast %0 : vector<28x8x96xf32> to vector<224x96xf32>
    %c0_2 = arith.constant 0 : index
    %c0_3 = arith.constant 0 : index
    %c0_4 = arith.constant 0 : index
    %2 = vector.load %arg2[%c0_2, %c0_3, %c0_4] : memref<5x96x168xf32, #tpu.memory_space<vmem>>, vector<1x96x168xf32>
    %3 = vector.shape_cast %2 : vector<1x96x168xf32> to vector<96x168xf32>
    %cst = arith.constant dense<0.000000e+00> : vector<224x168xf32>
    %4 = tpu.matmul %1, %3, %cst {dimension_numbers = #tpu.dot_dimension_numbers<[1], [0], [0], [1], [0, 0, 1, 1], [], []>} : vector<224x96xf32>, vector<96x168xf32>, vector<224x168xf32> -> vector<224x168xf32>
    %c1 = arith.constant 1 : index
    %c0_5 = arith.constant 0 : index
    %c0_6 = arith.constant 0 : index
    %5 = vector.load %arg1[%c1, %c0_5, %c0_6] : memref<32x8x96xf32, #tpu.memory_space<vmem>>, vector<28x8x96xf32>
    %6 = vector.shape_cast %5 : vector<28x8x96xf32> to vector<224x96xf32>
    %c1_7 = arith.constant 1 : index
    %c0_8 = arith.constant 0 : index
    %c0_9 = arith.constant 0 : index
    %7 = vector.load %arg2[%c1_7, %c0_8, %c0_9] : memref<5x96x168xf32, #tpu.memory_space<vmem>>, vector<1x96x168xf32>
    %8 = vector.shape_cast %7 : vector<1x96x168xf32> to vector<96x168xf32>
    %cst_10 = arith.constant dense<0.000000e+00> : vector<224x168xf32>
    %9 = tpu.matmul %6, %8, %cst_10 {dimension_numbers = #tpu.dot_dimension_numbers<[1], [0], [0], [1], [0, 0, 1, 1], [], []>} : vector<224x96xf32>, vector<96x168xf32>, vector<224x168xf32> -> vector<224x168xf32>
    %10 = arith.addf %4, %9 : vector<224x168xf32>
    %c2 = arith.constant 2 : index
    %c0_11 = arith.constant 0 : index
    %c0_12 = arith.constant 0 : index
    %11 = vector.load %arg1[%c2, %c0_11, %c0_12] : memref<32x8x96xf32, #tpu.memory_space<vmem>>, vector<28x8x96xf32>
    %12 = vector.shape_cast %11 : vector<28x8x96xf32> to vector<224x96xf32>
    %c2_13 = arith.constant 2 : index
    %c0_14 = arith.constant 0 : index
    %c0_15 = arith.constant 0 : index
    %13 = vector.load %arg2[%c2_13, %c0_14, %c0_15] : memref<5x96x168xf32, #tpu.memory_space<vmem>>, vector<1x96x168xf32>
    %14 = vector.shape_cast %13 : vector<1x96x168xf32> to vector<96x168xf32>
    %cst_16 = arith.constant dense<0.000000e+00> : vector<224x168xf32>
    %15 = tpu.matmul %12, %14, %cst_16 {dimension_numbers = #tpu.dot_dimension_numbers<[1], [0], [0], [1], [0, 0, 1, 1], [], []>} : vector<224x96xf32>, vector<96x168xf32>, vector<224x168xf32> -> vector<224x168xf32>
    %16 = arith.addf %10, %15 : vector<224x168xf32>
    %c3 = arith.constant 3 : index
    %c0_17 = arith.constant 0 : index
    %c0_18 = arith.constant 0 : index
    %17 = vector.load %arg1[%c3, %c0_17, %c0_18] : memref<32x8x96xf32, #tpu.memory_space<vmem>>, vector<28x8x96xf32>
    %18 = vector.shape_cast %17 : vector<28x8x96xf32> to vector<224x96xf32>
    %c3_19 = arith.constant 3 : index
    %c0_20 = arith.constant 0 : index
    %c0_21 = arith.constant 0 : index
    %19 = vector.load %arg2[%c3_19, %c0_20, %c0_21] : memref<5x96x168xf32, #tpu.memory_space<vmem>>, vector<1x96x168xf32>
    %20 = vector.shape_cast %19 : vector<1x96x168xf32> to vector<96x168xf32>
    %cst_22 = arith.constant dense<0.000000e+00> : vector<224x168xf32>
    %21 = tpu.matmul %18, %20, %cst_22 {dimension_numbers = #tpu.dot_dimension_numbers<[1], [0], [0], [1], [0, 0, 1, 1], [], []>} : vector<224x96xf32>, vector<96x168xf32>, vector<224x168xf32> -> vector<224x168xf32>
    %22 = arith.addf %16, %21 : vector<224x168xf32>
    %c4 = arith.constant 4 : index
    %c0_23 = arith.constant 0 : index
    %c0_24 = arith.constant 0 : index
    %23 = vector.load %arg1[%c4, %c0_23, %c0_24] : memref<32x8x96xf32, #tpu.memory_space<vmem>>, vector<28x8x96xf32>
    %24 = vector.shape_cast %23 : vector<28x8x96xf32> to vector<224x96xf32>
    %c4_25 = arith.constant 4 : index
    %c0_26 = arith.constant 0 : index
    %c0_27 = arith.constant 0 : index
    %25 = vector.load %arg2[%c4_25, %c0_26, %c0_27] : memref<5x96x168xf32, #tpu.memory_space<vmem>>, vector<1x96x168xf32>
    %26 = vector.shape_cast %25 : vector<1x96x168xf32> to vector<96x168xf32>
    %cst_28 = arith.constant dense<0.000000e+00> : vector<224x168xf32>
    %27 = tpu.matmul %24, %26, %cst_28 {dimension_numbers = #tpu.dot_dimension_numbers<[1], [0], [0], [1], [0, 0, 1, 1], [], []>} : vector<224x96xf32>, vector<96x168xf32>, vector<224x168xf32> -> vector<224x168xf32>
    %28 = arith.addf %22, %27 : vector<224x168xf32>
    %c0_29 = arith.constant 0 : index
    %c0_30 = arith.constant 0 : index
    %29 = vector.load %arg3[%c0_29, %c0_30] : memref<1x168xf32, #tpu.memory_space<vmem>>, vector<1x168xf32>
    %30 = vector.broadcast %29 : vector<1x168xf32> to vector<224x168xf32>
    %31 = arith.addf %28, %30 : vector<224x168xf32>
    %32 = vector.shape_cast %31 : vector<224x168xf32> to vector<14x2x8x168xf32>
    %33 = vector.extract_strided_slice %32 {offsets = [0, 0, 0, 0], sizes = [14, 1, 8, 168], strides = [1, 1, 1, 1]} : vector<14x2x8x168xf32> to vector<14x1x8x168xf32>
    %34 = vector.shape_cast %33 : vector<14x1x8x168xf32> to vector<14x8x168xf32>
    %35 = vector.extract_strided_slice %32 {offsets = [0, 1, 0, 0], sizes = [14, 1, 8, 168], strides = [1, 1, 1, 1]} : vector<14x2x8x168xf32> to vector<14x1x8x168xf32>
    %36 = vector.shape_cast %35 : vector<14x1x8x168xf32> to vector<14x8x168xf32>
    %37 = arith.maximumf %34, %36 : vector<14x8x168xf32>
    %38 = vector.shape_cast %37 : vector<14x8x168xf32> to vector<112x168xf32>
    %c0_31 = arith.constant 0 : index
    %c0_32 = arith.constant 0 : index
    %39 = vector.load %arg4[%c0_31, %c0_32] : memref<168x84xf32, #tpu.memory_space<vmem>>, vector<168x84xf32>
    %cst_33 = arith.constant dense<0.000000e+00> : vector<112x84xf32>
    %40 = tpu.matmul %38, %39, %cst_33 {dimension_numbers = #tpu.dot_dimension_numbers<[1], [0], [0], [1], [0, 0, 1, 1], [], []>} : vector<112x168xf32>, vector<168x84xf32>, vector<112x84xf32> -> vector<112x84xf32>
    %c0_34 = arith.constant 0 : index
    %c0_35 = arith.constant 0 : index
    %41 = vector.load %arg5[%c0_34, %c0_35] : memref<168x84xf32, #tpu.memory_space<vmem>>, vector<168x84xf32>
    %cst_36 = arith.constant dense<0.000000e+00> : vector<112x84xf32>
    %42 = tpu.matmul %38, %41, %cst_36 {dimension_numbers = #tpu.dot_dimension_numbers<[1], [0], [0], [1], [0, 0, 1, 1], [], []>} : vector<112x168xf32>, vector<168x84xf32>, vector<112x84xf32> -> vector<112x84xf32>
    %43 = arith.maximumf %40, %42 : vector<112x84xf32>
    %cst_37 = arith.constant 0.000000e+00 : f32
    %44 = vector.broadcast %cst_37 : f32 to vector<112x84xf32>
    %45 = arith.maximumf %43, %44 : vector<112x84xf32>
    %46 = vector.shape_cast %45 : vector<112x84xf32> to vector<14x8x84xf32>
    %47 = vector.extract_strided_slice %46 {offsets = [0, 0, 0], sizes = [10, 8, 84], strides = [1, 1, 1]} : vector<14x8x84xf32> to vector<10x8x84xf32>
    %48 = vector.shape_cast %47 : vector<10x8x84xf32> to vector<80x84xf32>
    %c0_38 = arith.constant 0 : index
    %c0_39 = arith.constant 0 : index
    %c0_40 = arith.constant 0 : index
    %49 = vector.load %arg6[%c0_38, %c0_39, %c0_40] : memref<5x84x160xf32, #tpu.memory_space<vmem>>, vector<1x84x160xf32>
    %50 = vector.shape_cast %49 : vector<1x84x160xf32> to vector<84x160xf32>
    %cst_41 = arith.constant dense<0.000000e+00> : vector<80x160xf32>
    %51 = tpu.matmul %48, %50, %cst_41 {dimension_numbers = #tpu.dot_dimension_numbers<[1], [0], [0], [1], [0, 0, 1, 1], [], []>} : vector<80x84xf32>, vector<84x160xf32>, vector<80x160xf32> -> vector<80x160xf32>
    %52 = vector.extract_strided_slice %46 {offsets = [1, 0, 0], sizes = [10, 8, 84], strides = [1, 1, 1]} : vector<14x8x84xf32> to vector<10x8x84xf32>
    %53 = vector.shape_cast %52 : vector<10x8x84xf32> to vector<80x84xf32>
    %c1_42 = arith.constant 1 : index
    %c0_43 = arith.constant 0 : index
    %c0_44 = arith.constant 0 : index
    %54 = vector.load %arg6[%c1_42, %c0_43, %c0_44] : memref<5x84x160xf32, #tpu.memory_space<vmem>>, vector<1x84x160xf32>
    %55 = vector.shape_cast %54 : vector<1x84x160xf32> to vector<84x160xf32>
    %cst_45 = arith.constant dense<0.000000e+00> : vector<80x160xf32>
    %56 = tpu.matmul %53, %55, %cst_45 {dimension_numbers = #tpu.dot_dimension_numbers<[1], [0], [0], [1], [0, 0, 1, 1], [], []>} : vector<80x84xf32>, vector<84x160xf32>, vector<80x160xf32> -> vector<80x160xf32>
    %57 = arith.addf %51, %56 : vector<80x160xf32>
    %58 = vector.extract_strided_slice %46 {offsets = [2, 0, 0], sizes = [10, 8, 84], strides = [1, 1, 1]} : vector<14x8x84xf32> to vector<10x8x84xf32>
    %59 = vector.shape_cast %58 : vector<10x8x84xf32> to vector<80x84xf32>
    %c2_46 = arith.constant 2 : index
    %c0_47 = arith.constant 0 : index
    %c0_48 = arith.constant 0 : index
    %60 = vector.load %arg6[%c2_46, %c0_47, %c0_48] : memref<5x84x160xf32, #tpu.memory_space<vmem>>, vector<1x84x160xf32>
    %61 = vector.shape_cast %60 : vector<1x84x160xf32> to vector<84x160xf32>
    %cst_49 = arith.constant dense<0.000000e+00> : vector<80x160xf32>
    %62 = tpu.matmul %59, %61, %cst_49 {dimension_numbers = #tpu.dot_dimension_numbers<[1], [0], [0], [1], [0, 0, 1, 1], [], []>} : vector<80x84xf32>, vector<84x160xf32>, vector<80x160xf32> -> vector<80x160xf32>
    %63 = arith.addf %57, %62 : vector<80x160xf32>
    %64 = vector.extract_strided_slice %46 {offsets = [3, 0, 0], sizes = [10, 8, 84], strides = [1, 1, 1]} : vector<14x8x84xf32> to vector<10x8x84xf32>
    %65 = vector.shape_cast %64 : vector<10x8x84xf32> to vector<80x84xf32>
    %c3_50 = arith.constant 3 : index
    %c0_51 = arith.constant 0 : index
    %c0_52 = arith.constant 0 : index
    %66 = vector.load %arg6[%c3_50, %c0_51, %c0_52] : memref<5x84x160xf32, #tpu.memory_space<vmem>>, vector<1x84x160xf32>
    %67 = vector.shape_cast %66 : vector<1x84x160xf32> to vector<84x160xf32>
    %cst_53 = arith.constant dense<0.000000e+00> : vector<80x160xf32>
    %68 = tpu.matmul %65, %67, %cst_53 {dimension_numbers = #tpu.dot_dimension_numbers<[1], [0], [0], [1], [0, 0, 1, 1], [], []>} : vector<80x84xf32>, vector<84x160xf32>, vector<80x160xf32> -> vector<80x160xf32>
    %69 = arith.addf %63, %68 : vector<80x160xf32>
    %70 = vector.extract_strided_slice %46 {offsets = [4, 0, 0], sizes = [10, 8, 84], strides = [1, 1, 1]} : vector<14x8x84xf32> to vector<10x8x84xf32>
    %71 = vector.shape_cast %70 : vector<10x8x84xf32> to vector<80x84xf32>
    %c4_54 = arith.constant 4 : index
    %c0_55 = arith.constant 0 : index
    %c0_56 = arith.constant 0 : index
    %72 = vector.load %arg6[%c4_54, %c0_55, %c0_56] : memref<5x84x160xf32, #tpu.memory_space<vmem>>, vector<1x84x160xf32>
    %73 = vector.shape_cast %72 : vector<1x84x160xf32> to vector<84x160xf32>
    %cst_57 = arith.constant dense<0.000000e+00> : vector<80x160xf32>
    %74 = tpu.matmul %71, %73, %cst_57 {dimension_numbers = #tpu.dot_dimension_numbers<[1], [0], [0], [1], [0, 0, 1, 1], [], []>} : vector<80x84xf32>, vector<84x160xf32>, vector<80x160xf32> -> vector<80x160xf32>
    %75 = arith.addf %69, %74 : vector<80x160xf32>
    %c0_58 = arith.constant 0 : index
    %c0_59 = arith.constant 0 : index
    %76 = vector.load %arg7[%c0_58, %c0_59] : memref<1x160xf32, #tpu.memory_space<vmem>>, vector<1x160xf32>
    %77 = vector.broadcast %76 : vector<1x160xf32> to vector<80x160xf32>
    %78 = arith.addf %75, %77 : vector<80x160xf32>
    %79 = vector.shape_cast %78 : vector<80x160xf32> to vector<5x2x8x160xf32>
    %80 = vector.extract_strided_slice %79 {offsets = [0, 0, 0, 0], sizes = [5, 1, 8, 160], strides = [1, 1, 1, 1]} : vector<5x2x8x160xf32> to vector<5x1x8x160xf32>
    %81 = vector.shape_cast %80 : vector<5x1x8x160xf32> to vector<5x8x160xf32>
    %82 = vector.extract_strided_slice %79 {offsets = [0, 1, 0, 0], sizes = [5, 1, 8, 160], strides = [1, 1, 1, 1]} : vector<5x2x8x160xf32> to vector<5x1x8x160xf32>
    %83 = vector.shape_cast %82 : vector<5x1x8x160xf32> to vector<5x8x160xf32>
    %84 = arith.maximumf %81, %83 : vector<5x8x160xf32>
    %85 = vector.shape_cast %84 : vector<5x8x160xf32> to vector<40x160xf32>
    %c0_60 = arith.constant 0 : index
    %c0_61 = arith.constant 0 : index
    %86 = vector.load %arg8[%c0_60, %c0_61] : memref<160x80xf32, #tpu.memory_space<vmem>>, vector<160x80xf32>
    %cst_62 = arith.constant dense<0.000000e+00> : vector<40x80xf32>
    %87 = tpu.matmul %85, %86, %cst_62 {dimension_numbers = #tpu.dot_dimension_numbers<[1], [0], [0], [1], [0, 0, 1, 1], [], []>} : vector<40x160xf32>, vector<160x80xf32>, vector<40x80xf32> -> vector<40x80xf32>
    %c0_63 = arith.constant 0 : index
    %c0_64 = arith.constant 0 : index
    %88 = vector.load %arg9[%c0_63, %c0_64] : memref<160x80xf32, #tpu.memory_space<vmem>>, vector<160x80xf32>
    %cst_65 = arith.constant dense<0.000000e+00> : vector<40x80xf32>
    %89 = tpu.matmul %85, %88, %cst_65 {dimension_numbers = #tpu.dot_dimension_numbers<[1], [0], [0], [1], [0, 0, 1, 1], [], []>} : vector<40x160xf32>, vector<160x80xf32>, vector<40x80xf32> -> vector<40x80xf32>
    %90 = arith.maximumf %87, %89 : vector<40x80xf32>
    %cst_66 = arith.constant 0.000000e+00 : f32
    %91 = vector.broadcast %cst_66 : f32 to vector<40x80xf32>
    %92 = arith.maximumf %90, %91 : vector<40x80xf32>
    %93 = vector.shape_cast %92 : vector<40x80xf32> to vector<5x8x80xf32>
    %94 = vector.extract_strided_slice %93 {offsets = [0, 0, 0], sizes = [1, 8, 80], strides = [1, 1, 1]} : vector<5x8x80xf32> to vector<1x8x80xf32>
    %95 = vector.shape_cast %94 : vector<1x8x80xf32> to vector<8x80xf32>
    %c0_67 = arith.constant 0 : index
    %c0_68 = arith.constant 0 : index
    %c0_69 = arith.constant 0 : index
    %96 = vector.load %arg10[%c0_67, %c0_68, %c0_69] : memref<5x80x120xf32, #tpu.memory_space<vmem>>, vector<1x80x120xf32>
    %97 = vector.shape_cast %96 : vector<1x80x120xf32> to vector<80x120xf32>
    %cst_70 = arith.constant dense<0.000000e+00> : vector<8x120xf32>
    %98 = tpu.matmul %95, %97, %cst_70 {dimension_numbers = #tpu.dot_dimension_numbers<[1], [0], [0], [1], [0, 0, 1, 1], [], []>} : vector<8x80xf32>, vector<80x120xf32>, vector<8x120xf32> -> vector<8x120xf32>
    %99 = vector.extract_strided_slice %93 {offsets = [1, 0, 0], sizes = [1, 8, 80], strides = [1, 1, 1]} : vector<5x8x80xf32> to vector<1x8x80xf32>
    %100 = vector.shape_cast %99 : vector<1x8x80xf32> to vector<8x80xf32>
    %c1_71 = arith.constant 1 : index
    %c0_72 = arith.constant 0 : index
    %c0_73 = arith.constant 0 : index
    %101 = vector.load %arg10[%c1_71, %c0_72, %c0_73] : memref<5x80x120xf32, #tpu.memory_space<vmem>>, vector<1x80x120xf32>
    %102 = vector.shape_cast %101 : vector<1x80x120xf32> to vector<80x120xf32>
    %cst_74 = arith.constant dense<0.000000e+00> : vector<8x120xf32>
    %103 = tpu.matmul %100, %102, %cst_74 {dimension_numbers = #tpu.dot_dimension_numbers<[1], [0], [0], [1], [0, 0, 1, 1], [], []>} : vector<8x80xf32>, vector<80x120xf32>, vector<8x120xf32> -> vector<8x120xf32>
    %104 = arith.addf %98, %103 : vector<8x120xf32>
    %105 = vector.extract_strided_slice %93 {offsets = [2, 0, 0], sizes = [1, 8, 80], strides = [1, 1, 1]} : vector<5x8x80xf32> to vector<1x8x80xf32>
    %106 = vector.shape_cast %105 : vector<1x8x80xf32> to vector<8x80xf32>
    %c2_75 = arith.constant 2 : index
    %c0_76 = arith.constant 0 : index
    %c0_77 = arith.constant 0 : index
    %107 = vector.load %arg10[%c2_75, %c0_76, %c0_77] : memref<5x80x120xf32, #tpu.memory_space<vmem>>, vector<1x80x120xf32>
    %108 = vector.shape_cast %107 : vector<1x80x120xf32> to vector<80x120xf32>
    %cst_78 = arith.constant dense<0.000000e+00> : vector<8x120xf32>
    %109 = tpu.matmul %106, %108, %cst_78 {dimension_numbers = #tpu.dot_dimension_numbers<[1], [0], [0], [1], [0, 0, 1, 1], [], []>} : vector<8x80xf32>, vector<80x120xf32>, vector<8x120xf32> -> vector<8x120xf32>
    %110 = arith.addf %104, %109 : vector<8x120xf32>
    %111 = vector.extract_strided_slice %93 {offsets = [3, 0, 0], sizes = [1, 8, 80], strides = [1, 1, 1]} : vector<5x8x80xf32> to vector<1x8x80xf32>
    %112 = vector.shape_cast %111 : vector<1x8x80xf32> to vector<8x80xf32>
    %c3_79 = arith.constant 3 : index
    %c0_80 = arith.constant 0 : index
    %c0_81 = arith.constant 0 : index
    %113 = vector.load %arg10[%c3_79, %c0_80, %c0_81] : memref<5x80x120xf32, #tpu.memory_space<vmem>>, vector<1x80x120xf32>
    %114 = vector.shape_cast %113 : vector<1x80x120xf32> to vector<80x120xf32>
    %cst_82 = arith.constant dense<0.000000e+00> : vector<8x120xf32>
    %115 = tpu.matmul %112, %114, %cst_82 {dimension_numbers = #tpu.dot_dimension_numbers<[1], [0], [0], [1], [0, 0, 1, 1], [], []>} : vector<8x80xf32>, vector<80x120xf32>, vector<8x120xf32> -> vector<8x120xf32>
    %116 = arith.addf %110, %115 : vector<8x120xf32>
    %117 = vector.extract_strided_slice %93 {offsets = [4, 0, 0], sizes = [1, 8, 80], strides = [1, 1, 1]} : vector<5x8x80xf32> to vector<1x8x80xf32>
    %118 = vector.shape_cast %117 : vector<1x8x80xf32> to vector<8x80xf32>
    %c4_83 = arith.constant 4 : index
    %c0_84 = arith.constant 0 : index
    %c0_85 = arith.constant 0 : index
    %119 = vector.load %arg10[%c4_83, %c0_84, %c0_85] : memref<5x80x120xf32, #tpu.memory_space<vmem>>, vector<1x80x120xf32>
    %120 = vector.shape_cast %119 : vector<1x80x120xf32> to vector<80x120xf32>
    %cst_86 = arith.constant dense<0.000000e+00> : vector<8x120xf32>
    %121 = tpu.matmul %118, %120, %cst_86 {dimension_numbers = #tpu.dot_dimension_numbers<[1], [0], [0], [1], [0, 0, 1, 1], [], []>} : vector<8x80xf32>, vector<80x120xf32>, vector<8x120xf32> -> vector<8x120xf32>
    %122 = arith.addf %116, %121 : vector<8x120xf32>
    %c0_87 = arith.constant 0 : index
    %c0_88 = arith.constant 0 : index
    %123 = vector.load %arg11[%c0_87, %c0_88] : memref<1x120xf32, #tpu.memory_space<vmem>>, vector<1x120xf32>
    %124 = vector.broadcast %123 : vector<1x120xf32> to vector<8x120xf32>
    %125 = arith.addf %122, %124 : vector<8x120xf32>
    %cst_89 = arith.constant 0.000000e+00 : f32
    %126 = vector.broadcast %cst_89 : f32 to vector<8x120xf32>
    %127 = arith.maximumf %125, %126 : vector<8x120xf32>
    %c0_90 = arith.constant 0 : index
    %c0_91 = arith.constant 0 : index
    %128 = vector.load %arg12[%c0_90, %c0_91] : memref<120x84xf32, #tpu.memory_space<vmem>>, vector<120x84xf32>
    %cst_92 = arith.constant dense<0.000000e+00> : vector<8x84xf32>
    %129 = tpu.matmul %127, %128, %cst_92 {dimension_numbers = #tpu.dot_dimension_numbers<[1], [0], [0], [1], [0, 0, 1, 1], [], []>} : vector<8x120xf32>, vector<120x84xf32>, vector<8x84xf32> -> vector<8x84xf32>
    %c0_93 = arith.constant 0 : index
    %c0_94 = arith.constant 0 : index
    %130 = vector.load %arg13[%c0_93, %c0_94] : memref<1x84xf32, #tpu.memory_space<vmem>>, vector<1x84xf32>
    %131 = vector.broadcast %130 : vector<1x84xf32> to vector<8x84xf32>
    %132 = arith.addf %129, %131 : vector<8x84xf32>
    %cst_95 = arith.constant 0.000000e+00 : f32
    %133 = vector.broadcast %cst_95 : f32 to vector<8x84xf32>
    %134 = arith.maximumf %132, %133 : vector<8x84xf32>
    %c0_96 = arith.constant 0 : index
    %c0_97 = arith.constant 0 : index
    %135 = vector.load %arg14[%c0_96, %c0_97] : memref<84x128xf32, #tpu.memory_space<vmem>>, vector<84x128xf32>
    %cst_98 = arith.constant dense<0.000000e+00> : vector<8x128xf32>
    %136 = tpu.matmul %134, %135, %cst_98 {dimension_numbers = #tpu.dot_dimension_numbers<[1], [0], [0], [1], [0, 0, 1, 1], [], []>} : vector<8x84xf32>, vector<84x128xf32>, vector<8x128xf32> -> vector<8x128xf32>
    %c0_99 = arith.constant 0 : index
    %c0_100 = arith.constant 0 : index
    %137 = vector.load %arg15[%c0_99, %c0_100] : memref<1x128xf32, #tpu.memory_space<vmem>>, vector<1x128xf32>
    %138 = vector.broadcast %137 : vector<1x128xf32> to vector<8x128xf32>
    %139 = arith.addf %136, %138 : vector<8x128xf32>
    %140 = tpu.iota {dimensions = array<i32: 1>} : vector<8x128xi32>
    %c10_i32 = arith.constant 10 : i32
    %141 = vector.broadcast %c10_i32 : i32 to vector<8x128xi32>
    %142 = arith.cmpi slt, %140, %141 : vector<8x128xi32>
    %cst_101 = arith.constant -1.000000e+30 : f32
    %143 = vector.broadcast %cst_101 : f32 to vector<8x128xf32>
    %144 = arith.select %142, %139, %143 : vector<8x128xi1>, vector<8x128xf32>
    %cst_102 = arith.constant dense<0xFF800000> : vector<8xf32>
    %145 = vector.multi_reduction <maximumf>, %144, %cst_102 [1] : vector<8x128xf32> to vector<8xf32>
    %146 = vector.shape_cast %145 : vector<8xf32> to vector<8x1xf32>
    %147 = vector.broadcast %146 : vector<8x1xf32> to vector<8x128xf32>
    %148 = arith.subf %144, %147 : vector<8x128xf32>
    %149 = math.exp %148 : vector<8x128xf32>
    %cst_103 = arith.constant dense<0.000000e+00> : vector<8xf32>
    %150 = vector.multi_reduction <add>, %149, %cst_103 [1] : vector<8x128xf32> to vector<8xf32>
    %151 = vector.shape_cast %150 : vector<8xf32> to vector<8x1xf32>
    %152 = math.log %151 : vector<8x1xf32>
    %153 = vector.broadcast %152 : vector<8x1xf32> to vector<8x128xf32>
    %154 = arith.subf %148, %153 : vector<8x128xf32>
    %c0_104 = arith.constant 0 : index
    %c0_105 = arith.constant 0 : index
    %155 = vector.load %arg16[%c0_104, %c0_105] : memref<8x128xf32, #tpu.memory_space<vmem>>, vector<8x128xf32>
    tpu.vector_store %arg16[%c0_104, %c0_105], %154 {strides = array<i32>} : memref<8x128xf32, #tpu.memory_space<vmem>>, vector<8x128xf32>,
    return
  }
  func.func @transform_0(%arg0: i32) -> (i32, i32, i32) {
    %c0_i32 = arith.constant 0 : i32
    %c0_i32_0 = arith.constant 0 : i32
    %c0_i32_1 = arith.constant 0 : i32
    return %c0_i32, %arg0, %c0_i32_0 : i32, i32, i32
  }
  func.func @transform_1(%arg0: i32) -> (i32, i32, i32) {
    %c0_i32 = arith.constant 0 : i32
    %c0_i32_0 = arith.constant 0 : i32
    %c0_i32_1 = arith.constant 0 : i32
    %c0_i32_2 = arith.constant 0 : i32
    return %c0_i32, %c0_i32_0, %c0_i32_1 : i32, i32, i32
  }
  func.func @transform_2(%arg0: i32) -> (i32, i32) {
    %c0_i32 = arith.constant 0 : i32
    %c0_i32_0 = arith.constant 0 : i32
    %c0_i32_1 = arith.constant 0 : i32
    return %c0_i32, %c0_i32_0 : i32, i32
  }
  func.func @transform_3(%arg0: i32) -> (i32, i32) {
    %c0_i32 = arith.constant 0 : i32
    %c0_i32_0 = arith.constant 0 : i32
    %c0_i32_1 = arith.constant 0 : i32
    return %c0_i32, %c0_i32_0 : i32, i32
  }
  func.func @transform_4(%arg0: i32) -> (i32, i32) {
    %c0_i32 = arith.constant 0 : i32
    %c0_i32_0 = arith.constant 0 : i32
    %c0_i32_1 = arith.constant 0 : i32
    return %c0_i32, %c0_i32_0 : i32, i32
  }
  func.func @transform_5(%arg0: i32) -> (i32, i32, i32) {
    %c0_i32 = arith.constant 0 : i32
    %c0_i32_0 = arith.constant 0 : i32
    %c0_i32_1 = arith.constant 0 : i32
    %c0_i32_2 = arith.constant 0 : i32
    return %c0_i32, %c0_i32_0, %c0_i32_1 : i32, i32, i32
  }
  func.func @transform_6(%arg0: i32) -> (i32, i32) {
    %c0_i32 = arith.constant 0 : i32
    %c0_i32_0 = arith.constant 0 : i32
    %c0_i32_1 = arith.constant 0 : i32
    return %c0_i32, %c0_i32_0 : i32, i32
  }
  func.func @transform_7(%arg0: i32) -> (i32, i32) {
    %c0_i32 = arith.constant 0 : i32
    %c0_i32_0 = arith.constant 0 : i32
    %c0_i32_1 = arith.constant 0 : i32
    return %c0_i32, %c0_i32_0 : i32, i32
  }
  func.func @transform_8(%arg0: i32) -> (i32, i32) {
    %c0_i32 = arith.constant 0 : i32
    %c0_i32_0 = arith.constant 0 : i32
    %c0_i32_1 = arith.constant 0 : i32
    return %c0_i32, %c0_i32_0 : i32, i32
  }
  func.func @transform_9(%arg0: i32) -> (i32, i32, i32) {
    %c0_i32 = arith.constant 0 : i32
    %c0_i32_0 = arith.constant 0 : i32
    %c0_i32_1 = arith.constant 0 : i32
    %c0_i32_2 = arith.constant 0 : i32
    return %c0_i32, %c0_i32_0, %c0_i32_1 : i32, i32, i32
  }
  func.func @transform_10(%arg0: i32) -> (i32, i32) {
    %c0_i32 = arith.constant 0 : i32
    %c0_i32_0 = arith.constant 0 : i32
    %c0_i32_1 = arith.constant 0 : i32
    return %c0_i32, %c0_i32_0 : i32, i32
  }
  func.func @transform_11(%arg0: i32) -> (i32, i32) {
    %c0_i32 = arith.constant 0 : i32
    %c0_i32_0 = arith.constant 0 : i32
    %c0_i32_1 = arith.constant 0 : i32
    return %c0_i32, %c0_i32_0 : i32, i32
  }
  func.func @transform_12(%arg0: i32) -> (i32, i32) {
    %c0_i32 = arith.constant 0 : i32
    %c0_i32_0 = arith.constant 0 : i32
    %c0_i32_1 = arith.constant 0 : i32
    return %c0_i32, %c0_i32_0 : i32, i32
  }
  func.func @transform_13(%arg0: i32) -> (i32, i32) {
    %c0_i32 = arith.constant 0 : i32
    %c0_i32_0 = arith.constant 0 : i32
    %c0_i32_1 = arith.constant 0 : i32
    return %c0_i32, %c0_i32_0 : i32, i32
  }
  func.func @transform_14(%arg0: i32) -> (i32, i32) {
    %c0_i32 = arith.constant 0 : i32
    %c0_i32_0 = arith.constant 0 : i32
    %c0_i32_1 = arith.constant 0 : i32
    return %c0_i32, %c0_i32_0 : i32, i32
  }
  func.func @transform_15(%arg0: i32) -> (i32, i32) {
    %c0_i32 = arith.constant 0 : i32
    %c0_i32_0 = arith.constant 0 : i32
    return %arg0, %c0_i32 : i32, i32
  }
}

</mosaic_0001>

<bundles_post_ra>
// kernel: tile.13
= control target key start
LH: loop header
LB: loop body
LE: loop exit
PB: predicated region body
PF: predicated region fallthrough
CT: control target
= control target key end

     0   :  { %s40_s0 = inlined_call_operand.vmem [shape: f32[6], index: 0, kind: input, shape index: {}]   ;;  %s41_s1 = inlined_call_operand.vmem [shape: f32[28,6], index: 1, kind: output, shape index: {}]  }
   0x1   :  { %v4_v0 = vld [vmem:[%s40_s0] ss:$0 sm:$0xff] }
   0x2   :  { %5 = vst [vmem:[%s41_s1] sm:$0xff] %v4_v0  ;;  %12 = vst [vmem:[%s41_s1 + $0x8] sm:$0xff] %v4_v0 }
   0x3   :  { %13 = vst [vmem:[%s41_s1 + $0x10] sm:$0xff] %v4_v0  ;;  %14 = vst [vmem:[%s41_s1 + $0x18] sm:$0xff] %v4_v0 }

// kernel: tile.14
= control target key start
LH: loop header
LB: loop body
LE: loop exit
PB: predicated region body
PF: predicated region fallthrough
CT: control target
= control target key end

     0   :  { %vm9_vm0 = vcmask 15360   ;;  %s247_s12 = smov 126   ;;  %s248_s13 = smov 114   ;;  %vm3_vm1 = vcmask 48128   ;;  %vm13_vm2 = vcmask 31744   ;;  %vm16_vm3 = vcmask 1048560   ;;  %s377_s0 = inlined_call_operand.vmem [shape: f32[28,6], index: 0, kind: input, shape index: {}]   ;;  %s378_s1 = inlined_call_operand.vmem [shape: f32[1,168], index: 1, kind: output, shape index: {}]  }
   0x1   :  { %v191_v0 = vld [vmem:[%s377_s0 + $0x15] sm:$0x1]   ;;  %v194_v3 = vld [vmem:[%s377_s0 + $0x13] sm:$0x1]   ;;  %v193_v4 = vld [vmem:[%s377_s0 + $0x14] sm:$0x1]  }
   0x2   :  { %v192_v1 = vld [vmem:[%s377_s0 + $0x15] sm:$0x1]   ;;  %26 = vrot.lane.b32.xlu1 %v194_v3, %s248_s13  ;;  %v195_v5 = vld [vmem:[%s377_s0 + $0x12] sm:$0x1]   ;;  %s249_s18 = smov 120   ;;  %s250_s19 = smov 108  }
   0x3   :  { %v10_v2 = vsel %vm9_vm0, %v192_v1, %v191_v0  ;;  %v196_v6 = vld [vmem:[%s377_s0 + $0x11] sm:$0x1]   ;;  %v197_v7 = vld [vmem:[%s377_s0 + $0x10] sm:$0x1]   ;;  %s251_s24 = smov 102   ;;  %s252_s25 = smov 96  }
   0x4   :  { %11 = vrot.lane.b32.xlu0 %v10_v2, %s247_s12  ;;  %v198_v8 = vld [vmem:[%s377_s0 + $0xf] sm:$0x1]   ;;  %v199_v9 = vld [vmem:[%s377_s0 + $0xe] sm:$0x1]   ;;  %s253_s30 = smov 90   ;;  %s254_s2 = smov 84  }
   0x5   :  { %v2_v10 = vld [vmem:[%s377_s0] sm:$0x1]   ;;  %v200_v11 = vld [vmem:[%s377_s0 + $0xd] sm:$0x1]   ;;  %v201_v12 = vld [vmem:[%s377_s0 + $0xc] sm:$0x1]  }
   0x6   :  { %32 = vrot.lane.b32.xlu1 %v195_v5, %s250_s19  ;;  %4 = vst.msk [vmem:[#allocation0] sm:$0x1] %vm3_vm1, %v2_v10   ;;  %s255_s9 = smov 78   ;;  %s256_s10 = smov 72   ;;  %v202_v13 = vld [vmem:[%s377_s0 + $0xb] sm:$0x1]  }
   0x7   :  { %v203_v14 = vld [vmem:[%s377_s0 + $0xa] sm:$0x1]   ;;  %s257_s15 = smov 66   ;;  %s258_s16 = smov 60   ;;  %v204_v15 = vld [vmem:[%s377_s0 + $0x9] sm:$0x1]  }
   0x8   :  { %20 = vrot.lane.b32.xlu0 %v193_v4, %s249_s18  ;;  %v205_v16 = vld [vmem:[%s377_s0 + $0x8] sm:$0x1]   ;;  %s259_s21 = smov 54   ;;  %s260_s22 = smov 48   ;;  %v206_v17 = vld [vmem:[%s377_s0 + $0x7] sm:$0x1]  }
   0x9   :  { %v207_v18 = vld [vmem:[%s377_s0 + $0x6] sm:$0x1]   ;;  %s261_s27 = smov 42   ;;  %s262_s28 = smov 36   ;;  %v208_v19 = vld [vmem:[%s377_s0 + $0x1b] sm:$0x1]  }
   0xa   :  { %44 = vrot.lane.b32.xlu1 %v197_v7, %s252_s25  ;;  %v209_v20 = vld [vmem:[%s377_s0 + $0x5] sm:$0x1]   ;;  %s263_s4 = smov 34   ;;  %s264_s5 = smov 30   ;;  %v210_v21 = vld [vmem:[%s377_s0 + $0x1a] sm:$0x1]  }
   0xb   :  { %v211_v22 = vld [vmem:[%s377_s0 + $0x4] sm:$0x1]   ;;  %s266_s11 = smov 24   ;;  %v212_v23 = vld [vmem:[%s377_s0 + $0x19] sm:$0x1]   ;;  %s268_s17 = smov 18  }
   0xc   :  { %38 = vrot.lane.b32.xlu0 %v196_v6, %s251_s24  ;;  %v213_v24 = vld [vmem:[%s377_s0 + $0x3] sm:$0x1]   ;;  %v214_v25 = vld [vmem:[%s377_s0 + $0x18] sm:$0x1]   ;;  %v215_v26 = vld [vmem:[%s377_s0 + $0x2] sm:$0x1]  }
   0xd   :  { %s270_s23 = smov 12   ;;  %v216_v27 = vld [vmem:[%s377_s0 + $0x17] sm:$0x1]   ;;  %v217_v28 = vld [vmem:[%s377_s0 + $0x1] sm:$0x1]   ;;  %s272_s29 = smov 6  }
   0xe   :  { %56 = vrot.lane.b32.xlu1 %v199_v9, %s254_s2  ;;  %v218_v29 = vld [vmem:[%s377_s0 + $0x16] sm:$0x1]   ;;  %s273_s0 = smov 4   ;;  %vm22_vm4 = vcmask 1032128   ;;  %vm28_vm5 = vcmask 982928   ;;  %vm34_vm6 = vcmask 933728  }
   0xf   :  { %vm40_vm7 = vcmask 884528   ;;  %vm46_vm8 = vcmask 835328   ;;  %vm52_vm9 = vcmask 786128   ;;  %vm58_vm10 = vcmask 736928  }
  0x10   :  { %50 = vrot.lane.b32.xlu0 %v198_v8, %s253_s30  ;;  %vm64_vm11 = vcmask 687728   ;;  %vm70_vm12 = vcmask 638528   ;;  %vm76_vm13 = vcmask 589328   ;;  %vm82_vm14 = vcmask 540128  }
  0x11   :  { %vm88_vm15 = vcmask 490928   ;;  %vm94_vm0 = vcmask 441728   ;;  %vm100_vm1 = vcmask 392528  }
  0x12   :  { %68 = vrot.lane.b32.xlu1 %v201_v12, %s256_s10  ;;  %s265_s10 = smov 28  }
  0x14   :  { %62 = vrot.lane.b32.xlu0 %v200_v11, %s255_s9 }
  0x16   :  { %80 = vrot.lane.b32.xlu1 %v203_v14, %s258_s16  ;;  %s267_s16 = smov 22  }
  0x18   :  { %74 = vrot.lane.b32.xlu0 %v202_v13, %s257_s15 }
  0x1a   :  { %92 = vrot.lane.b32.xlu1 %v205_v16, %s260_s22  ;;  %s269_s22 = smov 16  }
  0x1c   :  { %86 = vrot.lane.b32.xlu0 %v204_v15, %s259_s21 }
  0x1e   :  { %104 = vrot.lane.b32.xlu1 %v207_v18, %s262_s28  ;;  %s271_s28 = smov 10  }
  0x20   :  { %98 = vrot.lane.b32.xlu0 %v206_v17, %s261_s27 }
  0x22   :  { %117 = vrot.lane.b32.xlu1 %v209_v20, %s264_s5 }
  0x24   :  { %110 = vrot.lane.b32.xlu0 %v208_v19, %s263_s4 }
  0x26   :  { %130 = vrot.lane.b32.xlu1 %v211_v22, %s266_s11 }
  0x28   :  { %123 = vrot.lane.b32.xlu0 %v210_v21, %s265_s10 }
  0x2a   :  { %143 = vrot.lane.b32.xlu1 %v213_v24, %s268_s17 }
  0x2c   :  { %136 = vrot.lane.b32.xlu0 %v212_v23, %s267_s16 }
  0x2e   :  { %156 = vrot.lane.b32.xlu1 %v215_v26, %s270_s23 }
  0x30   :  { %149 = vrot.lane.b32.xlu0 %v214_v25, %s269_s22 }
  0x32   :  { %169 = vrot.lane.b32.xlu1 %v217_v28, %s272_s29 }
  0x34   :  { %162 = vrot.lane.b32.xlu0 %v216_v27, %s271_s28 }
  0x38   :  { %175 = vrot.lane.b32.xlu0 %v218_v29, %s273_s0 }
  0x74   :  { %v27_v31 = vpop.permute.xlu1 %26  }
  0x76   :  { %v12_v30 = vpop.permute.xlu0 %11  }
  0x77   :  { %15 = vst.msk [vmem:[#allocation0 + $0x8] sm:$0x1] %vm13_vm2, %v12_v30   ;;  %vm106_vm2 = vcmask 343328  }
  0x78   :  { %17 = vst.msk [vmem:[#allocation0] sm:$0x1] %vm16_vm3, %v12_v30   ;;  %v33_v33 = vpop.permute.xlu1 %32   ;;  %vm112_vm3 = vcmask 326928  }
  0x7a   :  { %v21_v32 = vpop.permute.xlu0 %20  }
  0x7b   :  { %23 = vst.msk [vmem:[#allocation0] sm:$0x1] %vm22_vm4, %v21_v32   ;;  %vm119_vm4 = vcmask 294128  }
  0x7c   :  { %29 = vst.msk [vmem:[#allocation0] sm:$0x1] %vm28_vm5, %v27_v31   ;;  %v45_v35 = vpop.permute.xlu1 %44   ;;  %vm125_vm5 = vcmask 277728  }
  0x7d   :  { %35 = vst.msk [vmem:[#allocation0] sm:$0x1] %vm34_vm6, %v33_v33   ;;  %vm132_vm6 = vcmask 244928  }
  0x7e   :  { %v39_v34 = vpop.permute.xlu0 %38  }
  0x7f   :  { %41 = vst.msk [vmem:[#allocation0] sm:$0x1] %vm40_vm7, %v39_v34   ;;  %vm138_vm7 = vcmask 228528  }
  0x80   :  { %47 = vst.msk [vmem:[#allocation0] sm:$0x1] %vm46_vm8, %v45_v35   ;;  %v57_v37 = vpop.permute.xlu1 %56   ;;  %vm145_vm8 = vcmask 195728  }
  0x82   :  { %v51_v36 = vpop.permute.xlu0 %50  }
  0x83   :  { %53 = vst.msk [vmem:[#allocation0] sm:$0x1] %vm52_vm9, %v51_v36   ;;  %vm151_vm9 = vcmask 179328  }
  0x84   :  { %59 = vst.msk [vmem:[#allocation0] sm:$0x1] %vm58_vm10, %v57_v37   ;;  %v69_v39 = vpop.permute.xlu1 %68   ;;  %vm158_vm10 = vcmask 146528  }
  0x86   :  { %v63_v38 = vpop.permute.xlu0 %62  }
  0x87   :  { %65 = vst.msk [vmem:[#allocation0] sm:$0x1] %vm64_vm11, %v63_v38   ;;  %vm164_vm11 = vcmask 130128  }
  0x88   :  { %71 = vst.msk [vmem:[#allocation0] sm:$0x1] %vm70_vm12, %v69_v39   ;;  %v81_v41 = vpop.permute.xlu1 %80   ;;  %vm171_vm12 = vcmask 97328  }
  0x8a   :  { %v75_v40 = vpop.permute.xlu0 %74  }
  0x8b   :  { %77 = vst.msk [vmem:[#allocation0] sm:$0x1] %vm76_vm13, %v75_v40   ;;  %vm177_vm13 = vcmask 80928  }
  0x8c   :  { %83 = vst.msk [vmem:[#allocation0] sm:$0x1] %vm82_vm14, %v81_v41   ;;  %v93_v43 = vpop.permute.xlu1 %92  }
  0x8e   :  { %v87_v42 = vpop.permute.xlu0 %86  }
  0x8f   :  { %89 = vst.msk [vmem:[#allocation0] sm:$0x1] %vm88_vm15, %v87_v42  }
  0x90   :  { %95 = vst.msk [vmem:[#allocation0] sm:$0x1] %vm94_vm0, %v93_v43   ;;  %v105_v45 = vpop.permute.xlu1 %104  }
  0x92   :  { %v99_v44 = vpop.permute.xlu0 %98  }
  0x93   :  { %101 = vst.msk [vmem:[#allocation0] sm:$0x1] %vm100_vm1, %v99_v44  }
  0x94   :  { %107 = vst.msk [vmem:[#allocation0] sm:$0x1] %vm106_vm2, %v105_v45   ;;  %v118_v47 = vpop.permute.xlu1 %117  }
  0x95   :  { %120 = vst.msk [vmem:[#allocation0] sm:$0x1] %vm119_vm4, %v118_v47  }
  0x96   :  { %v111_v46 = vpop.permute.xlu0 %110  }
  0x97   :  { %114 = vst.msk [vmem:[#allocation0 + $0x8] sm:$0x1] %vm112_vm3, %v111_v46  }
  0x98   :  { %v131_v49 = vpop.permute.xlu1 %130  }
  0x99   :  { %133 = vst.msk [vmem:[#allocation0] sm:$0x1] %vm132_vm6, %v131_v49  }
  0x9a   :  { %v124_v48 = vpop.permute.xlu0 %123  }
  0x9b   :  { %127 = vst.msk [vmem:[#allocation0 + $0x8] sm:$0x1] %vm125_vm5, %v124_v48  }
  0x9c   :  { %v144_v51 = vpop.permute.xlu1 %143  }
  0x9d   :  { %146 = vst.msk [vmem:[#allocation0] sm:$0x1] %vm145_vm8, %v144_v51  }
  0x9e   :  { %v137_v50 = vpop.permute.xlu0 %136  }
  0x9f   :  { %140 = vst.msk [vmem:[#allocation0 + $0x8] sm:$0x1] %vm138_vm7, %v137_v50  }
  0xa0   :  { %v157_v53 = vpop.permute.xlu1 %156  }
  0xa1   :  { %159 = vst.msk [vmem:[#allocation0] sm:$0x1] %vm158_vm10, %v157_v53  }
  0xa2   :  { %v150_v52 = vpop.permute.xlu0 %149  }
  0xa3   :  { %153 = vst.msk [vmem:[#allocation0 + $0x8] sm:$0x1] %vm151_vm9, %v150_v52  }
  0xa4   :  { %v170_v55 = vpop.permute.xlu1 %169  }
  0xa5   :  { %172 = vst.msk [vmem:[#allocation0] sm:$0x1] %vm171_vm12, %v170_v55  }
  0xa6   :  { %v163_v54 = vpop.permute.xlu0 %162  }
  0xa7   :  { %166 = vst.msk [vmem:[#allocation0 + $0x8] sm:$0x1] %vm164_vm11, %v163_v54  }
  0xaa   :  { %v176_v56 = vpop.permute.xlu0 %175  }
  0xab   :  { %179 = vst.msk [vmem:[#allocation0 + $0x8] sm:$0x1] %vm177_vm13, %v176_v56  }
  0xac   :  { %v183_v57 = vld [vmem:[#allocation0] sm:$0x1] }
  0xad   :  { %185 = vst [vmem:[%s378_s1] sm:$0x1] %v183_v57 }
  0xb2   :  { %v187_v58 = vld [vmem:[#allocation0 + $0x8] sm:$0x1] }
  0xb3   :  { %219 = vst [vmem:[%s378_s1 + $0x1] sm:$0x1] %v187_v58 }

// kernel: tile.18
= control target key start
LH: loop header
LB: loop body
LE: loop exit
PB: predicated region body
PF: predicated region fallthrough
CT: control target
= control target key end

     0   :  { %s28_s0 = inlined_call_operand.vmem [shape: f32[16], index: 0, kind: input, shape index: {}]   ;;  %s29_s1 = inlined_call_operand.vmem [shape: f32[10,16], index: 1, kind: output, shape index: {}]  }
   0x1   :  { %v4_v0 = vld [vmem:[%s28_s0] ss:$0 sm:$0xff] }
   0x2   :  { %5 = vst [vmem:[%s29_s1] sm:$0xff] %v4_v0  ;;  %8 = vst [vmem:[%s29_s1 + $0x8] sm:$0xff] %v4_v0 }

// kernel: tile.19
= control target key start
LH: loop header
LB: loop body
LE: loop exit
PB: predicated region body
PF: predicated region fallthrough
CT: control target
= control target key end

     0   :  { %s75_s10 = smov 112   ;;  %s76_s11 = smov 80   ;;  %vm4_vm0 = vcmask 130048   ;;  %vm10_vm1 = vcmask 1048448   ;;  %vm16_vm2 = vcmask 917248   ;;  %vm22_vm3 = vcmask 786048   ;;  %s122_s0 = inlined_call_operand.vmem [shape: f32[10,16], index: 0, kind: input, shape index: {}]   ;;  %s123_s1 = inlined_call_operand.vmem [shape: f32[1,160], index: 1, kind: output, shape index: {}]  }
   0x1   :  { %v60_v0 = vld [vmem:[%s122_s0 + $0x7] sm:$0x1]   ;;  %v62_v1 = vld [vmem:[%s122_s0 + $0x5] sm:$0x1]   ;;  %v61_v2 = vld [vmem:[%s122_s0 + $0x6] sm:$0x1]  }
   0x2   :  { %8 = vrot.lane.b32.xlu0 %v60_v0, %s75_s10  ;;  %20 = vrot.lane.b32.xlu1 %v62_v1, %s76_s11  ;;  %v63_v3 = vld [vmem:[%s122_s0 + $0x4] sm:$0x1]   ;;  %s2_s16 = smov 3  ;;  %s77_s17 = smov 96   ;;  %v64_v5 = vld [vmem:[%s122_s0 + $0x3] sm:$0x1]  }
   0x3   :  { %s78_s18 = smov 64   ;;  %v3_v4 = vld [vmem:[%s122_s0] ss:$8 sm:%s2_s16]   ;;  %v65_v6 = vld [vmem:[%s122_s0 + $0x2] sm:$0x1]   ;;  %s43_s25 = smov 3 }
   0x4   :  { %5 = vst.msk [vmem:[#allocation0] ss:$8 sm:$0x3] %vm4_vm0, %v3_v4   ;;  %s79_s26 = smov 48   ;;  %s80_s27 = smov 32   ;;  %vm28_vm4 = vcmask 654848  }
   0x5   :  { %v66_v7 = vld [vmem:[%s122_s0 + $0x1] ss:$8 sm:%s43_s25]   ;;  %s81_s0 = smov 16   ;;  %vm34_vm5 = vcmask 523648   ;;  %vm40_vm6 = vcmask 392448   ;;  %vm47_vm7 = vcmask 261248  }
   0x6   :  { %14 = vrot.lane.b32.xlu0 %v61_v2, %s77_s17  ;;  %26 = vrot.lane.b32.xlu1 %v63_v3, %s78_s18 }
   0xa   :  { %32 = vrot.lane.b32.xlu0 %v64_v5, %s79_s26  ;;  %38 = vrot.lane.b32.xlu1 %v65_v6, %s80_s27 }
   0xe   :  { %45 = vrot.lane.b32.xlu0 %v66_v7, %s81_s0 }
  0x74   :  { %v9_v8 = vpop.permute.xlu0 %8   ;;  %v21_v9 = vpop.permute.xlu1 %20  }
  0x75   :  { %11 = vst.msk [vmem:[#allocation0] sm:$0x1] %vm10_vm1, %v9_v8  }
  0x78   :  { %v15_v10 = vpop.permute.xlu0 %14   ;;  %v27_v11 = vpop.permute.xlu1 %26  }
  0x79   :  { %17 = vst.msk [vmem:[#allocation0] sm:$0x1] %vm16_vm2, %v15_v10  }
  0x7a   :  { %23 = vst.msk [vmem:[#allocation0] sm:$0x1] %vm22_vm3, %v21_v9  }
  0x7b   :  { %29 = vst.msk [vmem:[#allocation0] sm:$0x1] %vm28_vm4, %v27_v11  }
  0x7c   :  { %v33_v12 = vpop.permute.xlu0 %32   ;;  %v39_v13 = vpop.permute.xlu1 %38  }
  0x7d   :  { %35 = vst.msk [vmem:[#allocation0] sm:$0x1] %vm34_vm5, %v33_v12  }
  0x7e   :  { %41 = vst.msk [vmem:[#allocation0] sm:$0x1] %vm40_vm6, %v39_v13  }
  0x80   :  { %v46_v14 = vpop.permute.xlu0 %45  }
  0x81   :  { %48 = vst.msk [vmem:[#allocation0] ss:$8 sm:$0x3] %vm47_vm7, %v46_v14  }
  0x88   :  { %v52_v15 = vld [vmem:[#allocation0] sm:$0x1]  ;;  %v56_v16 = vld [vmem:[#allocation0 + $0x8] sm:$0x1] }
  0x89   :  { %54 = vst [vmem:[%s123_s1] sm:$0x1] %v52_v15  ;;  %67 = vst [vmem:[%s123_s1 + $0x1] sm:$0x1] %v56_v16 }

// kernel: cifar10_forward.1
= control target key start
LH: loop header
LB: loop body
LE: loop exit
PB: predicated region body
PF: predicated region fallthrough
CT: control target
= control target key end

     0   :  { %s9303_s0 = inlined_call_operand.vmem [shape: f32[32,16,96], index: 0, kind: input, shape index: {}]   ;;  %s9304_s1 = inlined_call_operand.vmem [shape: f32[5,96,168], index: 1, kind: input, shape index: {}]   ;;  %s9305_s2 = inlined_call_operand.vmem [shape: f32[1,168], index: 2, kind: input, shape index: {}]   ;;  %s9306_s3 = inlined_call_operand.vmem [shape: f32[168,84], index: 3, kind: input, shape index: {}]   ;;  %s9307_s4 = inlined_call_operand.vmem [shape: f32[168,84], index: 4, kind: input, shape index: {}]   ;;  %s9308_s5 = inlined_call_operand.vmem [shape: f32[5,84,160], index: 5, kind: input, shape index: {}]   ;;  %s9309_s6 = inlined_call_operand.vmem [shape: f32[1,160], index: 6, kind: input, shape index: {}]   ;;  %s9310_s7 = inlined_call_operand.vmem [shape: f32[160,80], index: 7, kind: input, shape index: {}]   ;;  %s9311_s8 = inlined_call_operand.vmem [shape: f32[160,80], index: 8, kind: input, shape index: {}]   ;;  %s9312_s9 = inlined_call_operand.vmem [shape: f32[5,80,120], index: 9, kind: input, shape index: {}]   ;;  %s9313_s10 = inlined_call_operand.vmem [shape: f32[1,120], index: 10, kind: input, shape index: {}]   ;;  %s9314_s11 = inlined_call_operand.vmem [shape: f32[120,84], index: 11, kind: input, shape index: {}]   ;;  %s9315_s12 = inlined_call_operand.vmem [shape: f32[1,84], index: 12, kind: input, shape index: {}]   ;;  %s9316_s13 = inlined_call_operand.vmem [shape: f32[84,128], index: 13, kind: input, shape index: {}]   ;;  %s9317_s14 = inlined_call_operand.vmem [shape: f32[1,128], index: 14, kind: input, shape index: {}]   ;;  %s9318_s15 = inlined_call_operand.hbm [shape: f32[16,128], index: 15, kind: output, shape index: {}]  }
   0x1   :  { %9324 = sst [smem:[#allocation10_spill]] %s9303_s0 }
   0x2   :  { %20 = vsyncpa [#allocation4], 0 }
   0x3   :  { %22 = vsyncpa [#allocation4 + $0x1], 0  ;;  %s6832_s18 = smov 0   ;;  %s6834_s19 = smov 0  }
   0x4   :  { %s6836_s20 = smov 0   ;;  %s6838_s21 = smov 0  }
   0x5 LB: > { %9325 = sst [smem:[#allocation6_spill]] %s6738_s19  ;;  %s9319_s22 = sadd.s32 4294967295, %s6746_s21   ;;  %s6746_s21 = sphi %s6838_s21, %s9333_s21   ;;  %s6742_s20 = sphi %s6836_s20, %s9336_s20   ;;  %s6738_s19 = sphi %s6834_s19, %s9335_s19   ;;  %s6734_s18 = sphi %s6832_s18, %s9334_s18  }
   0x6   : > { %9326 = sst [smem:[#allocation7_spill]] %s6742_s20  ;;  %s5030_s23 = sadd.s32 4294967294, %s6746_s21  }
   0x7   : > { %s6855_s24 = sadd.s32 1, %s6746_s21   ;;  %s35_s25 = sadd.s32 1, %s6742_s20 }
   0x8   : > { %9327 = sst [smem:[#allocation8_spill]] %s6855_s24  ;;  %s32_s26 = ssub.s32 %s6746_s21, %s6855_s24 }
   0x9   : > { %p42_p0 = scmp.ne.s32.totalorder %s6742_s20, %s6738_s19  ;;  %p33_p1 = scmp.eq.s32.totalorder %s32_s26, 0 }
   0xa   : > { %p43_p2 = scmp.eq.s32.totalorder %s6746_s21, 0  ;;  %p366_p3 = scmp.eq.s32.totalorder %s9319_s22, 1 }
   0xb   : > { %p371_p4 = scmp.ne.s32.totalorder %s6738_s19, %s6734_s18  ;;  %p372_p7 = scmp.eq.s32.totalorder %s5030_s23, 1 }
   0xc   : > { %s6868_s27 = scalar_select %p33_p1, %s6742_s20, %s35_s25  }
   0xd   : > { %p44_p5 = por %p43_p2, %p42_p0  ;;  %p6870_p6 = por %p366_p3, %p42_p0 }
   0xe   : > { %9328 = sst [smem:[#allocation9_spill]] %s6868_s27  ;;  %p6874_p8 = por %p372_p7, %p371_p4 }
   0xf   : > { %p5032_p9 = scmp.ge.s32.totalorder %s6746_s21, 2 }
  0x11   : > { %430 = sbr.rel (%p5032_p9) target bundleno = 50 (0x32), region = 72 }
  0x18   : > { %433 = sbr.rel (!%p44_p5) target bundleno = 50 (0x32), region = 76  ;;  %s435_s30 = sand.u32 (%p44_p5), 1, %s6742_s20  }
  0x19   : > { %s5034_s16 = sshll.u32 (%p44_p5), %s6746_s21, 3  ;;  %s5033_s17 = sshll.u32 (%p44_p5), %s435_s30, 8 }
  0x1a   : > { %s9331_s0 = sld [smem:[#allocation10_spill]] (%p44_p5)  ;;  %s6891_s23 = scalar_lea.vmem (%p44_p5), [#allocation2], %s5033_s17 }
  0x20   : > { %s6886_s22 = scalar_lea.vmem %s9331_s0, %s5034_s16 }
  0x21   : > { %v529_v0 = vld [vmem:[%s6886_s22] sm:$0xff]  ;;  %v531_v1 = vld [vmem:[%s6886_s22 + $0x10] sm:$0xff] }
  0x22   : > { %v533_v2 = vld [vmem:[%s6886_s22 + $0x20] sm:$0xff]  ;;  %530 = vst [vmem:[%s6891_s23] sm:$0xff] %v529_v0  ;;  %532 = vst [vmem:[%s6891_s23 + $0x8] sm:$0xff] %v531_v1  ;;  %v535_v3 = vld [vmem:[%s6886_s22 + $0x30] sm:$0xff] }
  0x23   : > { %534 = vst [vmem:[%s6891_s23 + $0x10] sm:$0xff] %v533_v2  ;;  %v537_v4 = vld [vmem:[%s6886_s22 + $0x40] sm:$0xff]  ;;  %v539_v5 = vld [vmem:[%s6886_s22 + $0x50] sm:$0xff]  ;;  %536 = vst [vmem:[%s6891_s23 + $0x18] sm:$0xff] %v535_v3 }
  0x24   : > { %538 = vst [vmem:[%s6891_s23 + $0x20] sm:$0xff] %v537_v4  ;;  %540 = vst [vmem:[%s6891_s23 + $0x28] sm:$0xff] %v539_v5  ;;  %v541_v6 = vld [vmem:[%s6886_s22 + $0x60] sm:$0xff]  ;;  %v543_v7 = vld [vmem:[%s6886_s22 + $0x70] sm:$0xff] }
  0x25   : > { %v545_v8 = vld [vmem:[%s6886_s22 + $0x80] sm:$0xff]  ;;  %542 = vst [vmem:[%s6891_s23 + $0x30] sm:$0xff] %v541_v6  ;;  %544 = vst [vmem:[%s6891_s23 + $0x38] sm:$0xff] %v543_v7  ;;  %v547_v9 = vld [vmem:[%s6886_s22 + $0x90] sm:$0xff] }
  0x26   : > { %546 = vst [vmem:[%s6891_s23 + $0x40] sm:$0xff] %v545_v8  ;;  %v549_v10 = vld [vmem:[%s6886_s22 + $0xa0] sm:$0xff]  ;;  %v551_v11 = vld [vmem:[%s6886_s22 + $0xb0] sm:$0xff]  ;;  %548 = vst [vmem:[%s6891_s23 + $0x48] sm:$0xff] %v547_v9 }
  0x27   : > { %550 = vst [vmem:[%s6891_s23 + $0x50] sm:$0xff] %v549_v10  ;;  %552 = vst [vmem:[%s6891_s23 + $0x58] sm:$0xff] %v551_v11  ;;  %v553_v12 = vld [vmem:[%s6886_s22 + $0xc0] sm:$0xff]  ;;  %v555_v13 = vld [vmem:[%s6886_s22 + $0xd0] sm:$0xff] }
  0x28   : > { %v557_v14 = vld [vmem:[%s6886_s22 + $0xe0] sm:$0xff]  ;;  %554 = vst [vmem:[%s6891_s23 + $0x60] sm:$0xff] %v553_v12  ;;  %556 = vst [vmem:[%s6891_s23 + $0x68] sm:$0xff] %v555_v13  ;;  %v559_v15 = vld [vmem:[%s6886_s22 + $0xf0] sm:$0xff] }
  0x29   : > { %558 = vst [vmem:[%s6891_s23 + $0x70] sm:$0xff] %v557_v14  ;;  %v561_v16 = vld [vmem:[%s6886_s22 + $0x100] sm:$0xff]  ;;  %v563_v17 = vld [vmem:[%s6886_s22 + $0x110] sm:$0xff]  ;;  %560 = vst [vmem:[%s6891_s23 + $0x78] sm:$0xff] %v559_v15 }
  0x2a   : > { %562 = vst [vmem:[%s6891_s23 + $0x80] sm:$0xff] %v561_v16  ;;  %564 = vst [vmem:[%s6891_s23 + $0x88] sm:$0xff] %v563_v17  ;;  %v565_v18 = vld [vmem:[%s6886_s22 + $0x120] sm:$0xff]  ;;  %v567_v19 = vld [vmem:[%s6886_s22 + $0x130] sm:$0xff] }
  0x2b   : > { %v569_v20 = vld [vmem:[%s6886_s22 + $0x140] sm:$0xff]  ;;  %566 = vst [vmem:[%s6891_s23 + $0x90] sm:$0xff] %v565_v18  ;;  %568 = vst [vmem:[%s6891_s23 + $0x98] sm:$0xff] %v567_v19  ;;  %v571_v21 = vld [vmem:[%s6886_s22 + $0x150] sm:$0xff] }
  0x2c   : > { %570 = vst [vmem:[%s6891_s23 + $0xa0] sm:$0xff] %v569_v20  ;;  %v573_v22 = vld [vmem:[%s6886_s22 + $0x160] sm:$0xff]  ;;  %v575_v23 = vld [vmem:[%s6886_s22 + $0x170] sm:$0xff]  ;;  %572 = vst [vmem:[%s6891_s23 + $0xa8] sm:$0xff] %v571_v21 }
  0x2d   : > { %574 = vst [vmem:[%s6891_s23 + $0xb0] sm:$0xff] %v573_v22  ;;  %576 = vst [vmem:[%s6891_s23 + $0xb8] sm:$0xff] %v575_v23  ;;  %v577_v24 = vld [vmem:[%s6886_s22 + $0x180] sm:$0xff]  ;;  %v579_v25 = vld [vmem:[%s6886_s22 + $0x190] sm:$0xff] }
  0x2e   : > { %v581_v26 = vld [vmem:[%s6886_s22 + $0x1a0] sm:$0xff]  ;;  %578 = vst [vmem:[%s6891_s23 + $0xc0] sm:$0xff] %v577_v24  ;;  %580 = vst [vmem:[%s6891_s23 + $0xc8] sm:$0xff] %v579_v25  ;;  %v583_v27 = vld [vmem:[%s6886_s22 + $0x1b0] sm:$0xff] }
  0x2f   : > { %582 = vst [vmem:[%s6891_s23 + $0xd0] sm:$0xff] %v581_v26  ;;  %v585_v28 = vld [vmem:[%s6886_s22 + $0x1c0] sm:$0xff]  ;;  %v587_v29 = vld [vmem:[%s6886_s22 + $0x1d0] sm:$0xff]  ;;  %584 = vst [vmem:[%s6891_s23 + $0xd8] sm:$0xff] %v583_v27 }
  0x30   : > { %586 = vst [vmem:[%s6891_s23 + $0xe0] sm:$0xff] %v585_v28  ;;  %588 = vst [vmem:[%s6891_s23 + $0xe8] sm:$0xff] %v587_v29  ;;  %v589_v30 = vld [vmem:[%s6886_s22 + $0x1e0] sm:$0xff]  ;;  %v591_v31 = vld [vmem:[%s6886_s22 + $0x1f0] sm:$0xff] }
  0x31   : > { %590 = vst [vmem:[%s6891_s23 + $0xf0] sm:$0xff] %v589_v30  ;;  %592 = vst [vmem:[%s6891_s23 + $0xf8] sm:$0xff] %v591_v31 }
  0x32 PF: > { %p5035_p10 = scmp.ge.s32.totalorder %s6746_s21, 1  ;;  %p597_p11 = scmp.lt.s32.totalorder %s6746_s21, 3 }
  0x34   : > { %p598_p12 = pnand %p5035_p10, %p597_p11 }
  0x35   : > { %v5067_v32 = vld [vmem:[%s9304_s1 + $0xc8] sm:$0xff] (!%p598_p12)  ;;  %v5069_v33 = vld [vmem:[%s9304_s1 + $0xd8] sm:$0xff] (!%p598_p12)  ;;  %v5066_v34 = vld [vmem:[%s9304_s1 + $0xc0] sm:$0xff] (!%p598_p12)  ;;  %v6748_v39 = vmov (!%p598_p12), 0.0   ;;  %s7024_s30 = sand.u32 (!%p598_p12), 1, %s6738_s19   ;;  %vm757_vm0 = vcmask (!%p598_p12), 785408  }
  0x36   : > { %601 = sbr.rel (%p598_p12) target bundleno = 2777 (0xad9), region = 114  ;;  %v5883_v35 = vpack.c.bf16 (!%p598_p12), %v5069_v33, %v5067_v32  ;;  %v5068_v36 = vld [vmem:[%s9304_s1 + $0xd0] sm:$0xff] (!%p598_p12)  ;;  %v5071_v37 = vld [vmem:[%s9304_s1 + $0xe8] sm:$0xff] (!%p598_p12)  ;;  %v5073_v38 = vld [vmem:[%s9304_s1 + $0xf8] sm:$0xff] (!%p598_p12)  ;;  %906 = vmatprep.mubr.f32.mxu0 (!%p598_p12), %v6748_v39  ;;  %s5036_s26 = sshll.u32 (!%p598_p12), %s7024_s30, 8  ;;  %vm2790_vm1 = vcmask (!%p598_p12), 326656  }
  0x37   : > { %v5885_v40 = vpack.c.bf16 (!%p598_p12), %v5068_v36, %v5066_v34  ;;  %v5887_v41 = vpack.c.bf16 (!%p598_p12), %v5073_v38, %v5071_v37  ;;  %v5070_v42 = vld [vmem:[%s9304_s1 + $0xe0] sm:$0xff] (!%p598_p12)  ;;  %v5072_v43 = vld [vmem:[%s9304_s1 + $0xf0] sm:$0xff] (!%p598_p12)  ;;  %v5075_v44 = vld [vmem:[%s9304_s1 + $0x108] sm:$0xff] (!%p598_p12)  ;;  %s7051_s27 = scalar_lea.vmem (!%p598_p12), [#allocation2], %s5036_s26  ;;  %vm3228_vm2 = vcmask (!%p598_p12), 1043456   ;;  %vm3197_vm3 = vcmask (!%p598_p12), 687104  }
  0x38   : > { %5884 = vmatprep.subr.bf16.mxu0 (!%p598_p12), %v5883_v35  ;;  %v5077_v45 = vld [vmem:[%s9304_s1 + $0x118] sm:$0xff] (!%p598_p12)  ;;  %v5889_v46 = vpack.c.bf16 (!%p598_p12), %v5072_v43, %v5070_v42  ;;  %v5074_v48 = vld [vmem:[%s9304_s1 + $0x100] sm:$0xff] (!%p598_p12)  ;;  %v5076_v49 = vld [vmem:[%s9304_s1 + $0x110] sm:$0xff] (!%p598_p12)  ;;  %vm4087_vm4 = vcmask (!%p598_p12), 261120   ;;  %vm6750_vm5 = vmmov (!%p598_p12), 0   ;;  %vm4334_vm6 = vcmask (!%p598_p12), 654336  }
  0x39   : > { %5886 = vmatpush1.bf16.msra.mxu0 (!%p598_p12), %v5885_v40  ;;  %v5891_v47 = vpack.c.bf16 (!%p598_p12), %v5077_v45, %v5075_v44  ;;  %v5079_v50 = vld [vmem:[%s9304_s1 + $0x128] sm:$0xff] (!%p598_p12)  ;;  %v5081_v51 = vld [vmem:[%s9304_s1 + $0x138] sm:$0xff] (!%p598_p12)  ;;  %v5893_v52 = vpack.c.bf16 (!%p598_p12), %v5076_v49, %v5074_v48  ;;  %v5078_v54 = vld [vmem:[%s9304_s1 + $0x120] sm:$0xff] (!%p598_p12)  ;;  %vm4767_vm7 = vcmask (!%p598_p12), 982016   ;;  %s5037_s22 = sshll.u32 (!%p598_p12), %s7024_s30, 3  ;;  %s9332_s23 = sadd.s32 (!%p598_p12), 4294967295, %s6746_s21  }
  0x3a   : > { %5888 = vmatprep.subr.bf16.mxu0 (!%p598_p12), %v5887_v41  ;;  %v5895_v53 = vpack.c.bf16 (!%p598_p12), %v5081_v51, %v5079_v50  ;;  %v5080_v55 = vld [vmem:[%s9304_s1 + $0x130] sm:$0xff] (!%p598_p12)  ;;  %v5083_v56 = vld [vmem:[%s9304_s1 + $0x148] sm:$0xff] (!%p598_p12)  ;;  %v5085_v57 = vld [vmem:[%s9304_s1 + $0x158] sm:$0xff] (!%p598_p12)  ;;  %s5624_s19 = sshll.u32 (!%p598_p12), %s9332_s23, 7  ;;  %s650_s16 = scalar_lea.vmem (!%p598_p12), [#allocation3], %s5037_s22 }
  0x3b   : > { %v5897_v58 = vpack.c.bf16 (!%p598_p12), %v5080_v55, %v5078_v54  ;;  %v5899_v59 = vpack.c.bf16 (!%p598_p12), %v5085_v57, %v5083_v56  ;;  %v5082_v60 = vld [vmem:[%s9304_s1 + $0x140] sm:$0xff] (!%p598_p12)  ;;  %v5084_v61 = vld [vmem:[%s9304_s1 + $0x150] sm:$0xff] (!%p598_p12)  ;;  %v5087_v62 = vld [vmem:[%s9304_s1 + $0x168] sm:$0xff] (!%p598_p12)  ;;  %s9259_s26 = scalar_lea.hbm (!%p598_p12), %s9318_s15, %s5624_s19  ;;  %s4952_s0 = scalar_lea.sflag (!%p598_p12), [#allocation4], %s7024_s30 }
  0x3c   : > { %v5089_v63 = vld [vmem:[%s9304_s1 + $0x178] sm:$0xff] (!%p598_p12)  ;;  %v5901_v0 = vpack.c.bf16 (!%p598_p12), %v5084_v61, %v5082_v60  ;;  %v5086_v2 = vld [vmem:[%s9304_s1 + $0x160] sm:$0xff] (!%p598_p12)  ;;  %v5088_v3 = vld [vmem:[%s9304_s1 + $0x170] sm:$0xff] (!%p598_p12)  ;;  %s6751_s24 = smov (!%p598_p12), [#allocation3]  }
  0x3d   : > { %5890 = vmatpush1.bf16.msra.mxu0 %v5889_v46  ;;  %v5903_v1 = vpack.c.bf16 %v5089_v63, %v5087_v62  ;;  %v680_v4 = vld [vmem:[%s9304_s1 + $0x8] sm:$0xff]  ;;  %v682_v5 = vld [vmem:[%s9304_s1 + $0x18] sm:$0xff]  ;;  %v5905_v6 = vpack.c.bf16 %v5088_v3, %v5086_v2  ;;  %v679_v8 = vld [vmem:[%s9304_s1] sm:$0xff]  ;;  %s6688_s22 = sshll.u32 %s6751_s24, 4  ;;  %s6689_s22 = int_to_ptr.vmem [resolvable:$false] %s6688_s22 }
  0x3e   : > { %5892 = vmatprep.subr.bf16.mxu0 %v5891_v47  ;;  %v5907_v7 = vpack.c.bf16 %v682_v5, %v680_v4  ;;  %v681_v9 = vld [vmem:[%s9304_s1 + $0x10] sm:$0xff]  ;;  %v684_v10 = vld [vmem:[%s9304_s1 + $0x28] sm:$0xff]  ;;  %v686_v11 = vld [vmem:[%s9304_s1 + $0x38] sm:$0xff]  ;;  %s6690_s23 = scalar_lea.vmem %s6689_s22, 256 }
  0x3f   : > { %v7054_v12 = vld [vmem:[%s7051_s27 + $0x8] sm:$0xff]  ;;  %v5909_v13 = vpack.c.bf16 %v681_v9, %v679_v8  ;;  %v5911_v14 = vpack.c.bf16 %v686_v11, %v684_v10  ;;  %v683_v15 = vld [vmem:[%s9304_s1 + $0x20] sm:$0xff]  ;;  %v685_v16 = vld [vmem:[%s9304_s1 + $0x30] sm:$0xff] }
  0x40   : > { %v688_v17 = vld [vmem:[%s9304_s1 + $0x48] sm:$0xff]  ;;  %v690_v18 = vld [vmem:[%s9304_s1 + $0x58] sm:$0xff]  ;;  %v7072_v19 = vld [vmem:[%s7051_s27 + $0x10] sm:$0xff]  ;;  %v5913_v20 = vpack.c.bf16 %v685_v16, %v683_v15 }
  0x41   : > { %5894 = vmatpush1.bf16.msra.mxu0 %v5893_v52  ;;  %v5915_v21 = vpack.c.bf16 %v690_v18, %v688_v17  ;;  %v687_v22 = vld [vmem:[%s9304_s1 + $0x40] sm:$0xff]  ;;  %v689_v23 = vld [vmem:[%s9304_s1 + $0x50] sm:$0xff]  ;;  %v692_v24 = vld [vmem:[%s9304_s1 + $0x68] sm:$0xff] }
  0x42   : > { %5896 = vmatprep.subr.bf16.mxu0 %v5895_v53  ;;  %v694_v25 = vld [vmem:[%s9304_s1 + $0x78] sm:$0xff]  ;;  %v5917_v27 = vpack.c.bf16 %v689_v23, %v687_v22  ;;  %v691_v29 = vld [vmem:[%s9304_s1 + $0x60] sm:$0xff]  ;;  %v693_v30 = vld [vmem:[%s9304_s1 + $0x70] sm:$0xff] }
  0x43   : > { %v7090_v26 = vld [vmem:[%s7051_s27 + $0x18] sm:$0xff]  ;;  %v5919_v28 = vpack.c.bf16 %v694_v25, %v692_v24  ;;  %v696_v31 = vld [vmem:[%s9304_s1 + $0x88] sm:$0xff]  ;;  %v7108_v33 = vld [vmem:[%s7051_s27 + $0x20] sm:$0xff]  ;;  %v5921_v34 = vpack.c.bf16 %v693_v30, %v691_v29 }
  0x44   : > { %v698_v32 = vld [vmem:[%s9304_s1 + $0x98] sm:$0xff]  ;;  %v695_v36 = vld [vmem:[%s9304_s1 + $0x80] sm:$0xff]  ;;  %v697_v37 = vld [vmem:[%s9304_s1 + $0x90] sm:$0xff] }
  0x45   : > { %5898 = vmatpush1.bf16.msra.mxu0 %v5897_v58  ;;  %v5923_v35 = vpack.c.bf16 %v698_v32, %v696_v31  ;;  %v700_v38 = vld [vmem:[%s9304_s1 + $0xa8] sm:$0xff]  ;;  %v702_v40 = vld [vmem:[%s9304_s1 + $0xb8] sm:$0xff]  ;;  %v5925_v42 = vpack.c.bf16 %v697_v37, %v695_v36  ;;  %v699_v44 = vld [vmem:[%s9304_s1 + $0xa0] sm:$0xff] }
  0x46   : > { %5900 = vmatprep.subr.bf16.mxu0 %v5899_v59  ;;  %v7126_v41 = vld [vmem:[%s7051_s27 + $0x28] sm:$0xff]  ;;  %v5927_v43 = vpack.c.bf16 %v702_v40, %v700_v38  ;;  %v701_v45 = vld [vmem:[%s9304_s1 + $0xb0] sm:$0xff]  ;;  %v5177_v47 = vld [vmem:[%s9304_s1 + $0x198] sm:$0xff] }
  0x47   : > { %v5175_v46 = vld [vmem:[%s9304_s1 + $0x188] sm:$0xff]  ;;  %v7144_v48 = vld [vmem:[%s7051_s27 + $0x30] sm:$0xff]  ;;  %v5929_v49 = vpack.c.bf16 %v701_v45, %v699_v44  ;;  %v7150_v51 = vld [vmem:[%s7051_s27 + $0x38] sm:$0xff] }
  0x48   : > { %v5931_v50 = vpack.c.bf16 %v5177_v47, %v5175_v46  ;;  %v7156_v52 = vld [vmem:[%s7051_s27 + $0x40] sm:$0xff]  ;;  %v7162_v53 = vld [vmem:[%s7051_s27 + $0x48] sm:$0xff]  ;;  %v7168_v54 = vld [vmem:[%s7051_s27 + $0x50] sm:$0xff] }
  0x49   : > { %5902 = vmatpush1.bf16.msra.mxu0 %v5901_v0  ;;  %v7174_v55 = vld [vmem:[%s7051_s27 + $0x58] sm:$0xff]  ;;  %v7180_v56 = vld [vmem:[%s7051_s27 + $0x60] sm:$0xff]  ;;  %v7186_v57 = vld [vmem:[%s7051_s27 + $0x68] sm:$0xff] }
  0x4a   : > { %5904 = vmatprep.subr.bf16.mxu0 %v5903_v1  ;;  %v7192_v58 = vld [vmem:[%s7051_s27 + $0x70] sm:$0xff]  ;;  %v7198_v59 = vld [vmem:[%s7051_s27 + $0x78] sm:$0xff]  ;;  %v7204_v60 = vld [vmem:[%s7051_s27 + $0x80] sm:$0xff] }
  0x4b   : > { %v7210_v61 = vld [vmem:[%s7051_s27 + $0x88] sm:$0xff]  ;;  %v7216_v62 = vld [vmem:[%s7051_s27 + $0x90] sm:$0xff]  ;;  %v7222_v63 = vld [vmem:[%s7051_s27 + $0x98] sm:$0xff] }
  0x4c   : > { %v7228_v0 = vld [vmem:[%s7051_s27 + $0xa0] sm:$0xff]  ;;  %v7234_v1 = vld [vmem:[%s7051_s27 + $0xa8] sm:$0xff]  ;;  %v7240_v2 = vld [vmem:[%s7051_s27 + $0xb0] sm:$0xff] }
  0x4d   : > { %5906 = vmatpush1.bf16.msra.mxu0 %v5905_v6  ;;  %v7246_v3 = vld [vmem:[%s7051_s27 + $0xb8] sm:$0xff]  ;;  %v7252_v4 = vld [vmem:[%s7051_s27 + $0xc0] sm:$0xff]  ;;  %v7258_v5 = vld [vmem:[%s7051_s27 + $0xc8] sm:$0xff] }
  0x4e   : > { %5908 = vmatprep.subr.bf16.mxu0 %v5907_v7  ;;  %v7264_v6 = vld [vmem:[%s7051_s27 + $0xd0] sm:$0xff]  ;;  %v7270_v7 = vld [vmem:[%s7051_s27 + $0xd8] sm:$0xff]  ;;  %v7276_v8 = vld [vmem:[%s7051_s27 + $0xe0] sm:$0xff] }
  0x4f   : > { %v5174_v9 = vld [vmem:[%s9304_s1 + $0x180] sm:$0xff]  ;;  %v5176_v10 = vld [vmem:[%s9304_s1 + $0x190] sm:$0xff]  ;;  %v5179_v11 = vld [vmem:[%s9304_s1 + $0x1a8] sm:$0xff] }
  0x50   : > { %5090 = vmatmul.mubr.msk.f32.vlgmr.msra.gmra.mrb[0].mxu0 %vm757_vm0, %v7054_v12  ;;  %v5933_v15 = vpack.c.bf16 %v5176_v10, %v5174_v9  ;;  %v5178_v17 = vld [vmem:[%s9304_s1 + $0x1a0] sm:$0xff]  ;;  %v5180_v18 = vld [vmem:[%s9304_s1 + $0x1b0] sm:$0xff]  ;;  %v5195_v40 = vld [vmem:[%s9304_s1 + $0x228] sm:$0xff] }
  0x51   : > { %5910 = vmatpush1.bf16.msra.mxu0 %v5909_v13  ;;  %912 = vmatprep.mubr.f32.mxu0 %v6748_v39  ;;  %v5181_v13 = vld [vmem:[%s9304_s1 + $0x1b8] sm:$0xff]  ;;  %v5937_v22 = vpack.c.bf16 %v5180_v18, %v5178_v17  ;;  %v5182_v24 = vld [vmem:[%s9304_s1 + $0x1c0] sm:$0xff]  ;;  %v5184_v25 = vld [vmem:[%s9304_s1 + $0x1d0] sm:$0xff] }
  0x52   : > { %5912 = vmatprep.subr.bf16.mxu0 %v5911_v14  ;;  %v651_v14 = vld [vmem:[%s7051_s27] sm:$0xff]  ;;  %v5935_v16 = vpack.c.bf16 %v5181_v13, %v5179_v11  ;;  %v5941_v29 = vpack.c.bf16 %v5184_v25, %v5182_v24  ;;  %v5188_v32 = vld [vmem:[%s9304_s1 + $0x1f0] sm:$0xff]  ;;  %v5255_v47 = vld [vmem:[%s9304_s1 + $0x248] sm:$0xff] }
  0x53   : > { %v5186_v31 = vld [vmem:[%s9304_s1 + $0x1e0] sm:$0xff]  ;;  %v5192_v38 = vld [vmem:[%s9304_s1 + $0x210] sm:$0xff]  ;;  %v5259_v13 = vld [vmem:[%s9304_s1 + $0x268] sm:$0xff] }
  0x54   : > { %5091 = vmatmul.mubr.msk.f32.gmra.mrb[2].mxu0 %vm757_vm0, %v7072_v19  ;;  %v5190_v37 = vld [vmem:[%s9304_s1 + $0x200] sm:$0xff]  ;;  %v5196_v46 = vld [vmem:[%s9304_s1 + $0x230] sm:$0xff] }
  0x55   : > { %918 = vmatprep.mubr.f32.mxu0 %v6748_v39  ;;  %5914 = vmatpush1.bf16.msra.mxu0 %v5913_v20  ;;  %v5183_v20 = vld [vmem:[%s9304_s1 + $0x1c8] sm:$0xff]  ;;  %v5194_v45 = vld [vmem:[%s9304_s1 + $0x220] sm:$0xff]  ;;  %v5256_v11 = vld [vmem:[%s9304_s1 + $0x250] sm:$0xff] }
  0x56   : > { %5916 = vmatprep.subr.bf16.mxu0 %v5915_v21  ;;  %v5185_v21 = vld [vmem:[%s9304_s1 + $0x1d8] sm:$0xff]  ;;  %v5254_v10 = vld [vmem:[%s9304_s1 + $0x240] sm:$0xff]  ;;  %v5260_v18 = vld [vmem:[%s9304_s1 + $0x270] sm:$0xff] }
  0x57   : > { %v5939_v23 = vpack.c.bf16 %v5185_v21, %v5183_v20  ;;  %v5258_v17 = vld [vmem:[%s9304_s1 + $0x260] sm:$0xff]  ;;  %v5263_v20 = vld [vmem:[%s9304_s1 + $0x288] sm:$0xff]  ;;  %v5265_v21 = vld [vmem:[%s9304_s1 + $0x298] sm:$0xff] }
  0x58   : > { %5092 = vmatmul.mubr.msk.f32.gmra.mrb[4].mxu0 %vm757_vm0, %v7090_v26  ;;  %v5262_v24 = vld [vmem:[%s9304_s1 + $0x280] sm:$0xff]  ;;  %v5264_v25 = vld [vmem:[%s9304_s1 + $0x290] sm:$0xff] }
  0x59   : > { %924 = vmatprep.mubr.f32.mxu0 %v6748_v39  ;;  %5918 = vmatpush1.bf16.msra.mxu0 %v5917_v27  ;;  %v5187_v27 = vld [vmem:[%s9304_s1 + $0x1e8] sm:$0xff] }
  0x5a   : > { %5920 = vmatprep.subr.bf16.mxu0 %v5919_v28  ;;  %v5189_v28 = vld [vmem:[%s9304_s1 + $0x1f8] sm:$0xff] }
  0x5b   : > { %v5943_v30 = vpack.c.bf16 %v5189_v28, %v5187_v27  ;;  %v5267_v27 = vld [vmem:[%s9304_s1 + $0x2a8] sm:$0xff]  ;;  %v5965_v28 = vpack.c.bf16 %v5264_v25, %v5262_v24  ;;  %v5342_v24 = vld [vmem:[%s9304_s1 + $0x340] sm:$0xff]  ;;  %v5344_v25 = vld [vmem:[%s9304_s1 + $0x350] sm:$0xff] }
  0x5c   : > { %5093 = vmatmul.mubr.msk.f32.gmra.mrb[6].mxu0 %vm757_vm0, %v7108_v33 }
  0x5d   : > { %930 = vmatprep.mubr.f32.mxu0 %v6748_v39  ;;  %5922 = vmatpush1.bf16.msra.mxu0 %v5921_v34  ;;  %v5191_v34 = vld [vmem:[%s9304_s1 + $0x208] sm:$0xff] }
  0x5e   : > { %5924 = vmatprep.subr.bf16.mxu0 %v5923_v35  ;;  %v5945_v35 = vpack.c.bf16 %v5188_v32, %v5186_v31  ;;  %v5268_v31 = vld [vmem:[%s9304_s1 + $0x2b0] sm:$0xff]  ;;  %v5271_v32 = vld [vmem:[%s9304_s1 + $0x2c8] sm:$0xff] }
  0x60   : > { %5094 = vmatmul.mubr.msk.f32.gmra.mrb[8].mxu0 %vm757_vm0, %v7126_v41 }
  0x61   : > { %936 = vmatprep.mubr.f32.mxu0 %v6748_v39  ;;  %5926 = vmatpush1.bf16.msra.mxu0 %v5925_v42  ;;  %v5197_v42 = vld [vmem:[%s9304_s1 + $0x238] sm:$0xff] }
  0x62   : > { %5928 = vmatprep.subr.bf16.mxu0 %v5927_v43  ;;  %v5949_v43 = vpack.c.bf16 %v5192_v38, %v5190_v37  ;;  %v5951_v44 = vpack.c.bf16 %v5197_v42, %v5195_v40  ;;  %v5272_v37 = vld [vmem:[%s9304_s1 + $0x2d0] sm:$0xff]  ;;  %v5275_v38 = vld [vmem:[%s9304_s1 + $0x2e8] sm:$0xff]  ;;  %v5277_v40 = vld [vmem:[%s9304_s1 + $0x2f8] sm:$0xff] }
  0x64   : > { %5095 = vmatmul.mubr.msk.f32.gmra.mrb[10].mxu0 %vm757_vm0, %v7144_v48 }
  0x65   : > { %942 = vmatprep.mubr.f32.mxu0 %v6748_v39  ;;  %5930 = vmatpush1.bf16.msra.mxu0 %v5929_v49  ;;  %v5257_v49 = vld [vmem:[%s9304_s1 + $0x258] sm:$0xff] }
  0x66   : > { %5932 = vmatprep.subr.bf16.mxu0 %v5931_v50  ;;  %v5953_v50 = vpack.c.bf16 %v5196_v46, %v5194_v45  ;;  %v5955_v9 = vpack.c.bf16 %v5257_v49, %v5255_v47  ;;  %v5276_v45 = vld [vmem:[%s9304_s1 + $0x2f0] sm:$0xff]  ;;  %v5335_v46 = vld [vmem:[%s9304_s1 + $0x308] sm:$0xff]  ;;  %v5337_v47 = vld [vmem:[%s9304_s1 + $0x318] sm:$0xff] }
  0x68   : > { %5096 = vmatmul.mubr.msk.f32.gmra.mrb[12].mxu0 %vm757_vm0, %v7150_v51 }
  0x69   : > { %948 = vmatprep.mubr.f32.mxu0 %v6748_v39 }
  0x6c   : > { %5097 = vmatmul.mubr.msk.f32.gmra.mrb[14].mxu0 %vm757_vm0, %v7156_v52 }
  0x6d   : > { %954 = vmatprep.mubr.f32.mxu0 %v6748_v39 }
  0x70   : > { %5098 = vmatmul.mubr.msk.f32.gmra.mrb[16].mxu0 %vm757_vm0, %v7162_v53 }
  0x71   : > { %960 = vmatprep.mubr.f32.mxu0 %v6748_v39 }
  0x74   : > { %5099 = vmatmul.mubr.msk.f32.gmra.mrb[18].mxu0 %vm757_vm0, %v7168_v54 }
  0x75   : > { %966 = vmatprep.mubr.f32.mxu0 %v6748_v39 }
  0x78   : > { %5100 = vmatmul.mubr.msk.f32.gmra.mrb[20].mxu0 %vm757_vm0, %v7174_v55 }
  0x79   : > { %972 = vmatprep.mubr.f32.mxu0 %v6748_v39 }
  0x7c   : > { %5101 = vmatmul.mubr.msk.f32.gmra.mrb[22].mxu0 %vm757_vm0, %v7180_v56 }
  0x7d   : > { %978 = vmatprep.mubr.f32.mxu0 %v6748_v39 }
  0x80   : > { %5102 = vmatmul.mubr.msk.f32.gmra.mrb[24].mxu0 %vm757_vm0, %v7186_v57 }
  0x81   : > { %984 = vmatprep.mubr.f32.mxu0 %v6748_v39 }
  0x84   : > { %5103 = vmatmul.mubr.msk.f32.gmra.mrb[26].mxu0 %vm757_vm0, %v7192_v58 }
  0x85   : > { %990 = vmatprep.mubr.f32.mxu0 %v6748_v39 }
  0x88   : > { %5104 = vmatmul.mubr.msk.f32.gmra.mrb[28].mxu0 %vm757_vm0, %v7198_v59 }
  0x89   : > { %996 = vmatprep.mubr.f32.mxu0 %v6748_v39 }
  0x8c   : > { %5105 = vmatmul.mubr.msk.f32.gmra.mrb[30].mxu0 %vm757_vm0, %v7204_v60 }
  0x8d   : > { %1002 = vmatprep.mubr.f32.mxu0 %v6748_v39 }
  0x90   : > { %5106 = vmatmul.mubr.msk.f32.gmra.mrb[32].mxu0 %vm757_vm0, %v7210_v61 }
  0x91   : > { %1008 = vmatprep.mubr.f32.mxu0 %v6748_v39 }
  0x94   : > { %5107 = vmatmul.mubr.msk.f32.gmra.mrb[34].mxu0 %vm757_vm0, %v7216_v62 }
  0x95   : > { %1014 = vmatprep.mubr.f32.mxu0 %v6748_v39 }
  0x98   : > { %5108 = vmatmul.mubr.msk.f32.gmra.mrb[36].mxu0 %vm757_vm0, %v7222_v63 }
  0x99   : > { %1020 = vmatprep.mubr.f32.mxu0 %v6748_v39 }
  0x9c   : > { %5109 = vmatmul.mubr.msk.f32.gmra.mrb[38].mxu0 %vm757_vm0, %v7228_v0 }
  0x9d   : > { %1026 = vmatprep.mubr.f32.mxu0 %v6748_v39 }
  0xa0   : > { %5110 = vmatmul.mubr.msk.f32.gmra.mrb[40].mxu0 %vm757_vm0, %v7234_v1 }
  0xa1   : > { %1032 = vmatprep.mubr.f32.mxu0 %v6748_v39 }
  0xa4   : > { %5111 = vmatmul.mubr.msk.f32.gmra.mrb[42].mxu0 %vm757_vm0, %v7240_v2 }
  0xa5   : > { %1038 = vmatprep.mubr.f32.mxu0 %v6748_v39 }
  0xa8   : > { %5112 = vmatmul.mubr.msk.f32.gmra.mrb[44].mxu0 %vm757_vm0, %v7246_v3 }
  0xa9   : > { %1044 = vmatprep.mubr.f32.mxu0 %v6748_v39 }
  0xac   : > { %5113 = vmatmul.mubr.msk.f32.gmra.mrb[46].mxu0 %vm757_vm0, %v7252_v4 }
  0xad   : > { %1050 = vmatprep.mubr.f32.mxu0 %v6748_v39 }
  0xb0   : > { %5114 = vmatmul.mubr.msk.f32.gmra.mrb[48].mxu0 %vm757_vm0, %v7258_v5 }
  0xb1   : > { %1056 = vmatprep.mubr.f32.mxu0 %v6748_v39 }
  0xb4   : > { %5115 = vmatmul.mubr.msk.f32.gmra.mrb[50].mxu0 %vm757_vm0, %v7264_v6 }
  0xb5   : > { %1062 = vmatprep.mubr.f32.mxu0 %v6748_v39 }
  0xb8   : > { %5116 = vmatmul.mubr.msk.f32.gmra.mrb[52].mxu0 %vm757_vm0, %v7270_v7 }
  0xb9   : > { %1068 = vmatprep.mubr.f32.mxu0 %v6748_v39 }
  0xbc   : > { %5117 = vmatmul.mubr.msk.f32.gmra.mrb[54].mxu0 %vm757_vm0, %v7276_v8 }
  0xbd   : > { %1223 = vmatprep.mubr.f32.mxu0 %v6748_v39 }
  0xc0   : > { %5118 = vmatmul.mubr.msk.f32.vlgmr.msra.gmra.mrb[0].mxu0 %vm757_vm0, %v651_v14  ;;  %v5261_v14 = vld [vmem:[%s9304_s1 + $0x278] sm:$0xff] }
  0xc1   : > { %5934 = vmatpush1.bf16.msra.mxu0 %v5933_v15  ;;  %1229 = vmatprep.mubr.f32.mxu0 %v6748_v39  ;;  %v5957_v15 = vpack.c.bf16 %v5256_v11, %v5254_v10  ;;  %v5334_v10 = vld [vmem:[%s9304_s1 + $0x300] sm:$0xff]  ;;  %v5336_v11 = vld [vmem:[%s9304_s1 + $0x310] sm:$0xff] }
  0xc2   : > { %5936 = vmatprep.subr.bf16.mxu0 %v5935_v16  ;;  %v5959_v16 = vpack.c.bf16 %v5261_v14, %v5259_v13  ;;  %v5339_v13 = vld [vmem:[%s9304_s1 + $0x328] sm:$0xff]  ;;  %v5341_v14 = vld [vmem:[%s9304_s1 + $0x338] sm:$0xff] }
  0xc4   : > { %5119 = vmatmul.mubr.msk.f32.gmra.mrb[2].mxu0 %vm757_vm0, %v7054_v12  ;;  %v5193_v12 = vld [vmem:[%s9304_s1 + $0x218] sm:$0xff] }
  0xc5   : > { %1235 = vmatprep.mubr.f32.mxu0 %v6748_v39  ;;  %5938 = vmatpush1.bf16.msra.mxu0 %v5937_v22  ;;  %v5947_v36 = vpack.c.bf16 %v5193_v12, %v5191_v34  ;;  %v5961_v22 = vpack.c.bf16 %v5260_v18, %v5258_v17  ;;  %v5273_v34 = vld [vmem:[%s9304_s1 + $0x2d8] sm:$0xff]  ;;  %v5338_v17 = vld [vmem:[%s9304_s1 + $0x320] sm:$0xff]  ;;  %v5340_v18 = vld [vmem:[%s9304_s1 + $0x330] sm:$0xff] }
  0xc6   : > { %5940 = vmatprep.subr.bf16.mxu0 %v5939_v23  ;;  %v5963_v23 = vpack.c.bf16 %v5265_v21, %v5263_v20  ;;  %v5343_v20 = vld [vmem:[%s9304_s1 + $0x348] sm:$0xff]  ;;  %v5345_v21 = vld [vmem:[%s9304_s1 + $0x358] sm:$0xff] }
  0xc8   : > { %5120 = vmatmul.mubr.msk.f32.gmra.mrb[4].mxu0 %vm757_vm0, %v7072_v19 }
  0xc9   : > { %1241 = vmatprep.mubr.f32.mxu0 %v6748_v39  ;;  %5942 = vmatpush1.bf16.msra.mxu0 %v5941_v29 }
  0xca   : > { %5944 = vmatprep.subr.bf16.mxu0 %v5943_v30  ;;  %v5266_v30 = vld [vmem:[%s9304_s1 + $0x2a0] sm:$0xff] }
  0xcb   : > { %v5969_v12 = vpack.c.bf16 %v5268_v31, %v5266_v30  ;;  %v5348_v30 = vld [vmem:[%s9304_s1 + $0x370] sm:$0xff]  ;;  %v5351_v31 = vld [vmem:[%s9304_s1 + $0x388] sm:$0xff] }
  0xcc   : > { %5121 = vmatmul.mubr.msk.f32.gmra.mrb[6].mxu0 %vm757_vm0, %v7090_v26 }
  0xcd   : > { %1247 = vmatprep.mubr.f32.mxu0 %v6748_v39  ;;  %5946 = vmatpush1.bf16.msra.mxu0 %v5945_v35  ;;  %v5971_v35 = vpack.c.bf16 %v5273_v34, %v5271_v32  ;;  %v5353_v32 = vld [vmem:[%s9304_s1 + $0x398] sm:$0xff] }
  0xce   : > { %5948 = vmatprep.subr.bf16.mxu0 %v5947_v36  ;;  %v5270_v36 = vld [vmem:[%s9304_s1 + $0x2c0] sm:$0xff] }
  0xcf   : > { %v5973_v42 = vpack.c.bf16 %v5272_v37, %v5270_v36  ;;  %v5352_v36 = vld [vmem:[%s9304_s1 + $0x390] sm:$0xff]  ;;  %v5355_v37 = vld [vmem:[%s9304_s1 + $0x3a8] sm:$0xff] }
  0xd0   : > { %5122 = vmatmul.mubr.msk.f32.gmra.mrb[8].mxu0 %vm757_vm0, %v7108_v33 }
  0xd1   : > { %1253 = vmatprep.mubr.f32.mxu0 %v6748_v39  ;;  %5950 = vmatpush1.bf16.msra.mxu0 %v5949_v43  ;;  %v5975_v43 = vpack.c.bf16 %v5277_v40, %v5275_v38  ;;  %v5357_v38 = vld [vmem:[%s9304_s1 + $0x3b8] sm:$0xff] }
  0xd2   : > { %5952 = vmatprep.subr.bf16.mxu0 %v5951_v44  ;;  %v5274_v44 = vld [vmem:[%s9304_s1 + $0x2e0] sm:$0xff] }
  0xd3   : > { %v5977_v49 = vpack.c.bf16 %v5276_v45, %v5274_v44  ;;  %v5356_v44 = vld [vmem:[%s9304_s1 + $0x3b0] sm:$0xff] }
  0xd4   : > { %5123 = vmatmul.mubr.msk.f32.gmra.mrb[10].mxu0 %vm757_vm0, %v7126_v41 }
  0xd5   : > { %1259 = vmatprep.mubr.f32.mxu0 %v6748_v39  ;;  %5954 = vmatpush1.bf16.msra.mxu0 %v5953_v50  ;;  %v5979_v50 = vpack.c.bf16 %v5337_v47, %v5335_v46  ;;  %v2769_v46 = vld [vmem:[%s9306_s3] sm:$0xff]  ;;  %v2770_v47 = vld [vmem:[%s9306_s3 + $0x8] sm:$0xff] }
  0xd6   : > { %5956 = vmatprep.subr.bf16.mxu0 %v5955_v9  ;;  %v7591_v9 = vld [vmem:[%s7051_s27 + $0xe8] sm:$0xff] }
  0xd8   : > { %5124 = vmatmul.mubr.msk.f32.gmra.mrb[12].mxu0 %vm757_vm0, %v7144_v48 }
  0xd9   : > { %1265 = vmatprep.mubr.f32.mxu0 %v6748_v39 }
  0xdc   : > { %5125 = vmatmul.mubr.msk.f32.gmra.mrb[14].mxu0 %vm757_vm0, %v7150_v51 }
  0xdd   : > { %1271 = vmatprep.mubr.f32.mxu0 %v6748_v39 }
  0xe0   : > { %5126 = vmatmul.mubr.msk.f32.gmra.mrb[16].mxu0 %vm757_vm0, %v7156_v52 }
  0xe1   : > { %1277 = vmatprep.mubr.f32.mxu0 %v6748_v39 }
  0xe4   : > { %5127 = vmatmul.mubr.msk.f32.gmra.mrb[18].mxu0 %vm757_vm0, %v7162_v53 }
  0xe5   : > { %1283 = vmatprep.mubr.f32.mxu0 %v6748_v39 }
  0xe8   : > { %5128 = vmatmul.mubr.msk.f32.gmra.mrb[20].mxu0 %vm757_vm0, %v7168_v54 }
  0xe9   : > { %1289 = vmatprep.mubr.f32.mxu0 %v6748_v39 }
  0xec   : > { %5129 = vmatmul.mubr.msk.f32.gmra.mrb[22].mxu0 %vm757_vm0, %v7174_v55 }
  0xed   : > { %1295 = vmatprep.mubr.f32.mxu0 %v6748_v39 }
  0xf0   : > { %5130 = vmatmul.mubr.msk.f32.gmra.mrb[24].mxu0 %vm757_vm0, %v7180_v56 }
  0xf1   : > { %1301 = vmatprep.mubr.f32.mxu0 %v6748_v39 }
  0xf4   : > { %5131 = vmatmul.mubr.msk.f32.gmra.mrb[26].mxu0 %vm757_vm0, %v7186_v57 }
  0xf5   : > { %1307 = vmatprep.mubr.f32.mxu0 %v6748_v39 }
  0xf8   : > { %5132 = vmatmul.mubr.msk.f32.gmra.mrb[28].mxu0 %vm757_vm0, %v7192_v58 }
  0xf9   : > { %1313 = vmatprep.mubr.f32.mxu0 %v6748_v39 }
  0xfc   : > { %5133 = vmatmul.mubr.msk.f32.gmra.mrb[30].mxu0 %vm757_vm0, %v7198_v59 }
  0xfd   : > { %1319 = vmatprep.mubr.f32.mxu0 %v6748_v39 }
 0x100   : > { %5134 = vmatmul.mubr.msk.f32.gmra.mrb[32].mxu0 %vm757_vm0, %v7204_v60 }
 0x101   : > { %1325 = vmatprep.mubr.f32.mxu0 %v6748_v39 }
 0x104   : > { %5135 = vmatmul.mubr.msk.f32.gmra.mrb[34].mxu0 %vm757_vm0, %v7210_v61 }
 0x105   : > { %1331 = vmatprep.mubr.f32.mxu0 %v6748_v39 }
 0x108   : > { %5136 = vmatmul.mubr.msk.f32.gmra.mrb[36].mxu0 %vm757_vm0, %v7216_v62 }
 0x109   : > { %1337 = vmatprep.mubr.f32.mxu0 %v6748_v39 }
 0x10c   : > { %5137 = vmatmul.mubr.msk.f32.gmra.mrb[38].mxu0 %vm757_vm0, %v7222_v63 }
 0x10d   : > { %1343 = vmatprep.mubr.f32.mxu0 %v6748_v39 }
 0x110   : > { %5138 = vmatmul.mubr.msk.f32.gmra.mrb[40].mxu0 %vm757_vm0, %v7228_v0 }
 0x111   : > { %1349 = vmatprep.mubr.f32.mxu0 %v6748_v39 }
 0x114   : > { %5139 = vmatmul.mubr.msk.f32.gmra.mrb[42].mxu0 %vm757_vm0, %v7234_v1 }
 0x115   : > { %1355 = vmatprep.mubr.f32.mxu0 %v6748_v39 }
 0x118   : > { %5140 = vmatmul.mubr.msk.f32.gmra.mrb[44].mxu0 %vm757_vm0, %v7240_v2 }
 0x119   : > { %1361 = vmatprep.mubr.f32.mxu0 %v6748_v39 }
 0x11c   : > { %5141 = vmatmul.mubr.msk.f32.gmra.mrb[46].mxu0 %vm757_vm0, %v7246_v3 }
 0x11d   : > { %1367 = vmatprep.mubr.f32.mxu0 %v6748_v39 }
 0x120   : > { %5142 = vmatmul.mubr.msk.f32.gmra.mrb[48].mxu0 %vm757_vm0, %v7252_v4 }
 0x121   : > { %1373 = vmatprep.mubr.f32.mxu0 %v6748_v39 }
 0x124   : > { %5143 = vmatmul.mubr.msk.f32.gmra.mrb[50].mxu0 %vm757_vm0, %v7258_v5 }
 0x125   : > { %1379 = vmatprep.mubr.f32.mxu0 %v6748_v39 }
 0x128   : > { %5144 = vmatmul.mubr.msk.f32.gmra.mrb[52].mxu0 %vm757_vm0, %v7264_v6 }
 0x129   : > { %1385 = vmatprep.mubr.f32.mxu0 %v6748_v39 }
 0x12c   : > { %5145 = vmatmul.mubr.msk.f32.gmra.mrb[54].mxu0 %vm757_vm0, %v7270_v7 }
 0x12d   : > { %1594 = vmatprep.mubr.f32.mxu0 %v6748_v39 }
 0x130   : > { %5198 = vmatmul.mubr.msk.f32.vlgmr.msra.gmra.mrb[0].mxu0 %vm757_vm0, %v7072_v19  ;;  %v5269_v19 = vld [vmem:[%s9304_s1 + $0x2b8] sm:$0xff] }
 0x131   : > { %5958 = vmatpush1.bf16.msra.mxu0 %v5957_v15  ;;  %1600 = vmatprep.mubr.f32.mxu0 %v6748_v39  ;;  %v5967_v29 = vpack.c.bf16 %v5269_v19, %v5267_v27  ;;  %v5981_v15 = vpack.c.bf16 %v5336_v11, %v5334_v10  ;;  %v5347_v27 = vld [vmem:[%s9304_s1 + $0x368] sm:$0xff]  ;;  %v5989_v19 = vpack.c.bf16 %v5344_v25, %v5342_v24  ;;  %v2772_v11 = vld [vmem:[%s9306_s3 + $0x18] sm:$0xff]  ;;  %v2779_v25 = vld [vmem:[%s9306_s3 + $0x50] sm:$0xff] }
 0x132   : > { %5960 = vmatprep.subr.bf16.mxu0 %v5959_v16  ;;  %v5983_v16 = vpack.c.bf16 %v5341_v14, %v5339_v13  ;;  %v6004_v10 = vpack.c.bf16 %v2770_v47, %v2769_v46  ;;  %v2773_v14 = vld [vmem:[%s9306_s3 + $0x20] sm:$0xff]  ;;  %v2973_v47 = vld [vmem:[%s9307_s4 + $0x28] sm:$0xff] }
 0x133   : > { %v2972_v46 = vld [vmem:[%s9307_s4 + $0x20] sm:$0xff] }
 0x134   : > { %5199 = vmatmul.mubr.msk.f32.gmra.mrb[2].mxu0 %vm757_vm0, %v7090_v26 }
 0x135   : > { %1606 = vmatprep.mubr.f32.mxu0 %v6748_v39  ;;  %5962 = vmatpush1.bf16.msra.mxu0 %v5961_v22  ;;  %v5985_v22 = vpack.c.bf16 %v5340_v18, %v5338_v17  ;;  %v2775_v17 = vld [vmem:[%s9306_s3 + $0x30] sm:$0xff]  ;;  %v2776_v18 = vld [vmem:[%s9306_s3 + $0x38] sm:$0xff] }
 0x136   : > { %5964 = vmatprep.subr.bf16.mxu0 %v5963_v23  ;;  %v5987_v23 = vpack.c.bf16 %v5345_v21, %v5343_v20  ;;  %v6013_v20 = vpack.c.bf16 %v2776_v18, %v2775_v17  ;;  %v2777_v21 = vld [vmem:[%s9306_s3 + $0x40] sm:$0xff]  ;;  %v2974_v17 = vld [vmem:[%s9307_s4 + $0x30] sm:$0xff]  ;;  %v2975_v18 = vld [vmem:[%s9307_s4 + $0x38] sm:$0xff] }
 0x138   : > { %5200 = vmatmul.mubr.msk.f32.gmra.mrb[4].mxu0 %vm757_vm0, %v7108_v33 }
 0x139   : > { %1612 = vmatprep.mubr.f32.mxu0 %v6748_v39  ;;  %5966 = vmatpush1.bf16.msra.mxu0 %v5965_v28 }
 0x13a   : > { %5968 = vmatprep.subr.bf16.mxu0 %v5967_v29  ;;  %v5346_v29 = vld [vmem:[%s9304_s1 + $0x360] sm:$0xff] }
 0x13b   : > { %v5993_v34 = vpack.c.bf16 %v5348_v30, %v5346_v29  ;;  %v2784_v30 = vld [vmem:[%s9306_s3 + $0x78] sm:$0xff] }
 0x13c   : > { %5201 = vmatmul.mubr.msk.f32.gmra.mrb[6].mxu0 %vm757_vm0, %v7126_v41 }
 0x13d   : > { %1618 = vmatprep.mubr.f32.mxu0 %v6748_v39  ;;  %5970 = vmatpush1.bf16.msra.mxu0 %v5969_v12  ;;  %v5995_v12 = vpack.c.bf16 %v5353_v32, %v5351_v31 }
 0x13e   : > { %5972 = vmatprep.subr.bf16.mxu0 %v5971_v35  ;;  %v5350_v35 = vld [vmem:[%s9304_s1 + $0x380] sm:$0xff] }
 0x13f   : > { %v5997_v40 = vpack.c.bf16 %v5352_v36, %v5350_v35 }
 0x140   : > { %5202 = vmatmul.mubr.msk.f32.gmra.mrb[8].mxu0 %vm757_vm0, %v7144_v48 }
 0x141   : > { %1624 = vmatprep.mubr.f32.mxu0 %v6748_v39  ;;  %5974 = vmatpush1.bf16.msra.mxu0 %v5973_v42  ;;  %v5999_v42 = vpack.c.bf16 %v5357_v38, %v5355_v37  ;;  %v2970_v37 = vld [vmem:[%s9307_s4 + $0x10] sm:$0xff]  ;;  %v2971_v38 = vld [vmem:[%s9307_s4 + $0x18] sm:$0xff] }
 0x142   : > { %5976 = vmatprep.subr.bf16.mxu0 %v5975_v43  ;;  %v5354_v43 = vld [vmem:[%s9304_s1 + $0x3a0] sm:$0xff] }
 0x143   : > { %v6001_v45 = vpack.c.bf16 %v5356_v44, %v5354_v43 }
 0x144   : > { %5203 = vmatmul.mubr.msk.f32.gmra.mrb[10].mxu0 %vm757_vm0, %v7150_v51 }
 0x145   : > { %1630 = vmatprep.mubr.f32.mxu0 %v6748_v39  ;;  %5978 = vmatpush1.bf16.msra.mxu0 %v5977_v49  ;;  %v2771_v49 = vld [vmem:[%s9306_s3 + $0x10] sm:$0xff] }
 0x146   : > { %5980 = vmatprep.subr.bf16.mxu0 %v5979_v50  ;;  %v6749_v50 = vmov 0.0|0.0   ;;  %v6007_v13 = vpack.c.bf16 %v2772_v11, %v2771_v49 }
 0x147   : > { %6003 = vmatprep.subr.bf16.mxu1 %v6749_v50 }
 0x148   : > { %5204 = vmatmul.mubr.msk.f32.gmra.mrb[12].mxu0 %vm757_vm0, %v7156_v52  ;;  %6005 = vmatpush1.bf16.msra.mxu1 %v6004_v10 }
 0x149   : > { %1636 = vmatprep.mubr.f32.mxu0 %v6748_v39  ;;  %6006 = vmatprep.subr.bf16.mxu1 %v6749_v50 }
 0x14c   : > { %5205 = vmatmul.mubr.msk.f32.gmra.mrb[14].mxu0 %vm757_vm0, %v7162_v53  ;;  %6008 = vmatpush1.bf16.msra.mxu1 %v6007_v13 }
 0x14d   : > { %1642 = vmatprep.mubr.f32.mxu0 %v6748_v39  ;;  %6009 = vmatprep.subr.bf16.mxu1 %v6749_v50 }
 0x150   : > { %5206 = vmatmul.mubr.msk.f32.gmra.mrb[16].mxu0 %vm757_vm0, %v7168_v54 }
 0x151   : > { %1648 = vmatprep.mubr.f32.mxu0 %v6748_v39 }
 0x154   : > { %5207 = vmatmul.mubr.msk.f32.gmra.mrb[18].mxu0 %vm757_vm0, %v7174_v55 }
 0x155   : > { %1654 = vmatprep.mubr.f32.mxu0 %v6748_v39 }
 0x158   : > { %5208 = vmatmul.mubr.msk.f32.gmra.mrb[20].mxu0 %vm757_vm0, %v7180_v56 }
 0x159   : > { %1660 = vmatprep.mubr.f32.mxu0 %v6748_v39 }
 0x15c   : > { %5209 = vmatmul.mubr.msk.f32.gmra.mrb[22].mxu0 %vm757_vm0, %v7186_v57 }
 0x15d   : > { %1666 = vmatprep.mubr.f32.mxu0 %v6748_v39 }
 0x160   : > { %5210 = vmatmul.mubr.msk.f32.gmra.mrb[24].mxu0 %vm757_vm0, %v7192_v58 }
 0x161   : > { %1672 = vmatprep.mubr.f32.mxu0 %v6748_v39 }
 0x164   : > { %5211 = vmatmul.mubr.msk.f32.gmra.mrb[26].mxu0 %vm757_vm0, %v7198_v59 }
 0x165   : > { %1678 = vmatprep.mubr.f32.mxu0 %v6748_v39 }
 0x168   : > { %5212 = vmatmul.mubr.msk.f32.gmra.mrb[28].mxu0 %vm757_vm0, %v7204_v60 }
 0x169   : > { %1684 = vmatprep.mubr.f32.mxu0 %v6748_v39 }
 0x16c   : > { %5213 = vmatmul.mubr.msk.f32.gmra.mrb[30].mxu0 %vm757_vm0, %v7210_v61 }
 0x16d   : > { %1690 = vmatprep.mubr.f32.mxu0 %v6748_v39 }
 0x170   : > { %5214 = vmatmul.mubr.msk.f32.gmra.mrb[32].mxu0 %vm757_vm0, %v7216_v62 }
 0x171   : > { %1696 = vmatprep.mubr.f32.mxu0 %v6748_v39 }
 0x174   : > { %5215 = vmatmul.mubr.msk.f32.gmra.mrb[34].mxu0 %vm757_vm0, %v7222_v63 }
 0x175   : > { %1702 = vmatprep.mubr.f32.mxu0 %v6748_v39 }
 0x178   : > { %5216 = vmatmul.mubr.msk.f32.gmra.mrb[36].mxu0 %vm757_vm0, %v7228_v0 }
 0x179   : > { %1708 = vmatprep.mubr.f32.mxu0 %v6748_v39 }
 0x17c   : > { %5217 = vmatmul.mubr.msk.f32.gmra.mrb[38].mxu0 %vm757_vm0, %v7234_v1 }
 0x17d   : > { %1714 = vmatprep.mubr.f32.mxu0 %v6748_v39 }
 0x180   : > { %5218 = vmatmul.mubr.msk.f32.gmra.mrb[40].mxu0 %vm757_vm0, %v7240_v2 }
 0x181   : > { %1720 = vmatprep.mubr.f32.mxu0 %v6748_v39 }
 0x184   : > { %5219 = vmatmul.mubr.msk.f32.gmra.mrb[42].mxu0 %vm757_vm0, %v7246_v3 }
 0x185   : > { %1726 = vmatprep.mubr.f32.mxu0 %v6748_v39 }
 0x188   : > { %5220 = vmatmul.mubr.msk.f32.gmra.mrb[44].mxu0 %vm757_vm0, %v7252_v4 }
 0x189   : > { %1732 = vmatprep.mubr.f32.mxu0 %v6748_v39 }
 0x18c   : > { %5221 = vmatmul.mubr.msk.f32.gmra.mrb[46].mxu0 %vm757_vm0, %v7258_v5 }
 0x18d   : > { %1738 = vmatprep.mubr.f32.mxu0 %v6748_v39 }
 0x190   : > { %5222 = vmatmul.mubr.msk.f32.gmra.mrb[48].mxu0 %vm757_vm0, %v7264_v6 }
 0x191   : > { %1744 = vmatprep.mubr.f32.mxu0 %v6748_v39 }
 0x194   : > { %5223 = vmatmul.mubr.msk.f32.gmra.mrb[50].mxu0 %vm757_vm0, %v7270_v7 }
 0x195   : > { %1750 = vmatprep.mubr.f32.mxu0 %v6748_v39 }
 0x198   : > { %5224 = vmatmul.mubr.msk.f32.gmra.mrb[52].mxu0 %vm757_vm0, %v7276_v8 }
 0x199   : > { %1756 = vmatprep.mubr.f32.mxu0 %v6748_v39 }
 0x19c   : > { %5225 = vmatmul.mubr.msk.f32.gmra.mrb[54].mxu0 %vm757_vm0, %v7591_v9 }
 0x19d   : > { %2021 = vmatprep.mubr.f32.mxu0 %v6748_v39 }
 0x1a0   : > { %5278 = vmatmul.mubr.msk.f32.vlgmr.msra.gmra.mrb[0].mxu0 %vm757_vm0, %v7090_v26  ;;  %v5349_v26 = vld [vmem:[%s9304_s1 + $0x378] sm:$0xff] }
 0x1a1   : > { %5982 = vmatpush1.bf16.msra.mxu0 %v5981_v15  ;;  %2027 = vmatprep.mubr.f32.mxu0 %v6748_v39  ;;  %v5991_v28 = vpack.c.bf16 %v5349_v26, %v5347_v27  ;;  %v2774_v15 = vld [vmem:[%s9306_s3 + $0x28] sm:$0xff]  ;;  %v2780_v27 = vld [vmem:[%s9306_s3 + $0x58] sm:$0xff] }
 0x1a2   : > { %5984 = vmatprep.subr.bf16.mxu0 %v5983_v16  ;;  %v6010_v16 = vpack.c.bf16 %v2774_v15, %v2773_v14  ;;  %v6019_v26 = vpack.c.bf16 %v2780_v27, %v2779_v25  ;;  %v6040_v15 = vpack.c.bf16 %v2973_v47, %v2972_v46  ;;  %v2976_v25 = vld [vmem:[%s9307_s4 + $0x40] sm:$0xff]  ;;  %v2977_v27 = vld [vmem:[%s9307_s4 + $0x48] sm:$0xff] }
 0x1a4   : > { %5279 = vmatmul.mubr.msk.f32.gmra.mrb[2].mxu0 %vm757_vm0, %v7108_v33  ;;  %6011 = vmatpush1.bf16.msra.mxu1 %v6010_v16 }
 0x1a5   : > { %2033 = vmatprep.mubr.f32.mxu0 %v6748_v39  ;;  %5986 = vmatpush1.bf16.msra.mxu0 %v5985_v22  ;;  %v2778_v22 = vld [vmem:[%s9306_s3 + $0x48] sm:$0xff] }
 0x1a6   : > { %5988 = vmatprep.subr.bf16.mxu0 %v5987_v23  ;;  %6012 = vmatprep.subr.bf16.mxu1 %v6749_v50  ;;  %v7778_v23 = vld [vmem:[%s7051_s27 + $0xf0] sm:$0xff]  ;;  %v6016_v24 = vpack.c.bf16 %v2778_v22, %v2777_v21  ;;  %v6043_v21 = vpack.c.bf16 %v2975_v18, %v2974_v17 }
 0x1a8   : > { %5280 = vmatmul.mubr.msk.f32.gmra.mrb[4].mxu0 %vm757_vm0, %v7126_v41  ;;  %6014 = vmatpush1.bf16.msra.mxu1 %v6013_v20 }
 0x1a9   : > { %2039 = vmatprep.mubr.f32.mxu0 %v6748_v39  ;;  %5990 = vmatpush1.bf16.msra.mxu0 %v5989_v19  ;;  %v2781_v19 = vld [vmem:[%s9306_s3 + $0x60] sm:$0xff] }
 0x1aa   : > { %5992 = vmatprep.subr.bf16.mxu0 %v5991_v28  ;;  %6015 = vmatprep.subr.bf16.mxu1 %v6749_v50  ;;  %v2782_v28 = vld [vmem:[%s9306_s3 + $0x68] sm:$0xff] }
 0x1ab   : > { %v6022_v29 = vpack.c.bf16 %v2782_v28, %v2781_v19 }
 0x1ac   : > { %5281 = vmatmul.mubr.msk.f32.gmra.mrb[6].mxu0 %vm757_vm0, %v7144_v48  ;;  %6017 = vmatpush1.bf16.msra.mxu1 %v6016_v24 }
 0x1ad   : > { %2045 = vmatprep.mubr.f32.mxu0 %v6748_v39  ;;  %5994 = vmatpush1.bf16.msra.mxu0 %v5993_v34 }
 0x1ae   : > { %5996 = vmatprep.subr.bf16.mxu0 %v5995_v12  ;;  %6018 = vmatprep.subr.bf16.mxu1 %v6749_v50 }
 0x1b0   : > { %5282 = vmatmul.mubr.msk.f32.gmra.mrb[8].mxu0 %vm757_vm0, %v7150_v51  ;;  %6020 = vmatpush1.bf16.msra.mxu1 %v6019_v26 }
 0x1b1   : > { %2051 = vmatprep.mubr.f32.mxu0 %v6748_v39  ;;  %5998 = vmatpush1.bf16.msra.mxu0 %v5997_v40 }
 0x1b2   : > { %6000 = vmatprep.subr.bf16.mxu0 %v5999_v42  ;;  %6021 = vmatprep.subr.bf16.mxu1 %v6749_v50  ;;  %v6037_v42 = vpack.c.bf16 %v2971_v38, %v2970_v37  ;;  %v2984_v38 = vld [vmem:[%s9307_s4 + $0x80] sm:$0xff] }
 0x1b4   : > { %5283 = vmatmul.mubr.msk.f32.gmra.mrb[10].mxu0 %vm757_vm0, %v7156_v52  ;;  %6023 = vmatpush1.bf16.msra.mxu1 %v6022_v29 }
 0x1b5   : > { %2057 = vmatprep.mubr.f32.mxu0 %v6748_v39  ;;  %6002 = vmatpush1.bf16.msra.mxu0 %v6001_v45 }
 0x1b6   : > { %6024 = vmatprep.subr.bf16.mxu1 %v6749_v50 }
 0x1b8   : > { %5284 = vmatmul.mubr.msk.f32.gmra.mrb[12].mxu0 %vm757_vm0, %v7162_v53 }
 0x1b9   : > { %2063 = vmatprep.mubr.f32.mxu0 %v6748_v39 }
 0x1bc   : > { %5285 = vmatmul.mubr.msk.f32.gmra.mrb[14].mxu0 %vm757_vm0, %v7168_v54 }
 0x1bd   : > { %2069 = vmatprep.mubr.f32.mxu0 %v6748_v39 }
 0x1c0   : > { %5286 = vmatmul.mubr.msk.f32.gmra.mrb[16].mxu0 %vm757_vm0, %v7174_v55 }
 0x1c1   : > { %2075 = vmatprep.mubr.f32.mxu0 %v6748_v39 }
 0x1c4   : > { %5287 = vmatmul.mubr.msk.f32.gmra.mrb[18].mxu0 %vm757_vm0, %v7180_v56 }
 0x1c5   : > { %2081 = vmatprep.mubr.f32.mxu0 %v6748_v39 }
 0x1c8   : > { %5288 = vmatmul.mubr.msk.f32.gmra.mrb[20].mxu0 %vm757_vm0, %v7186_v57 }
 0x1c9   : > { %2087 = vmatprep.mubr.f32.mxu0 %v6748_v39 }
 0x1cc   : > { %5289 = vmatmul.mubr.msk.f32.gmra.mrb[22].mxu0 %vm757_vm0, %v7192_v58 }
 0x1cd   : > { %2093 = vmatprep.mubr.f32.mxu0 %v6748_v39 }
 0x1d0   : > { %5290 = vmatmul.mubr.msk.f32.gmra.mrb[24].mxu0 %vm757_vm0, %v7198_v59 }
 0x1d1   : > { %2099 = vmatprep.mubr.f32.mxu0 %v6748_v39 }
 0x1d4   : > { %5291 = vmatmul.mubr.msk.f32.gmra.mrb[26].mxu0 %vm757_vm0, %v7204_v60 }
 0x1d5   : > { %2105 = vmatprep.mubr.f32.mxu0 %v6748_v39 }
 0x1d8   : > { %5292 = vmatmul.mubr.msk.f32.gmra.mrb[28].mxu0 %vm757_vm0, %v7210_v61 }
 0x1d9   : > { %2111 = vmatprep.mubr.f32.mxu0 %v6748_v39 }
 0x1dc   : > { %5293 = vmatmul.mubr.msk.f32.gmra.mrb[30].mxu0 %vm757_vm0, %v7216_v62 }
 0x1dd   : > { %2117 = vmatprep.mubr.f32.mxu0 %v6748_v39 }
 0x1e0   : > { %5294 = vmatmul.mubr.msk.f32.gmra.mrb[32].mxu0 %vm757_vm0, %v7222_v63 }
 0x1e1   : > { %2123 = vmatprep.mubr.f32.mxu0 %v6748_v39 }
 0x1e4   : > { %5295 = vmatmul.mubr.msk.f32.gmra.mrb[34].mxu0 %vm757_vm0, %v7228_v0 }
 0x1e5   : > { %2129 = vmatprep.mubr.f32.mxu0 %v6748_v39 }
 0x1e8   : > { %5296 = vmatmul.mubr.msk.f32.gmra.mrb[36].mxu0 %vm757_vm0, %v7234_v1 }
 0x1e9   : > { %2135 = vmatprep.mubr.f32.mxu0 %v6748_v39 }
 0x1ec   : > { %5297 = vmatmul.mubr.msk.f32.gmra.mrb[38].mxu0 %vm757_vm0, %v7240_v2 }
 0x1ed   : > { %2141 = vmatprep.mubr.f32.mxu0 %v6748_v39 }
 0x1f0   : > { %5298 = vmatmul.mubr.msk.f32.gmra.mrb[40].mxu0 %vm757_vm0, %v7246_v3 }
 0x1f1   : > { %2147 = vmatprep.mubr.f32.mxu0 %v6748_v39 }
 0x1f4   : > { %5299 = vmatmul.mubr.msk.f32.gmra.mrb[42].mxu0 %vm757_vm0, %v7252_v4 }
 0x1f5   : > { %2153 = vmatprep.mubr.f32.mxu0 %v6748_v39 }
 0x1f8   : > { %5300 = vmatmul.mubr.msk.f32.gmra.mrb[44].mxu0 %vm757_vm0, %v7258_v5 }
 0x1f9   : > { %2159 = vmatprep.mubr.f32.mxu0 %v6748_v39 }
 0x1fc   : > { %5301 = vmatmul.mubr.msk.f32.gmra.mrb[46].mxu0 %vm757_vm0, %v7264_v6 }
 0x1fd   : > { %2165 = vmatprep.mubr.f32.mxu0 %v6748_v39 }
 0x200   : > { %5302 = vmatmul.mubr.msk.f32.gmra.mrb[48].mxu0 %vm757_vm0, %v7270_v7 }
 0x201   : > { %2171 = vmatprep.mubr.f32.mxu0 %v6748_v39 }
 0x204   : > { %5303 = vmatmul.mubr.msk.f32.gmra.mrb[50].mxu0 %vm757_vm0, %v7276_v8 }
 0x205   : > { %2177 = vmatprep.mubr.f32.mxu0 %v6748_v39 }
 0x208   : > { %5304 = vmatmul.mubr.msk.f32.gmra.mrb[52].mxu0 %vm757_vm0, %v7591_v9 }
 0x209   : > { %2183 = vmatprep.mubr.f32.mxu0 %v6748_v39 }
 0x20c   : > { %5305 = vmatmul.mubr.msk.f32.gmra.mrb[54].mxu0 %vm757_vm0, %v7778_v23 }
 0x20d   : > { %2448 = vmatprep.mubr.f32.mxu0 %v6748_v39 }
 0x210   : > { %5358 = vmatmul.mubr.msk.f32.vlgmr.msra.gmra.mrb[0].mxu0 %vm757_vm0, %v7108_v33  ;;  %v2783_v33 = vld [vmem:[%s9306_s3 + $0x70] sm:$0xff] }
 0x211   : > { %2454 = vmatprep.mubr.f32.mxu0 %v6748_v39  ;;  %v6025_v31 = vpack.c.bf16 %v2784_v30, %v2783_v33  ;;  %v6046_v30 = vpack.c.bf16 %v2977_v27, %v2976_v25 }
 0x213   : > { %6026 = vmatpush1.bf16.msra.mxu1 %v6025_v31 }
 0x214   : > { %5359 = vmatmul.mubr.msk.f32.gmra.mrb[2].mxu0 %vm757_vm0, %v7126_v41  ;;  %6027 = vmatprep.subr.bf16.mxu1 %v6749_v50  ;;  %v2785_v41 = vld [vmem:[%s9306_s3 + $0x80] sm:$0xff] }
 0x215   : > { %2460 = vmatprep.mubr.f32.mxu0 %v6748_v39 }
 0x218   : > { %5360 = vmatmul.mubr.msk.f32.gmra.mrb[4].mxu0 %vm757_vm0, %v7144_v48  ;;  %v2786_v48 = vld [vmem:[%s9306_s3 + $0x88] sm:$0xff] }
 0x219   : > { %2466 = vmatprep.mubr.f32.mxu0 %v6748_v39 }
 0x21c   : > { %5361 = vmatmul.mubr.msk.f32.gmra.mrb[6].mxu0 %vm757_vm0, %v7150_v51  ;;  %v6028_v51 = vpack.c.bf16 %v2786_v48, %v2785_v41  ;;  %v2978_v41 = vld [vmem:[%s9307_s4 + $0x50] sm:$0xff]  ;;  %v2979_v48 = vld [vmem:[%s9307_s4 + $0x58] sm:$0xff] }
 0x21d   : > { %2472 = vmatprep.mubr.f32.mxu0 %v6748_v39 }
 0x21e   : > { %6029 = vmatpush1.bf16.msra.mxu1 %v6028_v51 }
 0x21f   : > { %6030 = vmatprep.subr.bf16.mxu1 %v6749_v50 }
 0x220   : > { %5362 = vmatmul.mubr.msk.f32.gmra.mrb[8].mxu0 %vm757_vm0, %v7156_v52  ;;  %v2787_v52 = vld [vmem:[%s9306_s3 + $0x90] sm:$0xff] }
 0x221   : > { %2478 = vmatprep.mubr.f32.mxu0 %v6748_v39 }
 0x224   : > { %5363 = vmatmul.mubr.msk.f32.gmra.mrb[10].mxu0 %vm757_vm0, %v7162_v53  ;;  %v2788_v53 = vld [vmem:[%s9306_s3 + $0x98] sm:$0xff] }
 0x225   : > { %2484 = vmatprep.mubr.f32.mxu0 %v6748_v39 }
 0x228   : > { %5364 = vmatmul.mubr.msk.f32.gmra.mrb[12].mxu0 %vm757_vm0, %v7168_v54  ;;  %v6031_v54 = vpack.c.bf16 %v2788_v53, %v2787_v52  ;;  %v6049_v52 = vpack.c.bf16 %v2979_v48, %v2978_v41 }
 0x229   : > { %2490 = vmatprep.mubr.f32.mxu0 %v6748_v39 }
 0x22a   : > { %6032 = vmatpush1.bf16.msra.mxu1 %v6031_v54 }
 0x22b   : > { %2873 = vmatprep.subr.mxu1 %v6748_v39 }
 0x22c   : > { %5365 = vmatmul.mubr.msk.f32.gmra.mrb[14].mxu0 %vm757_vm0, %v7174_v55  ;;  %v2789_v55 = vld [vmem:[%s9306_s3 + $0xa0] sm:$0xff] }
 0x22d   : > { %2496 = vmatprep.mubr.f32.mxu0 %v6748_v39 }
 0x22e   : > { %2874 = vmatpush1.msra.mxu1 %v2789_v55 }
 0x22f   : > { %6033 = vmatprep.subr.bf16.mxu1 %v6749_v50 }
 0x230   : > { %5366 = vmatmul.mubr.msk.f32.gmra.mrb[16].mxu0 %vm757_vm0, %v7180_v56  ;;  %v5333_v56 = vld [vmem:[%s7051_s27 + $0xf8] sm:$0xff]  ;;  %s4965_s27 = sshll.u32 %s650_s16, 4  ;;  %s9261_s27 = int_to_ptr.vmem [resolvable:$true] %s4965_s27 }
 0x231   : > { %2502 = vmatprep.mubr.f32.mxu0 %v6748_v39  ;;  %s6684_s20 = scalar_lea.vmem %s9261_s27, 128  ;;  %p6691_p2 = scmp.lt.s32.totalorder %s9261_s27, %s6689_s22 }
 0x232   : > { %p6685_p13 = scmp.ne.s32.totalorder %s9261_s27, %s6684_s20  ;;  %p6692_p3 = scmp.lt.s32.totalorder %s6690_s23, %s6684_s20 }
 0x234   : > { %5367 = vmatmul.mubr.msk.f32.gmra.mrb[18].mxu0 %vm757_vm0, %v7186_v57  ;;  %v2675_v57 = vlaneseq  ;;  %p6686_p0 = pnand %p6685_p13, %p6870_p6  ;;  %p6693_p4 = por %p6692_p3, %p6691_p2 }
 0x235   : > { %2508 = vmatprep.mubr.f32.mxu0 %v6748_v39 }
 0x236   : > { %p6687_p1 = pneg %p6686_p0 }
 0x238   : > { %5368 = vmatmul.mubr.msk.f32.gmra.mrb[20].mxu0 %vm757_vm0, %v7192_v58  ;;  %v7908_v58 = vshrl.u32 %v2675_v57, 7  ;;  %p6694_p5 = pnand %p6693_p4, %p6687_p1 }
 0x239   : > { %2514 = vmatprep.mubr.f32.mxu0 %v6748_v39 }
 0x23c   : > { %5369 = vmatmul.mubr.msk.f32.gmra.mrb[22].mxu0 %vm757_vm0, %v7198_v59  ;;  %v2677_v59 = vsub.s32 0, %v7908_v58 }
 0x23d   : > { %2520 = vmatprep.mubr.f32.mxu0 %v6748_v39 }
 0x240   : > { %5370 = vmatmul.mubr.msk.f32.gmra.mrb[24].mxu0 %vm757_vm0, %v7204_v60  ;;  %v2673_v60 = vld [vmem:[%s9305_s2] sm:$0x3] }
 0x241   : > { %2526 = vmatprep.mubr.f32.mxu0 %v6748_v39 }
 0x244   : > { %5371 = vmatmul.mubr.msk.f32.gmra.mrb[26].mxu0 %vm757_vm0, %v7210_v61  ;;  %v2681_v61 = vsub.s32 1, %v7908_v58 }
 0x245   : > { %2532 = vmatprep.mubr.f32.mxu0 %v6748_v39 }
 0x248   : > { %5372 = vmatmul.mubr.msk.f32.gmra.mrb[28].mxu0 %vm757_vm0, %v7216_v62 }
 0x249   : > { %2538 = vmatprep.mubr.f32.mxu0 %v6748_v39 }
 0x24c   : > { %5373 = vmatmul.mubr.msk.f32.gmra.mrb[30].mxu0 %vm757_vm0, %v7222_v63  ;;  %v7917_v63 = vrot.slane %v2673_v60, %v2677_v59 }
 0x24d   : > { %2544 = vmatprep.mubr.f32.mxu0 %v6748_v39 }
 0x250   : > { %5374 = vmatmul.mubr.msk.f32.gmra.mrb[32].mxu0 %vm757_vm0, %v7228_v0 }
 0x251   : > { %2550 = vmatprep.mubr.f32.mxu0 %v6748_v39 }
 0x254   : > { %5375 = vmatmul.mubr.msk.f32.gmra.mrb[34].mxu0 %vm757_vm0, %v7234_v1  ;;  %v7921_v1 = vrot.slane %v2673_v60, %v2681_v61  ;;  %v2981_v60 = vld [vmem:[%s9307_s4 + $0x68] sm:$0xff] }
 0x255   : > { %2556 = vmatprep.mubr.f32.mxu0 %v6748_v39 }
 0x258   : > { %5376 = vmatmul.mubr.msk.f32.gmra.mrb[36].mxu0 %vm757_vm0, %v7240_v2 }
 0x259   : > { %2562 = vmatprep.mubr.f32.mxu0 %v6748_v39 }
 0x25c   : > { %5377 = vmatmul.mubr.msk.f32.gmra.mrb[38].mxu0 %vm757_vm0, %v7246_v3 }
 0x25d   : > { %2568 = vmatprep.mubr.f32.mxu0 %v6748_v39 }
 0x260   : > { %5378 = vmatmul.mubr.msk.f32.gmra.mrb[40].mxu0 %vm757_vm0, %v7252_v4 }
 0x261   : > { %2574 = vmatprep.mubr.f32.mxu0 %v6748_v39 }
 0x264   : > { %5379 = vmatmul.mubr.msk.f32.gmra.mrb[42].mxu0 %vm757_vm0, %v7258_v5 }
 0x265   : > { %2580 = vmatprep.mubr.f32.mxu0 %v6748_v39 }
 0x268   : > { %5380 = vmatmul.mubr.msk.f32.gmra.mrb[44].mxu0 %vm757_vm0, %v7264_v6  ;;  %v2968_v6 = vld [vmem:[%s9307_s4] sm:$0xff] }
 0x269   : > { %2586 = vmatprep.mubr.f32.mxu0 %v6748_v39 }
 0x26c   : > { %5381 = vmatmul.mubr.msk.f32.gmra.mrb[46].mxu0 %vm757_vm0, %v7270_v7  ;;  %v2969_v7 = vld [vmem:[%s9307_s4 + $0x8] sm:$0xff] }
 0x26d   : > { %2592 = vmatprep.mubr.f32.mxu0 %v6748_v39  ;;  %v6034_v35 = vpack.c.bf16 %v2969_v7, %v2968_v6  ;;  %v2982_v7 = vld [vmem:[%s9307_s4 + $0x70] sm:$0xff] }
 0x270   : > { %5382 = vmatmul.mubr.msk.f32.gmra.mrb[48].mxu0 %vm757_vm0, %v7276_v8 }
 0x271   : > { %2598 = vmatprep.mubr.f32.mxu0 %v6748_v39 }
 0x274   : > { %5383 = vmatmul.mubr.msk.f32.gmra.mrb[50].mxu0 %vm757_vm0, %v7591_v9 }
 0x275   : > { %2604 = vmatprep.mubr.f32.mxu0 %v6748_v39 }
 0x278   : > { %5384 = vmatmul.mubr.msk.f32.gmra.mrb[52].mxu0 %vm757_vm0, %v7778_v23 }
 0x279   : > { %2610 = vmatprep.mubr.f32.mxu0 %v6748_v39 }
 0x27c   : > { %5385 = vmatmul.mubr.msk.f32.gmra.mrb[54].mxu0 %vm757_vm0, %v5333_v56  ;;  %v2980_v56 = vld [vmem:[%s9307_s4 + $0x60] sm:$0xff] }
 0x2e3   : > { %v2450_v62 = vpop.f32.mrb[0].mxu0 }
 0x2e4   : > { %v2452_v0 = vpop.f32.mrb[1].mxu0  ;;  %v2685_v3 = vadd.f32 %v7917_v63, %v2450_v62 }
 0x2e5   : > { %v2686_v8 = vadd.f32 %v7921_v1, %v2452_v0 }
 0x2e7   : > { %v2456_v2 = vpop.f32.mrb[2].mxu0 }
 0x2e8   : > { %v2687_v4 = vadd.f32 %v7917_v63, %v2456_v2  ;;  %v2458_v5 = vpop.f32.mrb[3].mxu0 }
 0x2e9   : > { %v2688_v9 = vadd.f32 %v7921_v1, %v2458_v5  ;;  %v6052_v5 = vpack.c.bf16 %v2981_v60, %v2980_v56 }
 0x2ea   : > { %v7933_v32 = vmax.f32 %v2685_v3, %v2687_v4 }
 0x2eb   : > { %v2462_v34 = vpop.f32.mrb[4].mxu0  ;;  %v7935_v12 = vmax.f32 %v2686_v8, %v2688_v9  ;;  %v2983_v8 = vld [vmem:[%s9307_s4 + $0x78] sm:$0xff] }
 0x2ec   : > { %v2464_v36 = vpop.f32.mrb[5].mxu0  ;;  %v2689_v43 = vadd.f32 %v7917_v63, %v2462_v34  ;;  %v6055_v34 = vpack.c.bf16 %v2983_v8, %v2982_v7 }
 0x2ed   : > { %5386 = vmatprep.mubr.msk.f32.mxu1 %vm2790_vm1, %v7935_v12  ;;  %v2690_v49 = vadd.f32 %v7921_v1, %v2464_v36 }
 0x2ee   : > { %2898 = vmatmul.mubr.f32.vlgmr.msra.gmra.mrb[0].mxu1 %v7933_v32 }
 0x2ef   : > { %v2468_v40 = vpop.f32.mrb[6].mxu0  ;;  %6035 = vmatpush1.bf16.msra.mxu1 %v6034_v35 }
 0x2f0   : > { %v2691_v44 = vadd.f32 %v7917_v63, %v2468_v40  ;;  %v2470_v45 = vpop.f32.mrb[7].mxu0  ;;  %6036 = vmatprep.subr.bf16.mxu1 %v6749_v50  ;;  %v2985_v40 = vld [vmem:[%s9307_s4 + $0x88] sm:$0xff] }
 0x2f1   : > { %v2692_v10 = vadd.f32 %v7921_v1, %v2470_v45  ;;  %v6058_v47 = vpack.c.bf16 %v2985_v40, %v2984_v38 }
 0x2f2   : > { %v7957_v11 = vmax.f32 %v2689_v43, %v2691_v44 }
 0x2f3   : > { %v7959_v13 = vmax.f32 %v2690_v49, %v2692_v10  ;;  %v2474_v14 = vpop.f32.mrb[8].mxu0  ;;  %6038 = vmatpush1.bf16.msra.mxu1 %v6037_v42  ;;  %v2986_v10 = vld [vmem:[%s9307_s4 + $0x90] sm:$0xff] }
 0x2f4   : > { %v2476_v16 = vpop.f32.mrb[9].mxu0  ;;  %6039 = vmatprep.subr.bf16.mxu1 %v6749_v50  ;;  %v2693_v22 = vadd.f32 %v7917_v63, %v2474_v14  ;;  %v2987_v14 = vld [vmem:[%s9307_s4 + $0x98] sm:$0xff] }
 0x2f5   : > { %5387 = vmatprep.mubr.msk.f32.mxu1 %vm2790_vm1, %v7959_v13  ;;  %v2694_v26 = vadd.f32 %v7921_v1, %v2476_v16  ;;  %v6061_v16 = vpack.c.bf16 %v2987_v14, %v2986_v10 }
 0x2f6   : > { %2903 = vmatmul.mubr.f32.gmra.mrb[2].mxu1 %v7957_v11 }
 0x2f7   : > { %v2480_v20 = vpop.f32.mrb[10].mxu0  ;;  %6041 = vmatpush1.bf16.msra.mxu1 %v6040_v15 }
 0x2f8   : > { %v2695_v23 = vadd.f32 %v7917_v63, %v2480_v20  ;;  %v2482_v24 = vpop.f32.mrb[11].mxu0  ;;  %6042 = vmatprep.subr.bf16.mxu1 %v6749_v50 }
 0x2f9   : > { %v2696_v19 = vadd.f32 %v7921_v1, %v2482_v24 }
 0x2fa   : > { %v7982_v28 = vmax.f32 %v2693_v22, %v2695_v23 }
 0x2fb   : > { %v7984_v29 = vmax.f32 %v2694_v26, %v2696_v19  ;;  %v2486_v33 = vpop.f32.mrb[12].mxu0  ;;  %6044 = vmatpush1.bf16.msra.mxu1 %v6043_v21  ;;  %v2988_v26 = vld [vmem:[%s9307_s4 + $0xa0] sm:$0xff] }
 0x2fc   : > { %v2488_v31 = vpop.f32.mrb[13].mxu0  ;;  %6045 = vmatprep.subr.bf16.mxu1 %v6749_v50  ;;  %v2697_v53 = vadd.f32 %v7917_v63, %v2486_v33 }
 0x2fd   : > { %5388 = vmatprep.mubr.msk.f32.mxu1 %vm2790_vm1, %v7984_v29  ;;  %v2698_v62 = vadd.f32 %v7921_v1, %v2488_v31 }
 0x2fe   : > { %2908 = vmatmul.mubr.f32.gmra.mrb[4].mxu1 %v7982_v28 }
 0x2ff   : > { %v2492_v51 = vpop.f32.mrb[14].mxu0  ;;  %6047 = vmatpush1.bf16.msra.mxu1 %v6046_v30 }
 0x300   : > { %v2699_v54 = vadd.f32 %v7917_v63, %v2492_v51  ;;  %v2494_v55 = vpop.f32.mrb[15].mxu0  ;;  %6048 = vmatprep.subr.bf16.mxu1 %v6749_v50 }
 0x301   : > { %v2700_v0 = vadd.f32 %v7921_v1, %v2494_v55 }
 0x302   : > { %v8007_v2 = vmax.f32 %v2697_v53, %v2699_v54 }
 0x303   : > { %v8009_v3 = vmax.f32 %v2698_v62, %v2700_v0  ;;  %v2498_v4 = vpop.f32.mrb[16].mxu0  ;;  %6050 = vmatpush1.bf16.msra.mxu1 %v6049_v52 }
 0x304   : > { %v2500_v6 = vpop.f32.mrb[17].mxu0  ;;  %6051 = vmatprep.subr.bf16.mxu1 %v6749_v50  ;;  %v2701_v35 = vadd.f32 %v7917_v63, %v2498_v4 }
 0x305   : > { %5389 = vmatprep.mubr.msk.f32.mxu1 %vm2790_vm1, %v8009_v3  ;;  %v2702_v42 = vadd.f32 %v7921_v1, %v2500_v6 }
 0x306   : > { %2913 = vmatmul.mubr.f32.gmra.mrb[6].mxu1 %v8007_v2 }
 0x307   : > { %v2504_v9 = vpop.f32.mrb[18].mxu0  ;;  %6053 = vmatpush1.bf16.msra.mxu1 %v6052_v5 }
 0x308   : > { %v2703_v36 = vadd.f32 %v7917_v63, %v2504_v9  ;;  %v2506_v37 = vpop.f32.mrb[19].mxu0  ;;  %6054 = vmatprep.subr.bf16.mxu1 %v6749_v50 }
 0x309   : > { %v2704_v43 = vadd.f32 %v7921_v1, %v2506_v37 }
 0x30a   : > { %v8032_v44 = vmax.f32 %v2701_v35, %v2703_v36 }
 0x30b   : > { %v8034_v45 = vmax.f32 %v2702_v42, %v2704_v43  ;;  %v2510_v46 = vpop.f32.mrb[20].mxu0  ;;  %6056 = vmatpush1.bf16.msra.mxu1 %v6055_v34 }
 0x30c   : > { %v2512_v49 = vpop.f32.mrb[21].mxu0  ;;  %6057 = vmatprep.subr.bf16.mxu1 %v6749_v50  ;;  %v2705_v17 = vadd.f32 %v7917_v63, %v2510_v46 }
 0x30d   : > { %5390 = vmatprep.mubr.msk.f32.mxu1 %vm2790_vm1, %v8034_v45  ;;  %v2706_v21 = vadd.f32 %v7921_v1, %v2512_v49 }
 0x30e   : > { %2918 = vmatmul.mubr.f32.gmra.mrb[8].mxu1 %v8032_v44 }
 0x30f   : > { %v2516_v15 = vpop.f32.mrb[22].mxu0  ;;  %6059 = vmatpush1.bf16.msra.mxu1 %v6058_v47 }
 0x310   : > { %v2707_v18 = vadd.f32 %v7917_v63, %v2516_v15  ;;  %v2518_v20 = vpop.f32.mrb[23].mxu0  ;;  %6060 = vmatprep.subr.bf16.mxu1 %v6749_v50 }
 0x311   : > { %v2708_v22 = vadd.f32 %v7921_v1, %v2518_v20 }
 0x312   : > { %v8051_v23 = vmax.f32 %v2705_v17, %v2707_v18 }
 0x313   : > { %v8053_v24 = vmax.f32 %v2706_v21, %v2708_v22  ;;  %v2522_v25 = vpop.f32.mrb[24].mxu0  ;;  %6062 = vmatpush1.bf16.msra.mxu1 %v6061_v16 }
 0x314   : > { %v2524_v27 = vpop.f32.mrb[25].mxu0  ;;  %3029 = vmatprep.subr.mxu1 %v6748_v39  ;;  %v2709_v33 = vadd.f32 %v7917_v63, %v2522_v25 }
 0x315   : > { %5391 = vmatprep.mubr.msk.f32.mxu1 %vm2790_vm1, %v8053_v24  ;;  %v2710_v41 = vadd.f32 %v7921_v1, %v2524_v27 }
 0x316   : > { %2923 = vmatmul.mubr.f32.gmra.mrb[10].mxu1 %v8051_v23 }
 0x317   : > { %v2528_v19 = vpop.f32.mrb[26].mxu0  ;;  %3030 = vmatpush1.msra.mxu1 %v2988_v26 }
 0x318   : > { %v2711_v30 = vadd.f32 %v7917_v63, %v2528_v19  ;;  %v2530_v31 = vpop.f32.mrb[27].mxu0 }
 0x319   : > { %v2712_v48 = vadd.f32 %v7921_v1, %v2530_v31 }
 0x31a   : > { %v8066_v51 = vmax.f32 %v2709_v33, %v2711_v30 }
 0x31b   : > { %v8068_v52 = vmax.f32 %v2710_v41, %v2712_v48  ;;  %v2534_v53 = vpop.f32.mrb[28].mxu0 }
 0x31c   : > { %v2536_v54 = vpop.f32.mrb[29].mxu0  ;;  %v2713_v56 = vadd.f32 %v7917_v63, %v2534_v53 }
 0x31d   : > { %5392 = vmatprep.mubr.msk.f32.mxu1 %vm2790_vm1, %v8068_v52  ;;  %v2714_v0 = vadd.f32 %v7921_v1, %v2536_v54 }
 0x31e   : > { %2928 = vmatmul.mubr.f32.gmra.mrb[12].mxu1 %v8066_v51 }
 0x31f   : > { %v2540_v55 = vpop.f32.mrb[30].mxu0 }
 0x320   : > { %v2715_v60 = vadd.f32 %v7917_v63, %v2540_v55  ;;  %v2542_v62 = vpop.f32.mrb[31].mxu0 }
 0x321   : > { %v2716_v4 = vadd.f32 %v7921_v1, %v2542_v62 }
 0x322   : > { %v8077_v5 = vmax.f32 %v2713_v56, %v2715_v60 }
 0x323   : > { %v8079_v6 = vmax.f32 %v2714_v0, %v2716_v4  ;;  %v2546_v7 = vpop.f32.mrb[32].mxu0 }
 0x324   : > { %v2548_v8 = vpop.f32.mrb[33].mxu0  ;;  %v2717_v34 = vadd.f32 %v7917_v63, %v2546_v7 }
 0x325   : > { %5393 = vmatprep.mubr.msk.f32.mxu1 %vm2790_vm1, %v8079_v6  ;;  %v2718_v37 = vadd.f32 %v7921_v1, %v2548_v8 }
 0x326   : > { %2933 = vmatmul.mubr.f32.gmra.mrb[14].mxu1 %v8077_v5 }
 0x327   : > { %v2552_v9 = vpop.f32.mrb[34].mxu0 }
 0x328   : > { %v2719_v35 = vadd.f32 %v7917_v63, %v2552_v9  ;;  %v2554_v36 = vpop.f32.mrb[35].mxu0 }
 0x329   : > { %v2720_v38 = vadd.f32 %v7921_v1, %v2554_v36 }
 0x32a   : > { %v8088_v40 = vmax.f32 %v2717_v34, %v2719_v35 }
 0x32b   : > { %v8090_v42 = vmax.f32 %v2718_v37, %v2720_v38  ;;  %v2558_v43 = vpop.f32.mrb[36].mxu0 }
 0x32c   : > { %v2560_v46 = vpop.f32.mrb[37].mxu0  ;;  %v2721_v49 = vadd.f32 %v7917_v63, %v2558_v43 }
 0x32d   : > { %5394 = vmatprep.mubr.msk.f32.mxu1 %vm2790_vm1, %v8090_v42  ;;  %v2722_v15 = vadd.f32 %v7921_v1, %v2560_v46 }
 0x32e   : > { %2938 = vmatmul.mubr.f32.gmra.mrb[16].mxu1 %v8088_v40 }
 0x32f   : > { %v2564_v47 = vpop.f32.mrb[38].mxu0 }
 0x330   : > { %v2723_v10 = vadd.f32 %v7917_v63, %v2564_v47  ;;  %v2566_v14 = vpop.f32.mrb[39].mxu0 }
 0x331   : > { %v2724_v16 = vadd.f32 %v7921_v1, %v2566_v14 }
 0x332   : > { %v8099_v17 = vmax.f32 %v2721_v49, %v2723_v10 }
 0x333   : > { %v8101_v18 = vmax.f32 %v2722_v15, %v2724_v16  ;;  %v2570_v20 = vpop.f32.mrb[40].mxu0 }
 0x334   : > { %v2572_v21 = vpop.f32.mrb[41].mxu0  ;;  %v2725_v25 = vadd.f32 %v7917_v63, %v2570_v20 }
 0x335   : > { %5395 = vmatprep.mubr.msk.f32.mxu1 %vm2790_vm1, %v8101_v18  ;;  %v2726_v19 = vadd.f32 %v7921_v1, %v2572_v21 }
 0x336   : > { %2943 = vmatmul.mubr.f32.gmra.mrb[18].mxu1 %v8099_v17 }
 0x337   : > { %v2576_v22 = vpop.f32.mrb[42].mxu0 }
 0x338   : > { %v2727_v27 = vadd.f32 %v7917_v63, %v2576_v22  ;;  %v2578_v26 = vpop.f32.mrb[43].mxu0 }
 0x339   : > { %v2728_v33 = vadd.f32 %v7921_v1, %v2578_v26 }
 0x33a   : > { %v8110_v30 = vmax.f32 %v2725_v25, %v2727_v27  ;;  %v5428_v27 = vld [vmem:[%s9308_s5 + $0x120] sm:$0xff] }
 0x33b   : > { %v8112_v31 = vmax.f32 %v2726_v19, %v2728_v33  ;;  %v2582_v41 = vpop.f32.mrb[44].mxu0  ;;  %v5431_v19 = vld [vmem:[%s9308_s5 + $0x138] sm:$0xff]  ;;  %v5433_v33 = vld [vmem:[%s9308_s5 + $0x148] sm:$0xff] }
 0x33c   : > { %v2584_v48 = vpop.f32.mrb[45].mxu0  ;;  %v2729_v54 = vadd.f32 %v7917_v63, %v2582_v41  ;;  %v5432_v41 = vld [vmem:[%s9308_s5 + $0x140] sm:$0xff] }
 0x33d   : > { %5396 = vmatprep.mubr.msk.f32.mxu1 %vm2790_vm1, %v8112_v31  ;;  %v2730_v60 = vadd.f32 %v7921_v1, %v2584_v48 }
 0x33e   : > { %2948 = vmatmul.mubr.f32.gmra.mrb[20].mxu1 %v8110_v30 }
 0x33f   : > { %v2588_v53 = vpop.f32.mrb[46].mxu0 }
 0x340   : > { %v2731_v55 = vadd.f32 %v7917_v63, %v2588_v53  ;;  %v2590_v56 = vpop.f32.mrb[47].mxu0  ;;  %v5435_v53 = vld [vmem:[%s9308_s5 + $0x158] sm:$0xf] }
 0x341   : > { %v2732_v62 = vadd.f32 %v7921_v1, %v2590_v56  ;;  %v3155_v56 = vld [vmem:[%s9308_s5 + $0x18] sm:$0xff] }
 0x342   : > { %v2763_v0 = vmax.f32 %v2729_v54, %v2731_v55  ;;  %v5434_v54 = vld [vmem:[%s9308_s5 + $0x150] sm:$0xf]  ;;  %v3153_v55 = vld [vmem:[%s9308_s5 + $0x8] sm:$0xff] }
 0x343   : > { %v2764_v4 = vmax.f32 %v2730_v60, %v2732_v62  ;;  %v2594_v7 = vpop.f32.mrb[48].mxu0  ;;  %v6083_v60 = vpack.c.bf16 %v3155_v56, %v3153_v55  ;;  %v3167_v55 = vld [vmem:[%s9308_s5 + $0x78] sm:$0xff] }
 0x344   : > { %v2596_v8 = vpop.f32.mrb[49].mxu0  ;;  %v2733_v34 = vadd.f32 %v7917_v63, %v2594_v7 }
 0x345   : > { %5397 = vmatprep.mubr.msk.f32.mxu1 %vm2790_vm1, %v2764_v4  ;;  %v2734_v37 = vadd.f32 %v7921_v1, %v2596_v8 }
 0x346   : > { %2953 = vmatmul.mubr.f32.gmra.mrb[22].mxu1 %v2763_v0 }
 0x347   : > { %v2600_v9 = vpop.f32.mrb[50].mxu0 }
 0x348   : > { %v2735_v35 = vadd.f32 %v7917_v63, %v2600_v9  ;;  %v2602_v36 = vpop.f32.mrb[51].mxu0 }
 0x349   : > { %v2736_v38 = vadd.f32 %v7921_v1, %v2602_v36 }
 0x34a   : > { %v2765_v43 = vmax.f32 %v2733_v34, %v2735_v35 }
 0x34b   : > { %v2766_v46 = vmax.f32 %v2734_v37, %v2736_v38  ;;  %v2606_v47 = vpop.f32.mrb[52].mxu0 }
 0x34c   : > { %v2608_v49 = vpop.f32.mrb[53].mxu0  ;;  %v2737_v14 = vadd.f32 %v7917_v63, %v2606_v47 }
 0x34d   : > { %5398 = vmatprep.mubr.msk.f32.mxu1 %vm2790_vm1, %v2766_v46  ;;  %v2738_v20 = vadd.f32 %v7921_v1, %v2608_v49 }
 0x34e   : > { %2958 = vmatmul.mubr.f32.gmra.mrb[24].mxu1 %v2765_v43 }
 0x34f   : > { %v2612_v10 = vpop.f32.mrb[54].mxu0 }
 0x350   : > { %v2739_v15 = vadd.f32 %v7917_v63, %v2612_v10  ;;  %v2614_v16 = vpop.f32.mrb[55].mxu0  ;;  %v5415_v63 = vld [vmem:[%s9308_s5 + $0xb8] sm:$0xff] }
 0x351   : > { %v2740_v21 = vadd.f32 %v7921_v1, %v2614_v16  ;;  %v5417_v1 = vld [vmem:[%s9308_s5 + $0xc8] sm:$0xff] }
 0x352   : > { %v2767_v22 = vmax.f32 %v2737_v14, %v2739_v15 }
 0x353   : > { %v2768_v25 = vmax.f32 %v2738_v20, %v2740_v21 }
 0x355   : > { %5399 = vmatprep.mubr.msk.f32.mxu1 %vm2790_vm1, %v2768_v25 }
 0x356   : > { %2963 = vmatmul.mubr.f32.gmra.mrb[26].mxu1 %v2767_v22 }
 0x357   : > { %5400 = vmatprep.mubr.msk.f32.mxu1 %vm2790_vm1, %v7935_v12  ;;  %v6063_v12 = vpack.c.bf16 %v5417_v1, %v5415_v63 }
 0x359   : > { %6064 = vmatprep.subr.bf16.mxu1 %v6063_v12 }
 0x35a   : > { %3054 = vmatmul.mubr.f32.vlgmr.msra.gmra.mrb[28].mxu1 %v7933_v32  ;;  %v5414_v32 = vld [vmem:[%s9308_s5 + $0xb0] sm:$0xff] }
 0x35b   : > { %5401 = vmatprep.mubr.msk.f32.mxu1 %vm2790_vm1, %v7959_v13 }
 0x35e   : > { %3059 = vmatmul.mubr.f32.gmra.mrb[30].mxu1 %v7957_v11  ;;  %v5416_v11 = vld [vmem:[%s9308_s5 + $0xc0] sm:$0xff] }
 0x35f   : > { %5402 = vmatprep.mubr.msk.f32.mxu1 %vm2790_vm1, %v7984_v29  ;;  %v6065_v13 = vpack.c.bf16 %v5416_v11, %v5414_v32  ;;  %v5421_v29 = vld [vmem:[%s9308_s5 + $0xe8] sm:$0xff] }
 0x361   : > { %6066 = vmatpush1.bf16.msra.mxu1 %v6065_v13 }
 0x362   : > { %3064 = vmatmul.mubr.f32.gmra.mrb[32].mxu1 %v7982_v28  ;;  %v5419_v28 = vld [vmem:[%s9308_s5 + $0xd8] sm:$0xff] }
 0x363   : > { %5403 = vmatprep.mubr.msk.f32.mxu1 %vm2790_vm1, %v8009_v3  ;;  %v5418_v3 = vld [vmem:[%s9308_s5 + $0xd0] sm:$0xff] }
 0x366   : > { %3069 = vmatmul.mubr.f32.gmra.mrb[34].mxu1 %v8007_v2  ;;  %v6067_v2 = vpack.c.bf16 %v5421_v29, %v5419_v28 }
 0x367   : > { %5404 = vmatprep.mubr.msk.f32.mxu1 %vm2790_vm1, %v8034_v45 }
 0x368   : > { %6068 = vmatprep.subr.bf16.mxu1 %v6067_v2  ;;  %v3152_v2 = vld [vmem:[%s9308_s5] sm:$0xff] }
 0x36a   : > { %3074 = vmatmul.mubr.f32.gmra.mrb[36].mxu1 %v8032_v44  ;;  %v5420_v44 = vld [vmem:[%s9308_s5 + $0xe0] sm:$0xff] }
 0x36b   : > { %5405 = vmatprep.mubr.msk.f32.mxu1 %vm2790_vm1, %v8053_v24  ;;  %v6069_v45 = vpack.c.bf16 %v5420_v44, %v5418_v3  ;;  %v5425_v24 = vld [vmem:[%s9308_s5 + $0x108] sm:$0xff]  ;;  %v3154_v3 = vld [vmem:[%s9308_s5 + $0x10] sm:$0xff] }
 0x36d   : > { %6070 = vmatpush1.bf16.msra.mxu1 %v6069_v45  ;;  %v3157_v45 = vld [vmem:[%s9308_s5 + $0x28] sm:$0xff] }
 0x36e   : > { %3079 = vmatmul.mubr.f32.gmra.mrb[38].mxu1 %v8051_v23  ;;  %v5423_v23 = vld [vmem:[%s9308_s5 + $0xf8] sm:$0xff] }
 0x36f   : > { %5406 = vmatprep.mubr.msk.f32.mxu1 %vm2790_vm1, %v8068_v52  ;;  %v5422_v52 = vld [vmem:[%s9308_s5 + $0xf0] sm:$0xff] }
 0x372   : > { %3084 = vmatmul.mubr.f32.gmra.mrb[40].mxu1 %v8066_v51  ;;  %v6071_v51 = vpack.c.bf16 %v5425_v24, %v5423_v23  ;;  %v3159_v23 = vld [vmem:[%s9308_s5 + $0x38] sm:$0xff] }
 0x373   : > { %5407 = vmatprep.mubr.msk.f32.mxu1 %vm2790_vm1, %v8079_v6 }
 0x374   : > { %6072 = vmatprep.subr.bf16.mxu1 %v6071_v51 }
 0x376   : > { %3089 = vmatmul.mubr.f32.gmra.mrb[42].mxu1 %v8077_v5  ;;  %v5424_v5 = vld [vmem:[%s9308_s5 + $0x100] sm:$0xff] }
 0x377   : > { %5408 = vmatprep.mubr.msk.f32.mxu1 %vm2790_vm1, %v8090_v42  ;;  %v6073_v6 = vpack.c.bf16 %v5424_v5, %v5422_v52  ;;  %v5429_v42 = vld [vmem:[%s9308_s5 + $0x128] sm:$0xff]  ;;  %v6085_v52 = vpack.c.bf16 %v3154_v3, %v3152_v2 }
 0x379   : > { %6074 = vmatpush1.bf16.msra.mxu1 %v6073_v6  ;;  %v6087_v6 = vpack.c.bf16 %v3159_v23, %v3157_v45  ;;  %v5463_v45 = vld [vmem:[%s9308_s5 + $0x178] sm:$0xff] }
 0x37a   : > { %3094 = vmatmul.mubr.f32.gmra.mrb[44].mxu1 %v8088_v40  ;;  %v5427_v40 = vld [vmem:[%s9308_s5 + $0x118] sm:$0xff] }
 0x37b   : > { %5409 = vmatprep.mubr.msk.f32.mxu1 %vm2790_vm1, %v8101_v18  ;;  %v6075_v18 = vpack.c.bf16 %v5429_v42, %v5427_v40  ;;  %v3156_v40 = vld [vmem:[%s9308_s5 + $0x20] sm:$0xff]  ;;  %v3158_v42 = vld [vmem:[%s9308_s5 + $0x30] sm:$0xff] }
 0x37d   : > { %6076 = vmatprep.subr.bf16.mxu1 %v6075_v18  ;;  %v3161_v18 = vld [vmem:[%s9308_s5 + $0x48] sm:$0xff] }
 0x37e   : > { %3099 = vmatmul.mubr.f32.gmra.mrb[46].mxu1 %v8099_v17  ;;  %v5426_v17 = vld [vmem:[%s9308_s5 + $0x110] sm:$0xff] }
 0x37f   : > { %5410 = vmatprep.mubr.msk.f32.mxu1 %vm2790_vm1, %v8112_v31  ;;  %v6077_v26 = vpack.c.bf16 %v5428_v27, %v5426_v17  ;;  %v6079_v31 = vpack.c.bf16 %v5433_v33, %v5431_v19  ;;  %v3163_v27 = vld [vmem:[%s9308_s5 + $0x58] sm:$0xff]  ;;  %v6089_v33 = vpack.c.bf16 %v3158_v42, %v3156_v40 }
 0x381   : > { %6078 = vmatpush1.bf16.msra.mxu1 %v6077_v26 }
 0x382   : > { %3104 = vmatmul.mubr.f32.gmra.mrb[48].mxu1 %v8110_v30  ;;  %v5430_v30 = vld [vmem:[%s9308_s5 + $0x130] sm:$0xff]  ;;  %6080 = vmatprep.subr.bf16.mxu1 %v6079_v31  ;;  %v6091_v31 = vpack.c.bf16 %v3163_v27, %v3161_v18 }
 0x383   : > { %5411 = vmatprep.mubr.msk.f32.mxu1 %vm2790_vm1, %v2764_v4  ;;  %v6081_v48 = vpack.c.bf16 %v5432_v41, %v5430_v30  ;;  %v3160_v41 = vld [vmem:[%s9308_s5 + $0x40] sm:$0xff] }
 0x385   : > { %6082 = vmatpush1.bf16.msra.mxu1 %v6081_v48  ;;  %v3162_v48 = vld [vmem:[%s9308_s5 + $0x50] sm:$0xff] }
 0x386   : > { %3109 = vmatmul.mubr.f32.gmra.mrb[50].mxu1 %v2763_v0  ;;  %5436 = vmatprep.subr.msk.mxu1 %vm3228_vm2, %v5435_v53 }
 0x387   : > { %5412 = vmatprep.mubr.msk.f32.mxu1 %vm2790_vm1, %v2766_v46 }
 0x389   : > { %5437 = vmatpush1.msk.msra.mxu1 %vm3228_vm2, %v5434_v54  ;;  %v3165_v54 = vld [vmem:[%s9308_s5 + $0x68] sm:$0xff] }
 0x38a   : > { %3114 = vmatmul.mubr.f32.gmra.mrb[52].mxu1 %v2765_v43  ;;  %6084 = vmatprep.subr.bf16.mxu1 %v6083_v60 }
 0x38b   : > { %5413 = vmatprep.mubr.msk.f32.mxu1 %vm2790_vm1, %v2768_v25 }
 0x38e   : > { %3119 = vmatmul.mubr.f32.gmra.mrb[54].mxu1 %v2767_v22 }
 0x38f   : > { %3299 = vmatprep.mubr.f32.mxu1 %v6748_v39 }
 0x3c1   : > { %v8243_v62 = vpop.f32.mrb[0].mxu1 }
 0x3c2   : > { %v2901_v0 = vpop.f32.mrb[1].mxu1 }
 0x3c3   : > { %v6093_v0 = vpack.c.bf16 %v3162_v48, %v3160_v41 }
 0x3c9   : > { %v2904_v4 = vpop.f32.mrb[2].mxu1 }
 0x3ca   : > { %v2906_v7 = vpop.f32.mrb[3].mxu1 }
 0x3cb   : > { %v6095_v7 = vpack.c.bf16 %v3167_v55, %v3165_v54  ;;  %v5462_v55 = vld [vmem:[%s9308_s5 + $0x170] sm:$0xff] }
 0x3d1   : > { %v2909_v8 = vpop.f32.mrb[4].mxu1 }
 0x3d2   : > { %v2911_v9 = vpop.f32.mrb[5].mxu1 }
 0x3d3   : > { %v3166_v9 = vld [vmem:[%s9308_s5 + $0x70] sm:$0xff] }
 0x3d9   : > { %v2914_v34 = vpop.f32.mrb[6].mxu1 }
 0x3da   : > { %v2916_v35 = vpop.f32.mrb[7].mxu1 }
 0x3db   : > { %v3169_v35 = vld [vmem:[%s9308_s5 + $0x88] sm:$0xff] }
 0x3e1   : > { %v8245_v36 = vpop.f32.mrb[8].mxu1 }
 0x3e2   : > { %v2921_v37 = vpop.f32.mrb[9].mxu1 }
 0x3e3   : > { %v3171_v37 = vld [vmem:[%s9308_s5 + $0x98] sm:$0xff] }
 0x3e9   : > { %v8247_v38 = vpop.f32.mrb[10].mxu1 }
 0x3ea   : > { %v2926_v43 = vpop.f32.mrb[11].mxu1 }
 0x3f1   : > { %v8249_v46 = vpop.f32.mrb[12].mxu1 }
 0x3f2   : > { %v2931_v47 = vpop.f32.mrb[13].mxu1 }
 0x3f9   : > { %v8251_v49 = vpop.f32.mrb[14].mxu1 }
 0x3fa   : > { %v2936_v10 = vpop.f32.mrb[15].mxu1 }
 0x401   : > { %v8253_v14 = vpop.f32.mrb[16].mxu1 }
 0x402   : > { %v2941_v15 = vpop.f32.mrb[17].mxu1 }
 0x409   : > { %v8255_v16 = vpop.f32.mrb[18].mxu1 }
 0x40a   : > { %v2946_v20 = vpop.f32.mrb[19].mxu1 }
 0x40b   : > { %v6099_v20 = vpack.c.bf16 %v3171_v37, %v3169_v35  ;;  %v5464_v35 = vld [vmem:[%s9308_s5 + $0x180] sm:$0xff]  ;;  %v5466_v37 = vld [vmem:[%s9308_s5 + $0x190] sm:$0xff] }
 0x411   : > { %v8257_v21 = vpop.f32.mrb[20].mxu1 }
 0x412   : > { %v2951_v22 = vpop.f32.mrb[21].mxu1 }
 0x413   : > { %v3168_v22 = vld [vmem:[%s9308_s5 + $0x80] sm:$0xff] }
 0x419   : > { %v8259_v25 = vpop.f32.mrb[22].mxu1 }
 0x41a   : > { %v2956_v63 = vpop.f32.mrb[23].mxu1 }
 0x421   : > { %v8261_v1 = vpop.f32.mrb[24].mxu1 }
 0x422   : > { %v2961_v32 = vpop.f32.mrb[25].mxu1 }
 0x429   : > { %v8263_v12 = vpop.f32.mrb[26].mxu1 }
 0x42a   : > { %v2966_v11 = vpop.f32.mrb[27].mxu1 }
 0x42d   : > { %v8265_v13 = vpop.f32.mrb[28].mxu1 }
 0x42e   : > { %v3124_v28 = vmax.f32 %v8243_v62, %v8265_v13  ;;  %v3057_v29 = vpop.f32.mrb[29].mxu1  ;;  %v5471_v62 = vld [vmem:[%s9308_s5 + $0x1b8] sm:$0xff] }
 0x431   : > { %v3060_v44 = vpop.f32.mrb[30].mxu1 }
 0x432   : > { %v3125_v24 = vmax.f32 %v2904_v4, %v3060_v44  ;;  %v3062_v51 = vpop.f32.mrb[31].mxu1  ;;  %v3173_v44 = vld [vmem:[%s9308_s5 + $0xa8] sm:$0xf] }
 0x434   : > { %v8281_v5 = vmax.f32 %v3125_v24, 0.0 }
 0x435   : > { %v3065_v17 = vpop.f32.mrb[32].mxu1 }
 0x436   : > { %v3126_v26 = vmax.f32 %v2909_v8, %v3065_v17  ;;  %v3067_v19 = vpop.f32.mrb[33].mxu1  ;;  %5438 = vmatmul.mubr.msk.f32.vlgmr.msra.gmra.mrb[56].mxu1 %vm3197_vm3, %v8281_v5  ;;  %v3164_v8 = vld [vmem:[%s9308_s5 + $0x60] sm:$0xff] }
 0x437   : > { %6086 = vmatpush1.bf16.msra.mxu1 %v6085_v52  ;;  %3305 = vmatprep.mubr.f32.mxu1 %v6748_v39  ;;  %v6097_v10 = vpack.c.bf16 %v3166_v9, %v3164_v8  ;;  %v3172_v52 = vld [vmem:[%s9308_s5 + $0xa0] sm:$0xf]  ;;  %v3138_v9 = vmax.f32 %v3124_v28, 0.0 }
 0x438   : > { %v8298_v30 = vmax.f32 %v3126_v26, 0.0  ;;  %6088 = vmatprep.subr.bf16.mxu1 %v6087_v6 }
 0x439   : > { %v3070_v53 = vpop.f32.mrb[34].mxu1 }
 0x43a   : > { %v3127_v56 = vmax.f32 %v2914_v34, %v3070_v53  ;;  %v3072_v60 = vpop.f32.mrb[35].mxu1  ;;  %5439 = vmatmul.mubr.msk.f32.gmra.mrb[58].mxu1 %vm3197_vm3, %v8298_v30 }
 0x43b   : > { %3311 = vmatprep.mubr.f32.mxu1 %v6748_v39  ;;  %6090 = vmatpush1.bf16.msra.mxu1 %v6089_v33  ;;  %v5467_v60 = vld [vmem:[%s9308_s5 + $0x198] sm:$0xff] }
 0x43c   : > { %v8315_v4 = vmax.f32 %v3127_v56, 0.0  ;;  %6092 = vmatprep.subr.bf16.mxu1 %v6091_v31 }
 0x43d   : > { %v3075_v34 = vpop.f32.mrb[36].mxu1 }
 0x43e   : > { %v3128_v43 = vmax.f32 %v8245_v36, %v3075_v34  ;;  %v3077_v47 = vpop.f32.mrb[37].mxu1  ;;  %5440 = vmatmul.mubr.msk.f32.gmra.mrb[60].mxu1 %vm3197_vm3, %v8315_v4  ;;  %v3170_v36 = vld [vmem:[%s9308_s5 + $0x90] sm:$0xff] }
 0x43f   : > { %3317 = vmatprep.mubr.f32.mxu1 %v6748_v39  ;;  %6094 = vmatpush1.bf16.msra.mxu1 %v6093_v0  ;;  %v6101_v29 = vpack.c.bf16 %v3170_v36, %v3168_v22  ;;  %v5469_v47 = vld [vmem:[%s9308_s5 + $0x1a8] sm:$0xff]  ;;  %v5468_v22 = vld [vmem:[%s9308_s5 + $0x1a0] sm:$0xff]  ;;  %v5470_v36 = vld [vmem:[%s9308_s5 + $0x1b0] sm:$0xff] }
 0x440   : > { %v8333_v15 = vmax.f32 %v3128_v43, 0.0  ;;  %6096 = vmatprep.subr.bf16.mxu1 %v6095_v7 }
 0x441   : > { %v3080_v63 = vpop.f32.mrb[38].mxu1 }
 0x442   : > { %v3129_v32 = vmax.f32 %v8247_v38, %v3080_v63  ;;  %v3082_v11 = vpop.f32.mrb[39].mxu1  ;;  %5441 = vmatmul.mubr.msk.f32.gmra.mrb[62].mxu1 %vm3197_vm3, %v8333_v15  ;;  %v5461_v38 = vld [vmem:[%s9308_s5 + $0x168] sm:$0xff] }
 0x443   : > { %3323 = vmatprep.mubr.f32.mxu1 %v6748_v39  ;;  %6098 = vmatpush1.bf16.msra.mxu1 %v6097_v10  ;;  %v6103_v6 = vpack.c.bf16 %v5463_v45, %v5461_v38  ;;  %v6109_v10 = vpack.c.bf16 %v5466_v37, %v5464_v35  ;;  %v5475_v11 = vld [vmem:[%s9308_s5 + $0x1d8] sm:$0xff]  ;;  %v5472_v45 = vld [vmem:[%s9308_s5 + $0x1c0] sm:$0xff]  ;;  %v5502_v35 = vld [vmem:[%s9308_s5 + $0x250] sm:$0xff] }
 0x444   : > { %v8345_v2 = vmax.f32 %v3129_v32, 0.0  ;;  %6100 = vmatprep.subr.bf16.mxu1 %v6099_v20  ;;  %v6111_v20 = vpack.c.bf16 %v5471_v62, %v5469_v47  ;;  %v5473_v32 = vld [vmem:[%s9308_s5 + $0x1c8] sm:$0xff]  ;;  %v5504_v37 = vld [vmem:[%s9308_s5 + $0x260] sm:$0xff]  ;;  %v5507_v47 = vld [vmem:[%s9308_s5 + $0x278] sm:$0xff] }
 0x445   : > { %v3085_v3 = vpop.f32.mrb[40].mxu1  ;;  %v6115_v38 = vpack.c.bf16 %v5475_v11, %v5473_v32  ;;  %v6133_v62 = vpack.c.bf16 %v5504_v37, %v5502_v35  ;;  %v5544_v35 = vld [vmem:[%s9308_s5 + $0x340] sm:$0xff]  ;;  %v5546_v37 = vld [vmem:[%s9308_s5 + $0x350] sm:$0xff] }
 0x446   : > { %v3130_v23 = vmax.f32 %v8249_v46, %v3085_v3  ;;  %v3087_v24 = vpop.f32.mrb[41].mxu1  ;;  %5442 = vmatmul.mubr.msk.f32.gmra.mrb[64].mxu1 %vm3197_vm3, %v8345_v2 }
 0x447   : > { %3329 = vmatprep.mubr.f32.mxu1 %v6748_v39  ;;  %6102 = vmatpush1.bf16.msra.mxu1 %v6101_v29  ;;  %v5477_v24 = vld [vmem:[%s9308_s5 + $0x1e8] sm:$0xff] }
 0x448   : > { %v8360_v51 = vmax.f32 %v3130_v23, 0.0  ;;  %5448 = vmatprep.subr.msk.mxu1 %vm3228_vm2, %v3173_v44  ;;  %v6113_v44 = vpack.c.bf16 %v5470_v36, %v5468_v22  ;;  %v5474_v23 = vld [vmem:[%s9308_s5 + $0x1d0] sm:$0xff]  ;;  %v5511_v22 = vld [vmem:[%s9308_s5 + $0x298] sm:$0xff]  ;;  %v5513_v36 = vld [vmem:[%s9308_s5 + $0x2a8] sm:$0xff] }
 0x449   : > { %v3090_v40 = vpop.f32.mrb[42].mxu1  ;;  %v6139_v11 = vpack.c.bf16 %v5513_v36, %v5511_v22  ;;  %v4069_v36 = vld [vmem:[%s9310_s7 + $0x10] sm:$0xff] }
 0x44a   : > { %v3131_v42 = vmax.f32 %v8251_v49, %v3090_v40  ;;  %v3092_v46 = vpop.f32.mrb[43].mxu1  ;;  %5443 = vmatmul.mubr.msk.f32.gmra.mrb[66].mxu1 %vm3197_vm3, %v8360_v51  ;;  %v5476_v40 = vld [vmem:[%s9308_s5 + $0x1e0] sm:$0xff] }
 0x44b   : > { %3335 = vmatprep.mubr.f32.mxu1 %v6748_v39  ;;  %5449 = vmatpush1.msk.msra.mxu1 %vm3228_vm2, %v3172_v52  ;;  %v6117_v52 = vpack.c.bf16 %v5474_v23, %v5472_v45  ;;  %v5515_v45 = vld [vmem:[%s9308_s5 + $0x2b8] sm:$0xf]  ;;  %v5529_v23 = vld [vmem:[%s9308_s5 + $0x2c8] sm:$0xff] }
 0x44c   : > { %v8371_v17 = vmax.f32 %v3131_v42, 0.0  ;;  %6104 = vmatprep.subr.bf16.mxu1 %v6103_v6  ;;  %v5478_v42 = vld [vmem:[%s9308_s5 + $0x1f0] sm:$0xff] }
 0x44d   : > { %v3095_v18 = vpop.f32.mrb[44].mxu1  ;;  %v6121_v46 = vpack.c.bf16 %v5478_v42, %v5476_v40  ;;  %v5528_v40 = vld [vmem:[%s9308_s5 + $0x2c0] sm:$0xff]  ;;  %v5530_v42 = vld [vmem:[%s9308_s5 + $0x2d0] sm:$0xff] }
 0x44e   : > { %v3132_v27 = vmax.f32 %v8253_v14, %v3095_v18  ;;  %v3097_v26 = vpop.f32.mrb[45].mxu1  ;;  %5444 = vmatmul.mubr.msk.f32.gmra.mrb[68].mxu1 %vm3197_vm3, %v8371_v17  ;;  %v5481_v18 = vld [vmem:[%s9308_s5 + $0x208] sm:$0xf] }
 0x44f   : > { %3341 = vmatprep.mubr.f32.mxu1 %v6748_v39  ;;  %v5497_v26 = vld [vmem:[%s9308_s5 + $0x228] sm:$0xff] }
 0x450   : > { %v8377_v49 = vmax.f32 %v3132_v27, 0.0  ;;  %v5495_v27 = vld [vmem:[%s9308_s5 + $0x218] sm:$0xff] }
 0x451   : > { %v3100_v19 = vpop.f32.mrb[46].mxu1 }
 0x452   : > { %v3133_v33 = vmax.f32 %v8255_v16, %v3100_v19  ;;  %v3102_v31 = vpop.f32.mrb[47].mxu1  ;;  %5445 = vmatmul.mubr.msk.f32.gmra.mrb[70].mxu1 %vm3197_vm3, %v8377_v49  ;;  %v5460_v16 = vld [vmem:[%s9308_s5 + $0x160] sm:$0xff] }
 0x453   : > { %3347 = vmatprep.mubr.f32.mxu1 %v6748_v39  ;;  %v6105_v8 = vpack.c.bf16 %v5462_v55, %v5460_v16  ;;  %v5480_v19 = vld [vmem:[%s9308_s5 + $0x200] sm:$0xf]  ;;  %v5494_v31 = vld [vmem:[%s9308_s5 + $0x210] sm:$0xff] }
 0x454   : > { %v8383_v41 = vmax.f32 %v3133_v33, 0.0  ;;  %v6123_v33 = vpack.c.bf16 %v5497_v26, %v5495_v27  ;;  %v5534_v27 = vld [vmem:[%s9308_s5 + $0x2f0] sm:$0xff]  ;;  %v5537_v26 = vld [vmem:[%s9308_s5 + $0x308] sm:$0xff] }
 0x455   : > { %v3105_v14 = vpop.f32.mrb[48].mxu1 }
 0x456   : > { %v3134_v48 = vmax.f32 %v8257_v21, %v3105_v14  ;;  %v3107_v53 = vpop.f32.mrb[49].mxu1  ;;  %5446 = vmatmul.mubr.msk.f32.gmra.mrb[72].mxu1 %vm3197_vm3, %v8383_v41  ;;  %v5465_v21 = vld [vmem:[%s9308_s5 + $0x188] sm:$0xff]  ;;  %v5496_v14 = vld [vmem:[%s9308_s5 + $0x220] sm:$0xff] }
 0x457   : > { %3353 = vmatprep.mubr.f32.mxu1 %v6748_v39  ;;  %v6107_v34 = vpack.c.bf16 %v5467_v60, %v5465_v21  ;;  %v5501_v53 = vld [vmem:[%s9308_s5 + $0x248] sm:$0xff]  ;;  %v6125_v16 = vpack.c.bf16 %v5496_v14, %v5494_v31  ;;  %v5498_v21 = vld [vmem:[%s9308_s5 + $0x230] sm:$0xff]  ;;  %v5500_v60 = vld [vmem:[%s9308_s5 + $0x240] sm:$0xff] }
 0x458   : > { %v8389_v54 = vmax.f32 %v3134_v48, 0.0  ;;  %v5499_v48 = vld [vmem:[%s9308_s5 + $0x238] sm:$0xff]  ;;  %v5536_v14 = vld [vmem:[%s9308_s5 + $0x300] sm:$0xff] }
 0x459   : > { %v8397_v56 = vpop.f32.mrb[50].mxu1  ;;  %v6127_v55 = vpack.c.bf16 %v5501_v53, %v5499_v48  ;;  %v5538_v48 = vld [vmem:[%s9308_s5 + $0x310] sm:$0xff]  ;;  %v5541_v53 = vld [vmem:[%s9308_s5 + $0x328] sm:$0xff] }
 0x45a   : > { %v3135_v0 = vmax.f32 %v8259_v25, %v8397_v56  ;;  %v3112_v7 = vpop.f32.mrb[51].mxu1  ;;  %5447 = vmatmul.mubr.msk.f32.gmra.mrb[74].mxu1 %vm3197_vm3, %v8389_v54  ;;  %v6145_v25 = vpack.c.bf16 %v5530_v42, %v5528_v40  ;;  %v4082_v40 = vld [vmem:[%s9310_s7 + $0x78] sm:$0xff]  ;;  %v4083_v42 = vld [vmem:[%s9310_s7 + $0x80] sm:$0xff] }
 0x45b   : > { %3433 = vmatprep.mubr.f32.mxu1 %v6748_v39  ;;  %v5503_v7 = vld [vmem:[%s9308_s5 + $0x258] sm:$0xff] }
 0x45d   : > { %v8419_v43 = vpop.f32.mrb[52].mxu1 }
 0x45e   : > { %v3136_v13 = vmax.f32 %v8261_v1, %v8419_v43  ;;  %v3117_v28 = vpop.f32.mrb[53].mxu1  ;;  %5450 = vmatmul.mubr.msk.f32.vlgmr.msra.gmra.mrb[56].mxu1 %vm3197_vm3, %v3138_v9  ;;  %v6129_v9 = vpack.c.bf16 %v5500_v60, %v5498_v21  ;;  %v5540_v21 = vld [vmem:[%s9308_s5 + $0x320] sm:$0xff]  ;;  %v5542_v60 = vld [vmem:[%s9308_s5 + $0x330] sm:$0xff]  ;;  %v4070_v1 = vld [vmem:[%s9310_s7 + $0x18] sm:$0xff] }
 0x45f   : > { %6106 = vmatpush1.bf16.msra.mxu1 %v6105_v8  ;;  %3439 = vmatprep.mubr.f32.mxu1 %v6748_v39  ;;  %v5505_v8 = vld [vmem:[%s9308_s5 + $0x268] sm:$0xff]  ;;  %v6167_v43 = vpack.c.bf16 %v4070_v1, %v4069_v36  ;;  %v4199_v1 = vld [vmem:[%s9311_s8 + $0x30] sm:$0xff] }
 0x460   : > { %6108 = vmatprep.subr.bf16.mxu1 %v6107_v34  ;;  %v6131_v34 = vpack.c.bf16 %v5505_v8, %v5503_v7  ;;  %v5545_v7 = vld [vmem:[%s9308_s5 + $0x348] sm:$0xff]  ;;  %v5547_v8 = vld [vmem:[%s9308_s5 + $0x358] sm:$0xff] }
 0x461   : > { %v8437_v63 = vpop.f32.mrb[54].mxu1 }
 0x462   : > { %v3137_v29 = vmax.f32 %v8263_v12, %v8437_v63  ;;  %v3122_v3 = vpop.f32.mrb[55].mxu1  ;;  %5451 = vmatmul.mubr.msk.f32.gmra.mrb[58].mxu1 %vm3197_vm3, %v8281_v5  ;;  %v5479_v5 = vld [vmem:[%s9308_s5 + $0x1f8] sm:$0xff] }
 0x463   : > { %3445 = vmatprep.mubr.f32.mxu1 %v6748_v39  ;;  %6110 = vmatpush1.bf16.msra.mxu1 %v6109_v10  ;;  %v6119_v6 = vpack.c.bf16 %v5479_v5, %v5477_v24  ;;  %v5506_v10 = vld [vmem:[%s9308_s5 + $0x270] sm:$0xff]  ;;  %v5531_v24 = vld [vmem:[%s9308_s5 + $0x2d8] sm:$0xff] }
 0x464   : > { %6112 = vmatprep.subr.bf16.mxu1 %v6111_v20  ;;  %v5508_v20 = vld [vmem:[%s9308_s5 + $0x280] sm:$0xff]  ;;  %v5510_v3 = vld [vmem:[%s9308_s5 + $0x290] sm:$0xff]  ;;  %v4086_v12 = vld [vmem:[%s9310_s7 + $0x98] sm:$0xff] }
 0x465   : > { %v6137_v32 = vpack.c.bf16 %v5508_v20, %v5506_v10  ;;  %v5514_v5 = vld [vmem:[%s9308_s5 + $0x2b0] sm:$0xf]  ;;  %v4067_v10 = vld [vmem:[%s9310_s7] sm:$0xff]  ;;  %v4068_v20 = vld [vmem:[%s9310_s7 + $0x8] sm:$0xff] }
 0x466   : > { %5452 = vmatmul.mubr.msk.f32.gmra.mrb[60].mxu1 %vm3197_vm3, %v8298_v30  ;;  %v6164_v22 = vpack.c.bf16 %v4068_v20, %v4067_v10 }
 0x467   : > { %3451 = vmatprep.mubr.f32.mxu1 %v6748_v39  ;;  %6114 = vmatpush1.bf16.msra.mxu1 %v6113_v44  ;;  %v5512_v44 = vld [vmem:[%s9308_s5 + $0x2a0] sm:$0xff] }
 0x468   : > { %6116 = vmatprep.subr.bf16.mxu1 %v6115_v38  ;;  %v6141_v38 = vpack.c.bf16 %v5512_v44, %v5510_v3  ;;  %v4074_v3 = vld [vmem:[%s9310_s7 + $0x38] sm:$0xff]  ;;  %v4075_v44 = vld [vmem:[%s9310_s7 + $0x40] sm:$0xff] }
 0x46a   : > { %5453 = vmatmul.mubr.msk.f32.gmra.mrb[62].mxu1 %vm3197_vm3, %v8315_v4 }
 0x46b   : > { %3457 = vmatprep.mubr.f32.mxu1 %v6748_v39  ;;  %6118 = vmatpush1.bf16.msra.mxu1 %v6117_v52  ;;  %v6143_v52 = vpack.c.bf16 %v5531_v24, %v5529_v23  ;;  %v4078_v23 = vld [vmem:[%s9310_s7 + $0x58] sm:$0xff]  ;;  %v4079_v24 = vld [vmem:[%s9310_s7 + $0x60] sm:$0xff] }
 0x46c   : > { %6120 = vmatprep.subr.bf16.mxu1 %v6119_v6  ;;  %v8604_v6 = vmax.f32 %v3135_v0, 0.0  ;;  %v5532_v0 = vld [vmem:[%s9308_s5 + $0x2e0] sm:$0xff] }
 0x46e   : > { %5454 = vmatmul.mubr.msk.f32.gmra.mrb[64].mxu1 %vm3197_vm3, %v8333_v15 }
 0x46f   : > { %3463 = vmatprep.mubr.f32.mxu1 %v6748_v39  ;;  %6122 = vmatpush1.bf16.msra.mxu1 %v6121_v46  ;;  %v5533_v46 = vld [vmem:[%s9308_s5 + $0x2e8] sm:$0xff] }
 0x470   : > { %5482 = vmatprep.subr.msk.mxu1 %vm3228_vm2, %v5481_v18  ;;  %v5535_v18 = vld [vmem:[%s9308_s5 + $0x2f8] sm:$0xff] }
 0x471   : > { %v6147_v56 = vpack.c.bf16 %v5535_v18, %v5533_v46  ;;  %v4085_v18 = vld [vmem:[%s9310_s7 + $0x90] sm:$0xff] }
 0x472   : > { %5455 = vmatmul.mubr.msk.f32.gmra.mrb[66].mxu1 %vm3197_vm3, %v8345_v2  ;;  %v6191_v63 = vpack.c.bf16 %v4086_v12, %v4085_v18  ;;  %v4206_v18 = vld [vmem:[%s9311_s8 + $0x68] sm:$0xff] }
 0x473   : > { %3469 = vmatprep.mubr.f32.mxu1 %v6748_v39  ;;  %5483 = vmatpush1.msk.msra.mxu1 %vm3228_vm2, %v5480_v19  ;;  %v5539_v19 = vld [vmem:[%s9308_s5 + $0x318] sm:$0xff] }
 0x474   : > { %6124 = vmatprep.subr.bf16.mxu1 %v6123_v33  ;;  %v6149_v33 = vpack.c.bf16 %v5534_v27, %v5532_v0  ;;  %v6151_v31 = vpack.c.bf16 %v5539_v19, %v5537_v26 }
 0x476   : > { %5456 = vmatmul.mubr.msk.f32.gmra.mrb[68].mxu1 %vm3197_vm3, %v8360_v51 }
 0x477   : > { %3475 = vmatprep.mubr.f32.mxu1 %v6748_v39 }
 0x47a   : > { %5457 = vmatmul.mubr.msk.f32.gmra.mrb[70].mxu1 %vm3197_vm3, %v8371_v17 }
 0x47b   : > { %3481 = vmatprep.mubr.f32.mxu1 %v6748_v39 }
 0x47e   : > { %5458 = vmatmul.mubr.msk.f32.gmra.mrb[72].mxu1 %vm3197_vm3, %v8377_v49 }
 0x47f   : > { %3487 = vmatprep.mubr.f32.mxu1 %v6748_v39 }
 0x482   : > { %5459 = vmatmul.mubr.msk.f32.gmra.mrb[74].mxu1 %vm3197_vm3, %v8383_v41 }
 0x483   : > { %3590 = vmatprep.mubr.f32.mxu1 %v6748_v39 }
 0x486   : > { %5484 = vmatmul.mubr.msk.f32.vlgmr.msra.gmra.mrb[56].mxu1 %vm3197_vm3, %v8298_v30  ;;  %v5509_v30 = vld [vmem:[%s9308_s5 + $0x288] sm:$0xff] }
 0x487   : > { %6126 = vmatpush1.bf16.msra.mxu1 %v6125_v16  ;;  %3596 = vmatprep.mubr.f32.mxu1 %v6748_v39  ;;  %v6135_v28 = vpack.c.bf16 %v5509_v30, %v5507_v47  ;;  %v6153_v16 = vpack.c.bf16 %v5538_v48, %v5536_v14  ;;  %v6161_v47 = vpack.c.bf16 %v5546_v37, %v5544_v35  ;;  %v5549_v30 = vld [vmem:[%s9308_s5 + $0x368] sm:$0xf]  ;;  %v4193_v14 = vld [vmem:[%s9311_s8] sm:$0xff] }
 0x488   : > { %6128 = vmatprep.subr.bf16.mxu1 %v6127_v55  ;;  %v4197_v37 = vld [vmem:[%s9311_s8 + $0x20] sm:$0xff] }
 0x48a   : > { %5485 = vmatmul.mubr.msk.f32.gmra.mrb[58].mxu1 %vm3197_vm3, %v8315_v4 }
 0x48b   : > { %3602 = vmatprep.mubr.f32.mxu1 %v6748_v39  ;;  %6130 = vmatpush1.bf16.msra.mxu1 %v6129_v9  ;;  %v6157_v9 = vpack.c.bf16 %v5542_v60, %v5540_v21  ;;  %v4195_v21 = vld [vmem:[%s9311_s8 + $0x10] sm:$0xff]  ;;  %v4196_v60 = vld [vmem:[%s9311_s8 + $0x18] sm:$0xff] }
 0x48c   : > { %6132 = vmatprep.subr.bf16.mxu1 %v6131_v34  ;;  %v6159_v34 = vpack.c.bf16 %v5547_v8, %v5545_v7  ;;  %v6197_v8 = vpack.c.bf16 %v4196_v60, %v4195_v21 }
 0x48e   : > { %5486 = vmatmul.mubr.msk.f32.gmra.mrb[60].mxu1 %vm3197_vm3, %v8333_v15 }
 0x48f   : > { %3608 = vmatprep.mubr.f32.mxu1 %v6748_v39  ;;  %6134 = vmatpush1.bf16.msra.mxu1 %v6133_v62  ;;  %v5548_v62 = vld [vmem:[%s9308_s5 + $0x360] sm:$0xf] }
 0x490   : > { %6136 = vmatprep.subr.bf16.mxu1 %v6135_v28  ;;  %v3150_v28 = vmax.f32 %v3136_v13, 0.0  ;;  %v4071_v13 = vld [vmem:[%s9310_s7 + $0x20] sm:$0xff] }
 0x492   : > { %5487 = vmatmul.mubr.msk.f32.gmra.mrb[62].mxu1 %vm3197_vm3, %v8345_v2 }
 0x493   : > { %3614 = vmatprep.mubr.f32.mxu1 %v6748_v39  ;;  %6138 = vmatpush1.bf16.msra.mxu1 %v6137_v32  ;;  %v4072_v32 = vld [vmem:[%s9310_s7 + $0x28] sm:$0xff] }
 0x494   : > { %6140 = vmatprep.subr.bf16.mxu1 %v6139_v11  ;;  %v4073_v11 = vld [vmem:[%s9310_s7 + $0x30] sm:$0xff] }
 0x496   : > { %5488 = vmatmul.mubr.msk.f32.gmra.mrb[64].mxu1 %vm3197_vm3, %v8360_v51 }
 0x497   : > { %3620 = vmatprep.mubr.f32.mxu1 %v6748_v39  ;;  %6142 = vmatpush1.bf16.msra.mxu1 %v6141_v38  ;;  %v4076_v38 = vld [vmem:[%s9310_s7 + $0x48] sm:$0xff] }
 0x498   : > { %5516 = vmatprep.subr.msk.mxu1 %vm3228_vm2, %v5515_v45  ;;  %v4077_v45 = vld [vmem:[%s9310_s7 + $0x50] sm:$0xff] }
 0x49a   : > { %5489 = vmatmul.mubr.msk.f32.gmra.mrb[66].mxu1 %vm3197_vm3, %v8371_v17 }
 0x49b   : > { %3626 = vmatprep.mubr.f32.mxu1 %v6748_v39  ;;  %5517 = vmatpush1.msk.msra.mxu1 %vm3228_vm2, %v5514_v5  ;;  %v4080_v5 = vld [vmem:[%s9310_s7 + $0x68] sm:$0xff] }
 0x49c   : > { %6144 = vmatprep.subr.bf16.mxu1 %v6143_v52  ;;  %v4081_v52 = vld [vmem:[%s9310_s7 + $0x70] sm:$0xff] }
 0x49e   : > { %5490 = vmatmul.mubr.msk.f32.gmra.mrb[68].mxu1 %vm3197_vm3, %v8377_v49 }
 0x49f   : > { %3632 = vmatprep.mubr.f32.mxu1 %v6748_v39 }
 0x4a2   : > { %5491 = vmatmul.mubr.msk.f32.gmra.mrb[70].mxu1 %vm3197_vm3, %v8383_v41 }
 0x4a3   : > { %3638 = vmatprep.mubr.f32.mxu1 %v6748_v39 }
 0x4a6   : > { %5492 = vmatmul.mubr.msk.f32.gmra.mrb[72].mxu1 %vm3197_vm3, %v8389_v54 }
 0x4a7   : > { %3644 = vmatprep.mubr.f32.mxu1 %v6748_v39 }
 0x4aa   : > { %5493 = vmatmul.mubr.msk.f32.gmra.mrb[74].mxu1 %vm3197_vm3, %v8604_v6 }
 0x4ab   : > { %3767 = vmatprep.mubr.f32.mxu1 %v6748_v39 }
 0x4ae   : > { %5518 = vmatmul.mubr.msk.f32.vlgmr.msra.gmra.mrb[56].mxu1 %vm3197_vm3, %v8315_v4  ;;  %v5543_v4 = vld [vmem:[%s9308_s5 + $0x338] sm:$0xff] }
 0x4af   : > { %6146 = vmatpush1.bf16.msra.mxu1 %v6145_v25  ;;  %3773 = vmatprep.mubr.f32.mxu1 %v6748_v39  ;;  %v6155_v55 = vpack.c.bf16 %v5543_v4, %v5541_v53 }
 0x4b0   : > { %6148 = vmatprep.subr.bf16.mxu1 %v6147_v56 }
 0x4b2   : > { %5519 = vmatmul.mubr.msk.f32.gmra.mrb[58].mxu1 %vm3197_vm3, %v8333_v15 }
 0x4b3   : > { %3779 = vmatprep.mubr.f32.mxu1 %v6748_v39  ;;  %6150 = vmatpush1.bf16.msra.mxu1 %v6149_v33 }
 0x4b4   : > { %6152 = vmatprep.subr.bf16.mxu1 %v6151_v31 }
 0x4b6   : > { %5520 = vmatmul.mubr.msk.f32.gmra.mrb[60].mxu1 %vm3197_vm3, %v8345_v2 }
 0x4b7   : > { %3785 = vmatprep.mubr.f32.mxu1 %v6748_v39  ;;  %6154 = vmatpush1.bf16.msra.mxu1 %v6153_v16 }
 0x4b8   : > { %6156 = vmatprep.subr.bf16.mxu1 %v6155_v55 }
 0x4ba   : > { %5521 = vmatmul.mubr.msk.f32.gmra.mrb[62].mxu1 %vm3197_vm3, %v8360_v51 }
 0x4bb   : > { %3791 = vmatprep.mubr.f32.mxu1 %v6748_v39  ;;  %6158 = vmatpush1.bf16.msra.mxu1 %v6157_v9 }
 0x4bc   : > { %6160 = vmatprep.subr.bf16.mxu1 %v6159_v34 }
 0x4be   : > { %5522 = vmatmul.mubr.msk.f32.gmra.mrb[64].mxu1 %vm3197_vm3, %v8371_v17 }
 0x4bf   : > { %3797 = vmatprep.mubr.f32.mxu1 %v6748_v39  ;;  %6162 = vmatpush1.bf16.msra.mxu1 %v6161_v47  ;;  %v4198_v47 = vld [vmem:[%s9311_s8 + $0x28] sm:$0xff] }
 0x4c0   : > { %5550 = vmatprep.subr.msk.mxu1 %vm3228_vm2, %v5549_v30 }
 0x4c2   : > { %5523 = vmatmul.mubr.msk.f32.gmra.mrb[66].mxu1 %vm3197_vm3, %v8377_v49 }
 0x4c3   : > { %3803 = vmatprep.mubr.f32.mxu1 %v6748_v39  ;;  %5551 = vmatpush1.msk.msra.mxu1 %vm3228_vm2, %v5548_v62 }
 0x4c4   : > { %6163 = vmatprep.subr.bf16.mxu1 %v6749_v50 }
 0x4c6   : > { %5524 = vmatmul.mubr.msk.f32.gmra.mrb[68].mxu1 %vm3197_vm3, %v8383_v41 }
 0x4c7   : > { %3809 = vmatprep.mubr.f32.mxu1 %v6748_v39 }
 0x4ca   : > { %5525 = vmatmul.mubr.msk.f32.gmra.mrb[70].mxu1 %vm3197_vm3, %v8389_v54 }
 0x4cb   : > { %3815 = vmatprep.mubr.f32.mxu1 %v6748_v39 }
 0x4ce   : > { %5526 = vmatmul.mubr.msk.f32.gmra.mrb[72].mxu1 %vm3197_vm3, %v8604_v6 }
 0x4cf   : > { %3821 = vmatprep.mubr.f32.mxu1 %v6748_v39 }
 0x4d2   : > { %5527 = vmatmul.mubr.msk.f32.gmra.mrb[74].mxu1 %vm3197_vm3, %v3150_v28 }
 0x4d3   : > { %3944 = vmatprep.mubr.f32.mxu1 %v6748_v39 }
 0x4d6   : > { %5552 = vmatmul.mubr.msk.f32.vlgmr.msra.gmra.mrb[56].mxu1 %vm3197_vm3, %v8333_v15  ;;  %v6170_v15 = vpack.c.bf16 %v4072_v32, %v4071_v13 }
 0x4d7   : > { %3950 = vmatprep.mubr.f32.mxu1 %v6748_v39  ;;  %6165 = vmatpush1.bf16.msra.mxu1 %v6164_v22  ;;  %v6200_v22 = vpack.c.bf16 %v4198_v47, %v4197_v37  ;;  %v5574_v37 = vld [vmem:[%s9312_s9 + $0x60] sm:$0xff]  ;;  %v5575_v47 = vld [vmem:[%s9312_s9 + $0x68] sm:$0xff] }
 0x4d8   : > { %6166 = vmatprep.subr.bf16.mxu1 %v6749_v50 }
 0x4da   : > { %5553 = vmatmul.mubr.msk.f32.gmra.mrb[58].mxu1 %vm3197_vm3, %v8345_v2  ;;  %v6173_v2 = vpack.c.bf16 %v4074_v3, %v4073_v11 }
 0x4db   : > { %3956 = vmatprep.mubr.f32.mxu1 %v6748_v39  ;;  %6168 = vmatpush1.bf16.msra.mxu1 %v6167_v43  ;;  %v4200_v43 = vld [vmem:[%s9311_s8 + $0x38] sm:$0xff] }
 0x4dc   : > { %6169 = vmatprep.subr.bf16.mxu1 %v6749_v50  ;;  %v6203_v32 = vpack.c.bf16 %v4200_v43, %v4199_v1  ;;  %v5580_v1 = vld [vmem:[%s9312_s9 + $0x90] sm:$0xff]  ;;  %v5581_v43 = vld [vmem:[%s9312_s9 + $0x98] sm:$0xff] }
 0x4de   : > { %5554 = vmatmul.mubr.msk.f32.gmra.mrb[60].mxu1 %vm3197_vm3, %v8360_v51  ;;  %v6176_v51 = vpack.c.bf16 %v4076_v38, %v4075_v44  ;;  %v4202_v44 = vld [vmem:[%s9311_s8 + $0x48] sm:$0xff] }
 0x4df   : > { %3962 = vmatprep.mubr.f32.mxu1 %v6748_v39  ;;  %6171 = vmatpush1.bf16.msra.mxu1 %v6170_v15 }
 0x4e0   : > { %6172 = vmatprep.subr.bf16.mxu1 %v6749_v50 }
 0x4e2   : > { %5555 = vmatmul.mubr.msk.f32.gmra.mrb[62].mxu1 %vm3197_vm3, %v8371_v17  ;;  %v6179_v17 = vpack.c.bf16 %v4078_v23, %v4077_v45 }
 0x4e3   : > { %3968 = vmatprep.mubr.f32.mxu1 %v6748_v39  ;;  %6174 = vmatpush1.bf16.msra.mxu1 %v6173_v2  ;;  %v4201_v2 = vld [vmem:[%s9311_s8 + $0x40] sm:$0xff] }
 0x4e4   : > { %6175 = vmatprep.subr.bf16.mxu1 %v6749_v50 }
 0x4e6   : > { %5556 = vmatmul.mubr.msk.f32.gmra.mrb[64].mxu1 %vm3197_vm3, %v8377_v49  ;;  %v6182_v49 = vpack.c.bf16 %v4080_v5, %v4079_v24  ;;  %v6206_v24 = vpack.c.bf16 %v4202_v44, %v4201_v2 }
 0x4e7   : > { %3974 = vmatprep.mubr.f32.mxu1 %v6748_v39  ;;  %6177 = vmatpush1.bf16.msra.mxu1 %v6176_v51 }
 0x4e8   : > { %6178 = vmatprep.subr.bf16.mxu1 %v6749_v50 }
 0x4ea   : > { %5557 = vmatmul.mubr.msk.f32.gmra.mrb[66].mxu1 %vm3197_vm3, %v8383_v41  ;;  %v6185_v41 = vpack.c.bf16 %v4082_v40, %v4081_v52  ;;  %v4204_v52 = vld [vmem:[%s9311_s8 + $0x58] sm:$0xff] }
 0x4eb   : > { %3980 = vmatprep.mubr.f32.mxu1 %v6748_v39  ;;  %6180 = vmatpush1.bf16.msra.mxu1 %v6179_v17 }
 0x4ec   : > { %6181 = vmatprep.subr.bf16.mxu1 %v6749_v50 }
 0x4ee   : > { %5558 = vmatmul.mubr.msk.f32.gmra.mrb[68].mxu1 %vm3197_vm3, %v8389_v54  ;;  %v3151_v54 = vmax.f32 %v3137_v29, 0.0  ;;  %v4025_v29 = vld [vmem:[%s9309_s6] sm:$0x3] }
 0x4ef   : > { %3986 = vmatprep.mubr.f32.mxu1 %v6748_v39  ;;  %6183 = vmatpush1.bf16.msra.mxu1 %v6182_v49  ;;  %v8809_v56 = vrot.slane %v4025_v29, %v2677_v59  ;;  %v8813_v27 = vrot.slane %v4025_v29, %v2681_v61  ;;  %v4194_v59 = vld [vmem:[%s9311_s8 + $0x8] sm:$0xff]  ;;  %v4203_v49 = vld [vmem:[%s9311_s8 + $0x50] sm:$0xff] }
 0x4f0   : > { %6184 = vmatprep.subr.bf16.mxu1 %v6749_v50  ;;  %v6194_v16 = vpack.c.bf16 %v4194_v59, %v4193_v14 }
 0x4f2   : > { %5559 = vmatmul.mubr.msk.f32.gmra.mrb[70].mxu1 %vm3197_vm3, %v8604_v6  ;;  %v4084_v6 = vld [vmem:[%s9310_s7 + $0x88] sm:$0xff] }
 0x4f3   : > { %3992 = vmatprep.mubr.f32.mxu1 %v6748_v39  ;;  %6186 = vmatpush1.bf16.msra.mxu1 %v6185_v41  ;;  %v6188_v46 = vpack.c.bf16 %v4084_v6, %v4083_v42  ;;  %v6209_v41 = vpack.c.bf16 %v4204_v52, %v4203_v49  ;;  %v4313_v49 = vld [vmem:[%s9312_s9] sm:$0xff]  ;;  %v4314_v52 = vld [vmem:[%s9312_s9 + $0x8] sm:$0xff] }
 0x4f4   : > { %6187 = vmatprep.subr.bf16.mxu1 %v6749_v50 }
 0x4f6   : > { %5560 = vmatmul.mubr.msk.f32.gmra.mrb[72].mxu1 %vm3197_vm3, %v3150_v28 }
 0x4f7   : > { %3998 = vmatprep.mubr.f32.mxu1 %v6748_v39  ;;  %6189 = vmatpush1.bf16.msra.mxu1 %v6188_v46  ;;  %v4205_v46 = vld [vmem:[%s9311_s8 + $0x60] sm:$0xff] }
 0x4f8   : > { %6190 = vmatprep.subr.bf16.mxu1 %v6749_v50 }
 0x4fa   : > { %5561 = vmatmul.mubr.msk.f32.gmra.mrb[74].mxu1 %vm3197_vm3, %v3151_v54 }
 0x4fb   : > { %6192 = vmatpush1.bf16.msra.mxu1 %v6191_v63 }
 0x4fc   : > { %6193 = vmatprep.subr.bf16.mxu1 %v6749_v50 }
 0x5a9   : > { %v3946_v25 = vpop.f32.mrb[56].mxu1 }
 0x5aa   : > { %v3948_v0 = vpop.f32.mrb[57].mxu1  ;;  %v4037_v19 = vadd.f32 %v8809_v56, %v3946_v25 }
 0x5ab   : > { %v4038_v48 = vadd.f32 %v8813_v27, %v3948_v0 }
 0x5ad   : > { %v3952_v26 = vpop.f32.mrb[58].mxu1 }
 0x5ae   : > { %v4039_v33 = vadd.f32 %v8809_v56, %v3952_v26  ;;  %v3954_v31 = vpop.f32.mrb[59].mxu1  ;;  %v6212_v26 = vpack.c.bf16 %v4206_v18, %v4205_v46  ;;  %v4315_v46 = vld [vmem:[%s9312_s9 + $0x10] sm:$0xff]  ;;  %v4316_v18 = vld [vmem:[%s9312_s9 + $0x18] sm:$0xff] }
 0x5af   : > { %v4040_v58 = vadd.f32 %v8813_v27, %v3954_v31  ;;  %v4208_v31 = vld [vmem:[%s9311_s8 + $0x78] sm:$0xff] }
 0x5b0   : > { %v8825_v61 = vmax.f32 %v4037_v19, %v4039_v33  ;;  %v4207_v33 = vld [vmem:[%s9311_s8 + $0x70] sm:$0xff] }
 0x5b1   : > { %v8827_v53 = vmax.f32 %v4038_v48, %v4040_v58  ;;  %v3958_v4 = vpop.f32.mrb[60].mxu1  ;;  %v6215_v59 = vpack.c.bf16 %v4208_v31, %v4207_v33 }
 0x5b2   : > { %v3960_v55 = vpop.f32.mrb[61].mxu1  ;;  %v4041_v9 = vadd.f32 %v8809_v56, %v3958_v4 }
 0x5b3   : > { %5562 = vmatprep.mubr.msk.f32.mxu1 %vm4087_vm4, %v8827_v53  ;;  %v4042_v30 = vadd.f32 %v8813_v27, %v3960_v55  ;;  %v4210_v55 = vld [vmem:[%s9311_s8 + $0x88] sm:$0xff] }
 0x5b4   : > { %4168 = vmatmul.mubr.f32.vlgmr.msra.gmra.mrb[76].mxu1 %v8825_v61 }
 0x5b5   : > { %6195 = vmatpush1.bf16.msra.mxu1 %v6194_v16  ;;  %v3964_v7 = vpop.f32.mrb[62].mxu1  ;;  %v4209_v16 = vld [vmem:[%s9311_s8 + $0x80] sm:$0xff] }
 0x5b6   : > { %v4043_v34 = vadd.f32 %v8809_v56, %v3964_v7  ;;  %v3966_v35 = vpop.f32.mrb[63].mxu1  ;;  %6196 = vmatprep.subr.bf16.mxu1 %v6749_v50 }
 0x5b7   : > { %v4044_v62 = vadd.f32 %v8813_v27, %v3966_v35 }
 0x5b8   : > { %v8849_v28 = vmax.f32 %v4041_v9, %v4043_v34  ;;  %v6218_v9 = vpack.c.bf16 %v4210_v55, %v4209_v16  ;;  %v4212_v34 = vld [vmem:[%s9311_s8 + $0x98] sm:$0xff] }
 0x5b9   : > { %v8851_v10 = vmax.f32 %v4042_v30, %v4044_v62  ;;  %6198 = vmatpush1.bf16.msra.mxu1 %v6197_v8  ;;  %v3970_v20 = vpop.f32.mrb[64].mxu1  ;;  %v6227_v30 = vpack.c.bf16 %v5575_v47, %v5574_v37  ;;  %v5576_v62 = vld [vmem:[%s9312_s9 + $0x70] sm:$0xff]  ;;  %v5589_v37 = vld [vmem:[%s9312_s9 + $0xc8] sm:$0xff] }
 0x5ba   : > { %v3972_v36 = vpop.f32.mrb[65].mxu1  ;;  %6199 = vmatprep.subr.bf16.mxu1 %v6749_v50  ;;  %v4045_v15 = vadd.f32 %v8809_v56, %v3970_v20  ;;  %v5578_v20 = vld [vmem:[%s9312_s9 + $0x80] sm:$0xff] }
 0x5bb   : > { %5563 = vmatprep.mubr.msk.f32.mxu1 %vm4087_vm4, %v8851_v10  ;;  %v4046_v38 = vadd.f32 %v8813_v27, %v3972_v36 }
 0x5bc   : > { %4173 = vmatmul.mubr.f32.gmra.mrb[78].mxu1 %v8849_v28 }
 0x5bd   : > { %6201 = vmatpush1.bf16.msra.mxu1 %v6200_v22  ;;  %v3976_v13 = vpop.f32.mrb[66].mxu1  ;;  %v5579_v22 = vld [vmem:[%s9312_s9 + $0x88] sm:$0xff] }
 0x5be   : > { %v4047_v11 = vadd.f32 %v8809_v56, %v3976_v13  ;;  %v3978_v3 = vpop.f32.mrb[67].mxu1  ;;  %6202 = vmatprep.subr.bf16.mxu1 %v6749_v50  ;;  %v6233_v36 = vpack.c.bf16 %v5579_v22, %v5578_v20  ;;  %v6236_v13 = vpack.c.bf16 %v5581_v43, %v5580_v1  ;;  %v5593_v20 = vld [vmem:[%s9312_s9 + $0xe8] sm:$0xff]  ;;  %v5596_v1 = vld [vmem:[%s9312_s9 + $0xf8] sm:$0xff] }
 0x5bf   : > { %v4048_v51 = vadd.f32 %v8813_v27, %v3978_v3 }
 0x5c0   : > { %v8874_v45 = vmax.f32 %v4045_v15, %v4047_v11 }
 0x5c1   : > { %v4062_v23 = vmax.f32 %v4046_v38, %v4048_v51  ;;  %6204 = vmatpush1.bf16.msra.mxu1 %v6203_v32  ;;  %v3982_v17 = vpop.f32.mrb[68].mxu1 }
 0x5c2   : > { %v3984_v5 = vpop.f32.mrb[69].mxu1  ;;  %6205 = vmatprep.subr.bf16.mxu1 %v6749_v50  ;;  %v4049_v54 = vadd.f32 %v8809_v56, %v3982_v17 }
 0x5c3   : > { %5564 = vmatprep.mubr.msk.f32.mxu1 %vm4087_vm4, %v4062_v23  ;;  %v4050_v12 = vadd.f32 %v8813_v27, %v3984_v5 }
 0x5c4   : > { %4178 = vmatmul.mubr.f32.gmra.mrb[80].mxu1 %v8874_v45 }
 0x5c5   : > { %6207 = vmatpush1.bf16.msra.mxu1 %v6206_v24  ;;  %v3988_v40 = vpop.f32.mrb[70].mxu1 }
 0x5c6   : > { %v4051_v42 = vadd.f32 %v8809_v56, %v3988_v40  ;;  %v3990_v6 = vpop.f32.mrb[71].mxu1  ;;  %6208 = vmatprep.subr.bf16.mxu1 %v6749_v50 }
 0x5c7   : > { %v4052_v63 = vadd.f32 %v8813_v27, %v3990_v6 }
 0x5c8   : > { %v4063_v29 = vmax.f32 %v4049_v54, %v4051_v42  ;;  %v6239_v42 = vpack.c.bf16 %v4314_v52, %v4313_v49  ;;  %v5606_v52 = vld [vmem:[%s9312_s9 + $0x140] sm:$0xff] }
 0x5c9   : > { %v4064_v25 = vmax.f32 %v4050_v12, %v4052_v63  ;;  %6210 = vmatpush1.bf16.msra.mxu1 %v6209_v41  ;;  %v3994_v0 = vpop.f32.mrb[72].mxu1 }
 0x5ca   : > { %v3996_v19 = vpop.f32.mrb[73].mxu1  ;;  %6211 = vmatprep.subr.bf16.mxu1 %v6749_v50  ;;  %v4053_v48 = vadd.f32 %v8809_v56, %v3994_v0  ;;  %v4317_v0 = vld [vmem:[%s9312_s9 + $0x20] sm:$0xff] }
 0x5cb   : > { %5565 = vmatprep.mubr.msk.f32.mxu1 %vm4087_vm4, %v4064_v25  ;;  %v4054_v21 = vadd.f32 %v8813_v27, %v3996_v19 }
 0x5cc   : > { %4183 = vmatmul.mubr.f32.gmra.mrb[82].mxu1 %v4063_v29 }
 0x5cd   : > { %6213 = vmatpush1.bf16.msra.mxu1 %v6212_v26  ;;  %v4000_v14 = vpop.f32.mrb[74].mxu1  ;;  %v4318_v26 = vld [vmem:[%s9312_s9 + $0x28] sm:$0xff] }
 0x5ce   : > { %v4055_v58 = vadd.f32 %v8809_v56, %v4000_v14  ;;  %v4002_v4 = vpop.f32.mrb[75].mxu1  ;;  %6214 = vmatprep.subr.bf16.mxu1 %v6749_v50  ;;  %v4211_v56 = vld [vmem:[%s9311_s8 + $0x90] sm:$0xff]  ;;  %v6245_v14 = vpack.c.bf16 %v4318_v26, %v4317_v0  ;;  %v5614_v0 = vld [vmem:[%s9312_s9 + $0x180] sm:$0xff]  ;;  %v5615_v26 = vld [vmem:[%s9312_s9 + $0x188] sm:$0xff] }
 0x5cf   : > { %v4056_v60 = vadd.f32 %v8813_v27, %v4002_v4  ;;  %v6221_v27 = vpack.c.bf16 %v4212_v34, %v4211_v56 }
 0x5d0   : > { %v4065_v7 = vmax.f32 %v4053_v48, %v4055_v58  ;;  %v4320_v48 = vld [vmem:[%s9312_s9 + $0x38] sm:$0xff] }
 0x5d1   : > { %v4066_v8 = vmax.f32 %v4054_v21, %v4056_v60  ;;  %6216 = vmatpush1.bf16.msra.mxu1 %v6215_v59  ;;  %v4319_v59 = vld [vmem:[%s9312_s9 + $0x30] sm:$0xff]  ;;  %v4321_v21 = vld [vmem:[%s9312_s9 + $0x40] sm:$0xff]  ;;  %v4322_v60 = vld [vmem:[%s9312_s9 + $0x48] sm:$0xff] }
 0x5d2   : > { %6217 = vmatprep.subr.bf16.mxu1 %v6749_v50  ;;  %v6248_v55 = vpack.c.bf16 %v4320_v48, %v4319_v59  ;;  %v4748_v48 = vld [vmem:[%s9314_s11 + $0x18] sm:$0xff] }
 0x5d3   : > { %5566 = vmatprep.mubr.msk.f32.mxu1 %vm4087_vm4, %v4066_v8 }
 0x5d4   : > { %4188 = vmatmul.mubr.f32.gmra.mrb[84].mxu1 %v4065_v7 }
 0x5d5   : > { %6219 = vmatpush1.bf16.msra.mxu1 %v6218_v9  ;;  %5567 = vmatprep.mubr.msk.f32.mxu1 %vm4087_vm4, %v8827_v53  ;;  %v5572_v53 = vld [vmem:[%s9312_s9 + $0x50] sm:$0xff]  ;;  %v5585_v9 = vld [vmem:[%s9312_s9 + $0xa8] sm:$0xff] }
 0x5d6   : > { %6220 = vmatprep.subr.bf16.mxu1 %v6749_v50 }
 0x5d9   : > { %6222 = vmatpush1.bf16.msra.mxu1 %v6221_v27  ;;  %v5586_v27 = vld [vmem:[%s9312_s9 + $0xb0] sm:$0xff] }
 0x5da   : > { %6223 = vmatprep.subr.bf16.mxu1 %v6749_v50 }
 0x5dc   : > { %4278 = vmatmul.mubr.f32.vlgmr.msra.gmra.mrb[86].mxu1 %v8825_v61  ;;  %v5573_v61 = vld [vmem:[%s9312_s9 + $0x58] sm:$0xff] }
 0x5dd   : > { %5568 = vmatprep.mubr.msk.f32.mxu1 %vm4087_vm4, %v8851_v10  ;;  %v6224_v35 = vpack.c.bf16 %v5573_v61, %v5572_v53  ;;  %v5587_v53 = vld [vmem:[%s9312_s9 + $0xb8] sm:$0xff] }
 0x5de   : > { %v6257_v61 = vpack.c.bf16 %v5587_v53, %v5586_v27  ;;  %v4756_v27 = vld [vmem:[%s9314_s11 + $0x58] sm:$0xff] }
 0x5df   : > { %6225 = vmatpush3.bf16.msra.mxu1 %v6224_v35  ;;  %v5588_v35 = vld [vmem:[%s9312_s9 + $0xc0] sm:$0xff] }
 0x5e0   : > { %4283 = vmatmul.mubr.f32.gmra.mrb[88].mxu1 %v8849_v28  ;;  %6226 = vmatprep.subr.bf16.mxu1 %v6749_v50  ;;  %v5577_v28 = vld [vmem:[%s9312_s9 + $0x78] sm:$0xff]  ;;  %v6260_v47 = vpack.c.bf16 %v5589_v37, %v5588_v35  ;;  %v4758_v35 = vld [vmem:[%s9314_s11 + $0x68] sm:$0xff] }
 0x5e1   : > { %5569 = vmatprep.mubr.msk.f32.mxu1 %vm4087_vm4, %v4062_v23  ;;  %v6230_v10 = vpack.c.bf16 %v5577_v28, %v5576_v62  ;;  %v5591_v62 = vld [vmem:[%s9312_s9 + $0xd8] sm:$0xff] }
 0x5e3   : > { %6228 = vmatpush3.bf16.msra.mxu1 %v6227_v30  ;;  %v5590_v30 = vld [vmem:[%s9312_s9 + $0xd0] sm:$0xff] }
 0x5e4   : > { %4288 = vmatmul.mubr.f32.gmra.mrb[90].mxu1 %v8874_v45  ;;  %6229 = vmatprep.subr.bf16.mxu1 %v6749_v50  ;;  %v6263_v28 = vpack.c.bf16 %v5591_v62, %v5590_v30 }
 0x5e5   : > { %5570 = vmatprep.mubr.msk.f32.mxu1 %vm4087_vm4, %v4064_v25  ;;  %v6242_v25 = vpack.c.bf16 %v4316_v18, %v4315_v46  ;;  %v5611_v18 = vld [vmem:[%s9312_s9 + $0x168] sm:$0xff] }
 0x5e7   : > { %6231 = vmatpush3.bf16.msra.mxu1 %v6230_v10  ;;  %v5592_v10 = vld [vmem:[%s9312_s9 + $0xe0] sm:$0xff] }
 0x5e8   : > { %4293 = vmatmul.mubr.f32.gmra.mrb[92].mxu1 %v4063_v29  ;;  %6232 = vmatprep.subr.bf16.mxu1 %v6749_v50  ;;  %v6266_v22 = vpack.c.bf16 %v5593_v20, %v5592_v10 }
 0x5e9   : > { %5571 = vmatprep.mubr.msk.f32.mxu1 %vm4087_vm4, %v4066_v8  ;;  %v5584_v8 = vld [vmem:[%s9312_s9 + $0xa0] sm:$0xff] }
 0x5ea   : > { %v6254_v56 = vpack.c.bf16 %v5585_v9, %v5584_v8  ;;  %v4753_v8 = vld [vmem:[%s9314_s11 + $0x40] sm:$0xff]  ;;  %v4754_v9 = vld [vmem:[%s9314_s11 + $0x48] sm:$0xff] }
 0x5eb   : > { %6234 = vmatpush3.bf16.msra.mxu1 %v6233_v36  ;;  %v5595_v36 = vld [vmem:[%s9312_s9 + $0xf0] sm:$0xff] }
 0x5ec   : > { %4298 = vmatmul.mubr.f32.gmra.mrb[94].mxu1 %v4065_v7  ;;  %6235 = vmatprep.subr.bf16.mxu1 %v6749_v50  ;;  %v6251_v7 = vpack.c.bf16 %v4322_v60, %v4321_v21  ;;  %v6269_v43 = vpack.c.bf16 %v5596_v1, %v5595_v36  ;;  %v4751_v21 = vld [vmem:[%s9314_s11 + $0x30] sm:$0xff]  ;;  %v4752_v60 = vld [vmem:[%s9314_s11 + $0x38] sm:$0xff] }
 0x5ed   : > { %5730 = vmatprep.mubr.msk.f32.mxu1 %vm6750_vm5, %v6748_v39 }
 0x5ef   : > { %6237 = vmatpush3.bf16.msra.mxu1 %v6236_v13 }
 0x5f0   : > { %6238 = vmatprep.subr.bf16.mxu1 %v6749_v50 }
 0x687   : > { %v4169_v32 = vpop.f32.mrb[76].mxu1 }
 0x688   : > { %v4171_v15 = vpop.f32.mrb[77].mxu1 }
 0x689   : > { %v5598_v15 = vld [vmem:[%s9312_s9 + $0x108] sm:$0xff] }
 0x68f   : > { %v4174_v11 = vpop.f32.mrb[78].mxu1 }
 0x690   : > { %v4176_v3 = vpop.f32.mrb[79].mxu1 }
 0x691   : > { %v5599_v3 = vld [vmem:[%s9312_s9 + $0x110] sm:$0xff] }
 0x697   : > { %v8972_v2 = vpop.f32.mrb[80].mxu1 }
 0x698   : > { %v4181_v44 = vpop.f32.mrb[81].mxu1 }
 0x69f   : > { %v8974_v38 = vpop.f32.mrb[82].mxu1 }
 0x6a0   : > { %v4186_v51 = vpop.f32.mrb[83].mxu1 }
 0x6a1   : > { %v5601_v51 = vld [vmem:[%s9312_s9 + $0x120] sm:$0xff] }
 0x6a7   : > { %v8976_v45 = vpop.f32.mrb[84].mxu1 }
 0x6a8   : > { %v4191_v23 = vpop.f32.mrb[85].mxu1 }
 0x6a9   : > { %v5602_v23 = vld [vmem:[%s9312_s9 + $0x128] sm:$0xff] }
 0x6af   : > { %v4279_v17 = vpop.f32.mrb[86].mxu1 }
 0x6b0   : > { %v4303_v24 = vmax.f32 %v4169_v32, %v4279_v17  ;;  %v4281_v5 = vpop.f32.mrb[87].mxu1  ;;  %v5597_v32 = vld [vmem:[%s9312_s9 + $0x100] sm:$0xff]  ;;  %v6278_v17 = vpack.c.bf16 %v5602_v23, %v5601_v51  ;;  %v4843_v51 = vld [vmem:[%s9316_s13 + $0x8] sm:$0xff] }
 0x6b1   : > { %v5604_v5 = vld [vmem:[%s9312_s9 + $0x138] sm:$0xff] }
 0x6b2   : > { %v4308_v34 = vmax.f32 %v4303_v24, 0.0  ;;  %v5603_v24 = vld [vmem:[%s9312_s9 + $0x130] sm:$0xff] }
 0x6b3   : > { %v4284_v40 = vpop.f32.mrb[88].mxu1  ;;  %v6281_v49 = vpack.c.bf16 %v5604_v5, %v5603_v24  ;;  %v4844_v5 = vld [vmem:[%s9316_s13 + $0x10] sm:$0xff] }
 0x6b4   : > { %v4304_v41 = vmax.f32 %v4174_v11, %v4284_v40  ;;  %v4286_v54 = vpop.f32.mrb[89].mxu1  ;;  %v6272_v11 = vpack.c.bf16 %v5598_v15, %v5597_v32  ;;  %v5607_v40 = vld [vmem:[%s9312_s9 + $0x148] sm:$0xff] }
 0x6b6   : > { %v4309_v6 = vmax.f32 %v4304_v41, 0.0  ;;  %v6284_v41 = vpack.c.bf16 %v5607_v40, %v5606_v52  ;;  %v4846_v40 = vld [vmem:[%s9316_s13 + $0x20] sm:$0xff] }
 0x6b7   : > { %v4289_v12 = vpop.f32.mrb[90].mxu1 }
 0x6b8   : > { %v4305_v63 = vmax.f32 %v8972_v2, %v4289_v12  ;;  %v4291_v29 = vpop.f32.mrb[91].mxu1  ;;  %5731 = vmatmul.mubr.msk.f32.vlgmr.msra.gmra.mrb[96].mxu1 %vm4334_vm6, %v4309_v6  ;;  %v5600_v2 = vld [vmem:[%s9312_s9 + $0x118] sm:$0xff] }
 0x6b9   : > { %6240 = vmatpush3.bf16.msra.mxu1 %v6239_v42  ;;  %5753 = vmatprep.mubr.msk.f32.mxu1 %vm6750_vm5, %v6748_v39  ;;  %v6275_v44 = vpack.c.bf16 %v5600_v2, %v5599_v3  ;;  %v5608_v42 = vld [vmem:[%s9312_s9 + $0x150] sm:$0xff]  ;;  %v5609_v6 = vld [vmem:[%s9312_s9 + $0x158] sm:$0xff] }
 0x6ba   : > { %6241 = vmatprep.subr.bf16.mxu1 %v6749_v50  ;;  %v4310_v13 = vmax.f32 %v4305_v63, 0.0  ;;  %v6287_v46 = vpack.c.bf16 %v5609_v6, %v5608_v42  ;;  %v5612_v63 = vld [vmem:[%s9312_s9 + $0x170] sm:$0xff]  ;;  %v5613_v29 = vld [vmem:[%s9312_s9 + $0x178] sm:$0xff] }
 0x6bb   : > { %v9001_v19 = vpop.f32.mrb[92].mxu1  ;;  %v4848_v42 = vld [vmem:[%s9316_s13 + $0x30] sm:$0xff]  ;;  %v4849_v6 = vld [vmem:[%s9316_s13 + $0x38] sm:$0xff] }
 0x6bc   : > { %v4306_v33 = vmax.f32 %v8974_v38, %v9001_v19  ;;  %v4296_v31 = vpop.f32.mrb[93].mxu1  ;;  %v5610_v38 = vld [vmem:[%s9312_s9 + $0x160] sm:$0xff]  ;;  %v6296_v19 = vpack.c.bf16 %v5615_v26, %v5614_v0 }
 0x6bd   : > { %6243 = vmatpush3.bf16.msra.mxu1 %v6242_v25  ;;  %v6290_v12 = vpack.c.bf16 %v5611_v18, %v5610_v38  ;;  %v6293_v25 = vpack.c.bf16 %v5613_v29, %v5612_v63  ;;  %v4745_v31 = vld [vmem:[%s9314_s11] sm:$0xff]  ;;  %v4851_v18 = vld [vmem:[%s9316_s13 + $0x48] sm:$0xff]  ;;  %v4852_v63 = vld [vmem:[%s9316_s13 + $0x50] sm:$0xf] }
 0x6be   : > { %6244 = vmatprep.subr.bf16.mxu1 %v6749_v50  ;;  %v4311_v54 = vmax.f32 %v4306_v33, 0.0  ;;  %v4850_v38 = vld [vmem:[%s9316_s13 + $0x40] sm:$0xff] }
 0x6bf   : > { %v9012_v58 = vpop.f32.mrb[94].mxu1 }
 0x6c0   : > { %v4307_v4 = vmax.f32 %v8976_v45, %v9012_v58  ;;  %v4301_v16 = vpop.f32.mrb[95].mxu1  ;;  %v4747_v45 = vld [vmem:[%s9314_s11 + $0x10] sm:$0xff] }
 0x6c1   : > { %6246 = vmatpush3.bf16.msra.mxu1 %v6245_v14  ;;  %v4746_v14 = vld [vmem:[%s9314_s11 + $0x8] sm:$0xff]  ;;  %v6302_v58 = vpack.c.bf16 %v4748_v48, %v4747_v45 }
 0x6c2   : > { %6247 = vmatprep.subr.bf16.mxu1 %v6749_v50  ;;  %v4312_v33 = vmax.f32 %v4307_v4, 0.0  ;;  %v6299_v59 = vpack.c.bf16 %v4746_v14, %v4745_v31  ;;  %v4749_v4 = vld [vmem:[%s9314_s11 + $0x20] sm:$0xff]  ;;  %v4750_v16 = vld [vmem:[%s9314_s11 + $0x28] sm:$0xff] }
 0x6c5   : > { %6249 = vmatpush3.bf16.msra.mxu1 %v6248_v55  ;;  %v6305_v55 = vpack.c.bf16 %v4750_v16, %v4749_v4 }
 0x6c6   : > { %6250 = vmatprep.subr.bf16.mxu1 %v6749_v50 }
 0x6c9   : > { %6252 = vmatpush3.bf16.msra.mxu1 %v6251_v7  ;;  %v6308_v7 = vpack.c.bf16 %v4752_v60, %v4751_v21 }
 0x6ca   : > { %6253 = vmatprep.subr.bf16.mxu1 %v6749_v50 }
 0x6cc   : > { %5754 = vmatmul.mubr.msk.f32.vlgmr.msra.gmra.mrb[98].mxu1 %vm4334_vm6, %v4308_v34  ;;  %v4755_v34 = vld [vmem:[%s9314_s11 + $0x50] sm:$0xff] }
 0x6cd   : > { %6255 = vmatpush3.bf16.msra.mxu1 %v6254_v56  ;;  %5776 = vmatprep.mubr.msk.f32.mxu1 %vm6750_vm5, %v6748_v39  ;;  %v6311_v56 = vpack.c.bf16 %v4754_v9, %v4753_v8  ;;  %v6314_v53 = vpack.c.bf16 %v4756_v27, %v4755_v34 }
 0x6ce   : > { %6256 = vmatprep.subr.bf16.mxu1 %v6749_v50 }
 0x6d1   : > { %6258 = vmatpush3.bf16.msra.mxu1 %v6257_v61  ;;  %v4757_v61 = vld [vmem:[%s9314_s11 + $0x60] sm:$0xff] }
 0x6d2   : > { %6259 = vmatprep.subr.bf16.mxu1 %v6749_v50  ;;  %v6317_v37 = vpack.c.bf16 %v4758_v35, %v4757_v61 }
 0x6d5   : > { %6261 = vmatpush3.bf16.msra.mxu1 %v6260_v47  ;;  %v4759_v47 = vld [vmem:[%s9314_s11 + $0x70] sm:$0xff] }
 0x6d6   : > { %6262 = vmatprep.subr.bf16.mxu1 %v6749_v50 }
 0x6d9   : > { %6264 = vmatpush3.bf16.msra.mxu1 %v6263_v28 }
 0x6da   : > { %6265 = vmatprep.subr.bf16.mxu1 %v6749_v50 }
 0x6dd   : > { %6267 = vmatpush3.bf16.msra.mxu1 %v6266_v22 }
 0x6de   : > { %6268 = vmatprep.subr.bf16.mxu1 %v6749_v50 }
 0x6e0   : > { %5777 = vmatmul.mubr.msk.f32.vlgmr.msra.gmra.mrb[100].mxu1 %vm4334_vm6, %v4310_v13 }
 0x6e1   : > { %6270 = vmatpush3.bf16.msra.mxu1 %v6269_v43  ;;  %5799 = vmatprep.mubr.msk.f32.mxu1 %vm6750_vm5, %v6748_v39 }
 0x6e2   : > { %6271 = vmatprep.subr.bf16.mxu1 %v6749_v50 }
 0x6e5   : > { %6273 = vmatpush3.bf16.msra.mxu1 %v6272_v11  ;;  %v5617_v11 = vld [vmem:[%s9313_s10] ss:$0 sm:$0xff] }
 0x6e6   : > { %6274 = vmatprep.subr.bf16.mxu1 %v6749_v50 }
 0x6e9   : > { %6276 = vmatpush3.bf16.msra.mxu1 %v6275_v44  ;;  %v4842_v44 = vld [vmem:[%s9316_s13] sm:$0xff] }
 0x6ea   : > { %6277 = vmatprep.subr.bf16.mxu1 %v6749_v50 }
 0x6ed   : > { %6279 = vmatpush3.bf16.msra.mxu1 %v6278_v17  ;;  %v6320_v17 = vpack.c.bf16 %v4843_v51, %v4842_v44 }
 0x6ee   : > { %6280 = vmatprep.subr.bf16.mxu1 %v6749_v50 }
 0x6f1   : > { %6282 = vmatpush3.bf16.msra.mxu1 %v6281_v49  ;;  %v4845_v49 = vld [vmem:[%s9316_s13 + $0x18] sm:$0xff] }
 0x6f2   : > { %6283 = vmatprep.subr.bf16.mxu1 %v6749_v50  ;;  %v6323_v52 = vpack.c.bf16 %v4845_v49, %v4844_v5 }
 0x6f4   : > { %5800 = vmatmul.mubr.msk.f32.vlgmr.msra.gmra.mrb[102].mxu1 %vm4334_vm6, %v4311_v54 }
 0x6f5   : > { %6285 = vmatpush3.bf16.msra.mxu1 %v6284_v41  ;;  %5822 = vmatprep.mubr.msk.f32.mxu1 %vm6750_vm5, %v6748_v39  ;;  %v4847_v41 = vld [vmem:[%s9316_s13 + $0x28] sm:$0xff] }
 0x6f6   : > { %6286 = vmatprep.subr.bf16.mxu1 %v6749_v50  ;;  %v6326_v54 = vpack.c.bf16 %v4847_v41, %v4846_v40 }
 0x6f9   : > { %6288 = vmatpush3.bf16.msra.mxu1 %v6287_v46  ;;  %v6329_v46 = vpack.c.bf16 %v4849_v6, %v4848_v42 }
 0x6fa   : > { %6289 = vmatprep.subr.bf16.mxu1 %v6749_v50 }
 0x6fd   : > { %6291 = vmatpush3.bf16.msra.mxu1 %v6290_v12  ;;  %v6332_v12 = vpack.c.bf16 %v4851_v18, %v4850_v38 }
 0x6fe   : > { %6292 = vmatprep.subr.bf16.mxu1 %v6749_v50 }
 0x701   : > { %6294 = vmatpush3.bf16.msra.mxu1 %v6293_v25 }
 0x702   : > { %6295 = vmatprep.subr.bf16.mxu1 %v6749_v50 }
 0x705   : > { %6297 = vmatpush3.bf16.msra.mxu1 %v6296_v19  ;;  %v4937_v19 = vand.u32 127, %v2675_v57 }
 0x706   : > { %6298 = vmatprep.subr.bf16.mxu1 %v6749_v50 }
 0x707   : > { %vm4938_vm8 = vcmp.lt.s32.totalorder %v4937_v19, 10 }
 0x708   : > { %5823 = vmatmul.mubr.msk.f32.vlgmr.msra.gmra.mrb[104].mxu1 %vm4334_vm6, %v4312_v33 }
 0x709   : > { %5855 = vmatprep.mubr.msk.f32.mxu1 %vm6750_vm5, %v6748_v39  ;;  %6300 = vmatpush3.bf16.msra.mxu1 %v6299_v59 }
 0x70a   : > { %6301 = vmatprep.subr.bf16.mxu1 %v6749_v50 }
 0x70d   : > { %6303 = vmatpush3.bf16.msra.mxu1 %v6302_v58 }
 0x70e   : > { %6304 = vmatprep.subr.bf16.mxu1 %v6749_v50 }
 0x711   : > { %6306 = vmatpush3.bf16.msra.mxu1 %v6305_v55 }
 0x712   : > { %6307 = vmatprep.subr.bf16.mxu1 %v6749_v50 }
 0x715   : > { %6309 = vmatpush3.bf16.msra.mxu1 %v6308_v7 }
 0x716   : > { %6310 = vmatprep.subr.bf16.mxu1 %v6749_v50 }
 0x719   : > { %6312 = vmatpush3.bf16.msra.mxu1 %v6311_v56 }
 0x71a   : > { %6313 = vmatprep.subr.bf16.mxu1 %v6749_v50 }
 0x71d   : > { %6315 = vmatpush3.bf16.msra.mxu1 %v6314_v53 }
 0x71e   : > { %6316 = vmatprep.subr.bf16.mxu1 %v6749_v50 }
 0x721   : > { %6318 = vmatpush3.bf16.msra.mxu1 %v6317_v37 }
 0x722   : > { %5853 = vmatprep.subr.mxu1 %v6748_v39 }
 0x725   : > { %5854 = vmatpush3.msra.mxu1 %v4759_v47 }
 0x726   : > { %6319 = vmatprep.subr.bf16.mxu1 %v6749_v50 }
 0x78b   : > { %v4404_v30 = vpop.f32.mrb[96].mxu1 }
 0x78c   : > { %v5732_v62 = vpop.f32.mrb[97].mxu1 }
 0x79f   : > { %v4477_v28 = vpop.f32.mrb[98].mxu1 }
 0x7a0   : > { %v4478_v10 = vadd.f32 %v4477_v28, %v4404_v30  ;;  %v5755_v20 = vpop.f32.mrb[99].mxu1 }
 0x7b3   : > { %v4561_v22 = vpop.f32.mrb[100].mxu1 }
 0x7b4   : > { %v4565_v36 = vadd.f32 %v4561_v22, %v4478_v10  ;;  %v5778_v1 = vpop.f32.mrb[101].mxu1 }
 0x7c7   : > { %v4646_v43 = vpop.f32.mrb[102].mxu1 }
 0x7c8   : > { %v4650_v13 = vadd.f32 %v4646_v43, %v4565_v36  ;;  %v5801_v32 = vpop.f32.mrb[103].mxu1 }
 0x7db   : > { %v4731_v15 = vpop.f32.mrb[104].mxu1 }
 0x7dc   : > { %v4735_v3 = vadd.f32 %v4731_v15, %v4650_v13  ;;  %v5824_v2 = vpop.f32.mrb[105].mxu1 }
 0x7de   : > { %v4743_v23 = vadd.f32 %v5617_v11, %v4735_v3 }
 0x7e0   : > { %v4744_v24 = vmax.f32 %v4743_v23, 0.0 }
 0x7e2   : > { %5856 = vmatmul.mubr.msk.f32.vlgmr.msra.gmra.mrb[106].mxu1 %vm4767_vm7, %v4744_v24 }
 0x7e3   : > { %6321 = vmatpush3.bf16.msra.mxu1 %v6320_v17  ;;  %5880 = vmatprep.mubr.msk.f32.mxu1 %vm6750_vm5, %v6748_v39 }
 0x7e4   : > { %6322 = vmatprep.subr.bf16.mxu1 %v6749_v50 }
 0x7e7   : > { %6324 = vmatpush3.bf16.msra.mxu1 %v6323_v52 }
 0x7e8   : > { %6325 = vmatprep.subr.bf16.mxu1 %v6749_v50 }
 0x7eb   : > { %6327 = vmatpush3.bf16.msra.mxu1 %v6326_v54 }
 0x7ec   : > { %6328 = vmatprep.subr.bf16.mxu1 %v6749_v50 }
 0x7ef   : > { %6330 = vmatpush3.bf16.msra.mxu1 %v6329_v46 }
 0x7f0   : > { %6331 = vmatprep.subr.bf16.mxu1 %v6749_v50  ;;  %v5618_v50 = vld [vmem:[%s9315_s12] ss:$0 sm:$0xff] }
 0x7f3   : > { %6333 = vmatpush3.bf16.msra.mxu1 %v6332_v12 }
 0x7f4   : > { %5878 = vmatprep.subr.mxu1 %v6748_v39  ;;  %v5620_v39 = vld [vmem:[%s9317_s14] ss:$0 sm:$0xff] }
 0x7f7   : > { %5879 = vmatpush3.msk.msra.mxu1 %vm3228_vm2, %v4852_v63 }
 0x8b5   : > { %v4837_v29 = vpop.f32.mrb[106].mxu1 }
 0x8b6   : > { %v4838_v25 = vadd.f32 %v5618_v50, %v4837_v29  ;;  %v5857_v0 = vpop.f32.mrb[107].mxu1 }
 0x8b8   : > { %v4841_v26 = vmax.f32 %v4838_v25, 0.0 }
 0x8ba   : > { %5881 = vmatmul.mubr.msk.f32.vlgmr.msra.gmra.mrb[108].mxu1 %vm3197_vm3, %v4841_v26 }
 0x98d   : > { %v4932_v33 = vpop.f32.mrb[108].mxu1 }
 0x98e   : > { %v4933_v31 = vadd.f32 %v5620_v39, %v4932_v33  ;;  %v5882_v14 = vpop.f32.mrb[109].mxu1 }
 0x990   : > { %v4939_v59 = vsel %vm4938_vm8, %v4933_v31, -1e+30 }
 0x991   : > { %4940 = vmax.xlane.f32.xlu0 %v4939_v59 }
 0xa1e   : > { %v4941_v45 = vpop.xlane.xlu0 %4940 }
 0xa1f   : > { %v4942_v48 = vsub.f32 %v4939_v59, %v4941_v45 }
 0xa21   : > { %v4943_v58 = vmul.f32 1.442695, %v4942_v48 }
 0xa23   : > { %6680 = vpow2.f32 %v4943_v58 }
 0xa2d   : > { %v6681_v4 = vpop.eup %6680 }
 0xa2e   : > { %4945 = vadd.xlane.f32.xlu0 %v6681_v4 }
 0xabb   : > { %v4946_v57 = vpop.xlane.xlu0 %4945 }
 0xabc   : > { %6682 = vlog2.f32 %v4946_v57 }
 0xac6   : > { %v6683_v16 = vpop.eup %6682 }
 0xac7   : > { %v4948_v55 = vmul.f32 0.6931472, %v6683_v16 }
 0xac9   : > { %v4949_v21 = vsub.f32 %v4942_v48, %v4948_v55 }
 0xacb   : > { %4950 = vst [vmem:[%s650_s16] sm:$0xff] %v4949_v21 }
 0xacc   : > { %6697 = shalt.err (!%p6694_p5)
}
 0xacd   : > { %s6698_s30 = scalar_lea.hbm %s9259_s26, 128  ;;  %s6702_s17 = scalar_lea.hbm %s9318_s15, 256 }
 0xace   : > { %p6699_p7 = scmp.ne.s32.totalorder %s9259_s26, %s6698_s30  ;;  %p6703_p12 = scmp.lt.u32.totalorder %s9259_s26, %s9318_s15 }
 0xacf   : > { %p6704_p13 = scmp.lt.u32.totalorder %s6702_s17, %s6698_s30  ;;  %p6706_p1 = scmp.lt.u32.totalorder %s6698_s30, %s9259_s26 }
 0xad0   : > { %p6700_p10 = pnand %p6699_p7, %p6870_p6 }
 0xad1   : > { %p6705_p0 = por %p6704_p13, %p6703_p12 }
 0xad2   : > { %p6701_p11 = pneg %p6700_p10 }
 0xad3   : > { %p6707_p2 = por %p6706_p1, %p6705_p0 }
 0xad5   : > { %p6708_p3 = pnand %p6707_p2, %p6701_p11 }
 0xad7   : > { %6711 = shalt.err (!%p6708_p3)
}
 0xad8   : > { %6638 = dma.vmem_to_hbm [thread:$0]  (%p6870_p6), %s9261_s27, 128, %s9259_s26, %s4952_s0  }
 0xad9 PF: > { %s4977_s20 = sand.u32 1, %s6734_s18   ;;  %p6641_p4 = pnand %p5032_p9, %p6874_p8 }
 0xada   : > { %s4978_s22 = scalar_lea.sflag [#allocation4], %s4977_s20 }
 0xadb   : > { %6729 = dma.done.wait (!%p6641_p4), %s4978_s22, 128  }
 0xadc   : > { %6731 = vsyncadd (!%p6641_p4), %s4978_s22, 4294967168  ;;  %s9333_s21 = sld [smem:[#allocation8_spill]]  ;;  %s9334_s18 = sld [smem:[#allocation6_spill]] }
 0xadd   : > { %s9335_s19 = sld [smem:[#allocation7_spill]]  ;;  %s9336_s20 = sld [smem:[#allocation9_spill]] }
 0xae2   : > { %p25_p5 = scmp.ge.s32.totalorder %s9333_s21, 4  }
 0xae4   :  { %27 = sbr.rel (!%p25_p5) target bundleno = 5 (0x5), region = 174 }
 0xaeb   :  { %4983 = vsyncpa [#allocation4], 1 }
 0xaec   :  { %4985 = vsyncpa [#allocation4 + $0x1], 1 }

</bundles_post_ra>
